<compile_context>
chip_gen: v7x
topology: tpu7x:2x2x1
jax: 0.10.0
libtpu: 0.0.40
codegen_flags: <defaults>
</compile_context>

<pallas_src>
import functools
import math

import jax
import jax.numpy as jnp
from jax.experimental import pallas as pl
from jax.experimental.pallas import tpu as pltpu

MXU_DTYPE = jnp.bfloat16   # matmul operand dtype (accumulation stays f32)
LN_EPS = 1e-5


# ------------------------------ in-kernel math -------------------------------

def _dot(a, b):
    """2-D matmul on the MXU: bf16 operands, f32 accumulation."""
    return jax.lax.dot_general(
        a.astype(MXU_DTYPE), b.astype(MXU_DTYPE),
        dimension_numbers=(((1,), (0,)), ((), ())),
        preferred_element_type=jnp.float32)


def _dot_qk(q, k):
    """q @ k^T without materializing a transpose (contract last dims)."""
    return jax.lax.dot_general(
        q.astype(MXU_DTYPE), k.astype(MXU_DTYPE),
        dimension_numbers=(((1,), (1,)), ((), ())),
        preferred_element_type=jnp.float32)


def _layernorm(y, g, b):
    mu = jnp.mean(y, axis=-1, keepdims=True)
    var = jnp.mean((y - mu) ** 2, axis=-1, keepdims=True)
    return (y - mu) * jax.lax.rsqrt(var + LN_EPS) * g + b


# --------------------------------- kernel ------------------------------------

def fused_transformer_kernel(x_ref, pe_ref,
                             w_q_ref, b_q_ref, w_k_ref, b_k_ref,
                             w_v_ref, b_v_ref, w_out_ref, b_out_ref,
                             w_ff1_ref, b_ff1_ref, w_ff2_ref, b_ff2_ref,
                             ln1_g_ref, ln1_b_ref, ln2_g_ref, ln2_b_ref,
                             dec_w_ref, dec_b_ref, o_ref,
                             *, nlayers, nhead, batch, seq, emb_scale):
    """Pos-encode + `nlayers` post-norm TransformerEncoderLayers (relu FFN)
    + decoder Linear + softmax over the batch axis, on the whole folded batch
    (B*S rows).  All weights are VMEM-resident for the whole forward."""
    B, S, H = batch, seq, nhead
    BS, E = x_ref.shape
    Dh = E // H
    sm_scale = 1.0 / math.sqrt(Dh)

    # embedding * sqrt(ninp) + positional encoding (dropout == identity)
    x = x_ref[...] * emb_scale + pe_ref[...]                      # (B*S, E) f32

    # additive causal mask generated in-registers (no HBM mask traffic)
    rows = jax.lax.broadcasted_iota(jnp.int32, (S, S), 0)
    cols = jax.lax.broadcasted_iota(jnp.int32, (S, S), 1)
    allowed = cols <= rows

    # TODO(synk): for large nlayers / production E,nhid, switch to
    # lax.fori_loop or a layer grid axis ("arbitrary") and stream per-layer
    # weights instead of keeping all layers resident (v7x 64 MiB VMEM);
    # at L=2 the static unrolled loop with resident weights is the right trade.
    for l in range(nlayers):
        # ---- multi-head self-attention (post-norm) ----
        # Per-head projection weights are pre-split, so every head's q/k/v is
        # a lane-dense (B*S, Dh) MXU output: no lane-offset slicing, no concat.
        qs, ks, vs = [], [], []
        for h in range(H):
            lh = l * H + h
            qs.append(_dot(x, w_q_ref[lh]) + b_q_ref[lh])         # (B*S, Dh)
            ks.append(_dot(x, w_k_ref[lh]) + b_k_ref[lh])
            vs.append(_dot(x, w_v_ref[lh]) + b_v_ref[lh])

        attn_rows = []
        for b in range(B):            # batch slabs are sublane-aligned (S % 8 == 0)
            r = slice(b * S, (b + 1) * S)
            acc = None
            for h in range(H):
                s = _dot_qk(qs[h][r, :], ks[h][r, :]) * sm_scale  # (S, S)
                s = jnp.where(allowed, s, -1e9)
                s = s - jnp.max(s, axis=-1, keepdims=True)
                p = jnp.exp(s)
                p = p / jnp.sum(p, axis=-1, keepdims=True)        # exact softmax
                o_bh = _dot(p, vs[h][r, :])                       # (S, Dh)
                c = _dot(o_bh, w_out_ref[l * H + h])              # (S, E), head-summed
                acc = c if acc is None else acc + c
            attn_rows.append(acc + b_out_ref[l])
        attn = jnp.concatenate(attn_rows, axis=0)                 # (B*S, E), sublane concat
        x = _layernorm(attn + x, ln1_g_ref[l], ln1_b_ref[l])

        # ---- feed-forward (relu) on all B*S rows at once ----
        ff = jnp.maximum(_dot(x, w_ff1_ref[l]) + b_ff1_ref[l], 0.0)
        ff = _dot(ff, w_ff2_ref[l]) + b_ff2_ref[l]
        x = _layernorm(ff + x, ln2_g_ref[l], ln2_b_ref[l])

    # ---- fused decoder Linear + nn.Softmax(dim=1) (softmax over batch) ----
    logits = _dot(x, dec_w_ref[...]) + dec_b_ref[...]             # (B*S, C) f32
    parts = [logits[b * S:(b + 1) * S, :] for b in range(B)]      # (S, C) per batch elem
    m = parts[0]
    for p_ in parts[1:]:
        m = jnp.maximum(m, p_)
    es = [jnp.exp(p_ - m) for p_ in parts]
    den = es[0]
    for e in es[1:]:
        den = den + e
    inv = 1.0 / den          # exact division: runs once per forward on a tiny slab
    # lane-concatenate batch slabs -> (S, B*C): row-major identical to (S, B, C)
    # and written with ONE full-block store (no strided per-batch partial stores).
    o_ref[...] = jnp.concatenate([e * inv for e in es], axis=1)


# ------------------------------ model definition -----------------------------

def make_pe(max_len, d_model):
    position = jnp.arange(max_len, dtype=jnp.float32)[:, None]
    div_term = jnp.exp(jnp.arange(0, d_model, 2, dtype=jnp.float32)
                       * (-math.log(10000.0) / d_model))
    pe = jnp.zeros((max_len, d_model), jnp.float32)
    pe = pe.at[:, 0::2].set(jnp.sin(position * div_term))
    pe = pe.at[:, 1::2].set(jnp.cos(position * div_term))
    return pe


def init_params(key, ntoken, ninp, nhead, nhid, nlayers, n_classes):
    E, F, L, H = ninp, nhid, nlayers, nhead
    Dh = E // H
    keys = jax.random.split(key, 8)
    initrange = 0.1

    def w(k, shape, scale=0.05):
        # Linear weights pre-transposed (in_features, out_features) and stored
        # in bf16 so the MXU consumes them directly (no per-layer casts).
        return (jax.random.normal(k, shape, jnp.float32) * scale).astype(jnp.bfloat16)

    return {
        'emb':   jax.random.uniform(keys[0], (ntoken, E), jnp.float32,
                                    -initrange, initrange),
        # Attention projections split per head; leading axis = layer*head so the
        # kernel uses single-integer leading-ref indexing.
        'w_q':   w(keys[1], (L * H, E, Dh)),
        'w_k':   w(keys[2], (L * H, E, Dh)),
        'w_v':   w(keys[3], (L * H, E, Dh)),
        'b_q':   jnp.zeros((L * H, 1, Dh), jnp.float32),
        'b_k':   jnp.zeros((L * H, 1, Dh), jnp.float32),
        'b_v':   jnp.zeros((L * H, 1, Dh), jnp.float32),
        'w_out': w(keys[4], (L * H, Dh, E)),
        'b_out': jnp.zeros((L, 1, E), jnp.float32),
        'w_ff1': w(keys[5], (L, E, F)),
        'b_ff1': jnp.zeros((L, 1, F), jnp.float32),
        'w_ff2': w(keys[6], (L, F, E)),
        'b_ff2': jnp.zeros((L, 1, E), jnp.float32),
        'ln1_g': jnp.ones((L, 1, E), jnp.float32),
        'ln1_b': jnp.zeros((L, 1, E), jnp.float32),
        'ln2_g': jnp.ones((L, 1, E), jnp.float32),
        'ln2_b': jnp.zeros((L, 1, E), jnp.float32),
        'dec_w': jax.random.uniform(keys[7], (E, n_classes), jnp.float32,
                                    -initrange, initrange).astype(jnp.bfloat16),
        'dec_b': jnp.zeros((1, n_classes), jnp.float32),
    }


@functools.partial(jax.jit, static_argnames=("nhead",))
def forward(params, src, pe, *, nhead):
    # src: (S, B) int32 token ids;  returns (S, B, n_classes) probabilities.
    S, B = src.shape
    E = params['emb'].shape[1]
    L = params['w_ff1'].shape[0]
    C = params['dec_w'].shape[1]

    # TODO(synk): embedding gather stays in XLA glue (no clean Pallas
    # equivalent without scalar-prefetch DMA-gather machinery); dropout
    # layers are inference-mode identities.
    x_flat = jnp.take(params['emb'], src.T.reshape(-1), axis=0)   # (B*S, E), row = b*S+s
    pe_flat = jnp.tile(pe[:S], (B, 1))                            # (B*S, E)

    args = (x_flat, pe_flat,
            params['w_q'], params['b_q'], params['w_k'], params['b_k'],
            params['w_v'], params['b_v'], params['w_out'], params['b_out'],
            params['w_ff1'], params['b_ff1'], params['w_ff2'], params['b_ff2'],
            params['ln1_g'], params['ln1_b'], params['ln2_g'], params['ln2_b'],
            params['dec_w'], params['dec_b'])

    # Single grid-less pallas_call: whole batch, all layers, decoder + batch
    # softmax in one launch; every input is single-buffered and VMEM-resident.
    out_flat = pl.pallas_call(
        functools.partial(fused_transformer_kernel, nlayers=L, nhead=nhead,
                          batch=B, seq=S, emb_scale=math.sqrt(E)),
        out_shape=jax.ShapeDtypeStruct((S, B * C), jnp.float32),
        in_specs=[pl.BlockSpec(memory_space=pltpu.MemorySpace.VMEM)] * len(args),
        out_specs=pl.BlockSpec(memory_space=pltpu.MemorySpace.VMEM),
    )(*args)

    # (S, B*C) and (S, B, C) share the same row-major layout — free reshape.
    return out_flat.reshape(S, B, C)


# ----------------------------------- main -------------------------------------

if __name__ == "__main__":
    ntoken, ninp, nhead, nhid, nlayers, n_classes = 50, 32, 4, 64, 2, 10
    S, B = 8, 2

    key = jax.random.PRNGKey(0)
    pkey, dkey = jax.random.split(key)

    params = init_params(pkey, ntoken, ninp, nhead, nhid, nlayers, n_classes)
    src = jax.random.randint(dkey, (S, B), 0, ntoken, dtype=jnp.int32)
    pe = make_pe(5000, ninp)

    out = forward(params, src, pe, nhead=nhead)
    out = jax.block_until_ready(out)

    assert out.shape == (S, B, n_classes), out.shape
    assert bool(jnp.all(jnp.isfinite(out)))
    # nn.Softmax(dim=1) → probabilities sum to 1 over the batch axis
    assert bool(jnp.allclose(out.sum(axis=1), 1.0, atol=1e-5))
    print("KERNEL_OK")
</pallas_src>

<mosaic_0001>
module attributes {stable_mosaic.version = 11 : i64} {
  func.func @fused_transformer_kernel(%arg0: memref<16x32xf32, #tpu.memory_space<vmem>>, %arg1: memref<16x32xf32, #tpu.memory_space<vmem>>, %arg2: memref<8x32x8xbf16, #tpu.memory_space<vmem>>, %arg3: memref<8x1x8xf32, #tpu.memory_space<vmem>>, %arg4: memref<8x32x8xbf16, #tpu.memory_space<vmem>>, %arg5: memref<8x1x8xf32, #tpu.memory_space<vmem>>, %arg6: memref<8x32x8xbf16, #tpu.memory_space<vmem>>, %arg7: memref<8x1x8xf32, #tpu.memory_space<vmem>>, %arg8: memref<8x8x32xbf16, #tpu.memory_space<vmem>>, %arg9: memref<2x1x32xf32, #tpu.memory_space<vmem>>, %arg10: memref<2x32x64xbf16, #tpu.memory_space<vmem>>, %arg11: memref<2x1x64xf32, #tpu.memory_space<vmem>>, %arg12: memref<2x64x32xbf16, #tpu.memory_space<vmem>>, %arg13: memref<2x1x32xf32, #tpu.memory_space<vmem>>, %arg14: memref<2x1x32xf32, #tpu.memory_space<vmem>>, %arg15: memref<2x1x32xf32, #tpu.memory_space<vmem>>, %arg16: memref<2x1x32xf32, #tpu.memory_space<vmem>>, %arg17: memref<2x1x32xf32, #tpu.memory_space<vmem>>, %arg18: memref<32x10xbf16, #tpu.memory_space<vmem>>, %arg19: memref<1x10xf32, #tpu.memory_space<vmem>>, %arg20: memref<8x20xf32, #tpu.memory_space<vmem>>) attributes {dimension_semantics = [], scalar_prefetch = 0 : i64, scratch_operands = 0 : i64, tpu.core_type = #tpu.core_type<tc>} {
    %c0 = arith.constant 0 : index
    %c0_0 = arith.constant 0 : index
    %0 = vector.load %arg0[%c0, %c0_0] : memref<16x32xf32, #tpu.memory_space<vmem>>, vector<16x32xf32>
    %cst = arith.constant 5.65685415 : f32
    %1 = vector.broadcast %cst : f32 to vector<16x32xf32>
    %2 = arith.mulf %0, %1 : vector<16x32xf32>
    %c0_1 = arith.constant 0 : index
    %c0_2 = arith.constant 0 : index
    %3 = vector.load %arg1[%c0_1, %c0_2] : memref<16x32xf32, #tpu.memory_space<vmem>>, vector<16x32xf32>
    %4 = arith.addf %2, %3 : vector<16x32xf32>
    %5 = tpu.iota {dimensions = array<i32: 0>} : vector<8x8xi32>
    %6 = tpu.iota {dimensions = array<i32: 1>} : vector<8x8xi32>
    %7 = arith.cmpi sle, %6, %5 : vector<8x8xi32>
    %c0_3 = arith.constant 0 : index
    %c0_4 = arith.constant 0 : index
    %c0_5 = arith.constant 0 : index
    %8 = vector.load %arg2[%c0_3, %c0_4, %c0_5] : memref<8x32x8xbf16, #tpu.memory_space<vmem>>, vector<1x32x8xbf16>
    %9 = vector.shape_cast %8 : vector<1x32x8xbf16> to vector<32x8xbf16>
    %10 = arith.truncf %4 : vector<16x32xf32> to vector<16x32xbf16>
    %cst_6 = arith.constant dense<0.000000e+00> : vector<16x8xf32>
    %11 = tpu.matmul %10, %9, %cst_6 {dimension_numbers = #tpu.dot_dimension_numbers<[1], [0], [0], [1], [0, 0, 1, 1], [], []>} : vector<16x32xbf16>, vector<32x8xbf16>, vector<16x8xf32> -> vector<16x8xf32>
    %c0_7 = arith.constant 0 : index
    %c0_8 = arith.constant 0 : index
    %c0_9 = arith.constant 0 : index
    %12 = vector.load %arg3[%c0_7, %c0_8, %c0_9] : memref<8x1x8xf32, #tpu.memory_space<vmem>>, vector<1x1x8xf32>
    %13 = vector.shape_cast %12 : vector<1x1x8xf32> to vector<1x8xf32>
    %14 = vector.broadcast %13 : vector<1x8xf32> to vector<16x8xf32>
    %15 = arith.addf %11, %14 : vector<16x8xf32>
    %c0_10 = arith.constant 0 : index
    %c0_11 = arith.constant 0 : index
    %c0_12 = arith.constant 0 : index
    %16 = vector.load %arg4[%c0_10, %c0_11, %c0_12] : memref<8x32x8xbf16, #tpu.memory_space<vmem>>, vector<1x32x8xbf16>
    %17 = vector.shape_cast %16 : vector<1x32x8xbf16> to vector<32x8xbf16>
    %18 = arith.truncf %4 : vector<16x32xf32> to vector<16x32xbf16>
    %cst_13 = arith.constant dense<0.000000e+00> : vector<16x8xf32>
    %19 = tpu.matmul %18, %17, %cst_13 {dimension_numbers = #tpu.dot_dimension_numbers<[1], [0], [0], [1], [0, 0, 1, 1], [], []>} : vector<16x32xbf16>, vector<32x8xbf16>, vector<16x8xf32> -> vector<16x8xf32>
    %c0_14 = arith.constant 0 : index
    %c0_15 = arith.constant 0 : index
    %c0_16 = arith.constant 0 : index
    %20 = vector.load %arg5[%c0_14, %c0_15, %c0_16] : memref<8x1x8xf32, #tpu.memory_space<vmem>>, vector<1x1x8xf32>
    %21 = vector.shape_cast %20 : vector<1x1x8xf32> to vector<1x8xf32>
    %22 = vector.broadcast %21 : vector<1x8xf32> to vector<16x8xf32>
    %23 = arith.addf %19, %22 : vector<16x8xf32>
    %c0_17 = arith.constant 0 : index
    %c0_18 = arith.constant 0 : index
    %c0_19 = arith.constant 0 : index
    %24 = vector.load %arg6[%c0_17, %c0_18, %c0_19] : memref<8x32x8xbf16, #tpu.memory_space<vmem>>, vector<1x32x8xbf16>
    %25 = vector.shape_cast %24 : vector<1x32x8xbf16> to vector<32x8xbf16>
    %26 = arith.truncf %4 : vector<16x32xf32> to vector<16x32xbf16>
    %cst_20 = arith.constant dense<0.000000e+00> : vector<16x8xf32>
    %27 = tpu.matmul %26, %25, %cst_20 {dimension_numbers = #tpu.dot_dimension_numbers<[1], [0], [0], [1], [0, 0, 1, 1], [], []>} : vector<16x32xbf16>, vector<32x8xbf16>, vector<16x8xf32> -> vector<16x8xf32>
    %c0_21 = arith.constant 0 : index
    %c0_22 = arith.constant 0 : index
    %c0_23 = arith.constant 0 : index
    %28 = vector.load %arg7[%c0_21, %c0_22, %c0_23] : memref<8x1x8xf32, #tpu.memory_space<vmem>>, vector<1x1x8xf32>
    %29 = vector.shape_cast %28 : vector<1x1x8xf32> to vector<1x8xf32>
    %30 = vector.broadcast %29 : vector<1x8xf32> to vector<16x8xf32>
    %31 = arith.addf %27, %30 : vector<16x8xf32>
    %c1 = arith.constant 1 : index
    %c0_24 = arith.constant 0 : index
    %c0_25 = arith.constant 0 : index
    %32 = vector.load %arg2[%c1, %c0_24, %c0_25] : memref<8x32x8xbf16, #tpu.memory_space<vmem>>, vector<1x32x8xbf16>
    %33 = vector.shape_cast %32 : vector<1x32x8xbf16> to vector<32x8xbf16>
    %34 = arith.truncf %4 : vector<16x32xf32> to vector<16x32xbf16>
    %cst_26 = arith.constant dense<0.000000e+00> : vector<16x8xf32>
    %35 = tpu.matmul %34, %33, %cst_26 {dimension_numbers = #tpu.dot_dimension_numbers<[1], [0], [0], [1], [0, 0, 1, 1], [], []>} : vector<16x32xbf16>, vector<32x8xbf16>, vector<16x8xf32> -> vector<16x8xf32>
    %c1_27 = arith.constant 1 : index
    %c0_28 = arith.constant 0 : index
    %c0_29 = arith.constant 0 : index
    %36 = vector.load %arg3[%c1_27, %c0_28, %c0_29] : memref<8x1x8xf32, #tpu.memory_space<vmem>>, vector<1x1x8xf32>
    %37 = vector.shape_cast %36 : vector<1x1x8xf32> to vector<1x8xf32>
    %38 = vector.broadcast %37 : vector<1x8xf32> to vector<16x8xf32>
    %39 = arith.addf %35, %38 : vector<16x8xf32>
    %c1_30 = arith.constant 1 : index
    %c0_31 = arith.constant 0 : index
    %c0_32 = arith.constant 0 : index
    %40 = vector.load %arg4[%c1_30, %c0_31, %c0_32] : memref<8x32x8xbf16, #tpu.memory_space<vmem>>, vector<1x32x8xbf16>
    %41 = vector.shape_cast %40 : vector<1x32x8xbf16> to vector<32x8xbf16>
    %42 = arith.truncf %4 : vector<16x32xf32> to vector<16x32xbf16>
    %cst_33 = arith.constant dense<0.000000e+00> : vector<16x8xf32>
    %43 = tpu.matmul %42, %41, %cst_33 {dimension_numbers = #tpu.dot_dimension_numbers<[1], [0], [0], [1], [0, 0, 1, 1], [], []>} : vector<16x32xbf16>, vector<32x8xbf16>, vector<16x8xf32> -> vector<16x8xf32>
    %c1_34 = arith.constant 1 : index
    %c0_35 = arith.constant 0 : index
    %c0_36 = arith.constant 0 : index
    %44 = vector.load %arg5[%c1_34, %c0_35, %c0_36] : memref<8x1x8xf32, #tpu.memory_space<vmem>>, vector<1x1x8xf32>
    %45 = vector.shape_cast %44 : vector<1x1x8xf32> to vector<1x8xf32>
    %46 = vector.broadcast %45 : vector<1x8xf32> to vector<16x8xf32>
    %47 = arith.addf %43, %46 : vector<16x8xf32>
    %c1_37 = arith.constant 1 : index
    %c0_38 = arith.constant 0 : index
    %c0_39 = arith.constant 0 : index
    %48 = vector.load %arg6[%c1_37, %c0_38, %c0_39] : memref<8x32x8xbf16, #tpu.memory_space<vmem>>, vector<1x32x8xbf16>
    %49 = vector.shape_cast %48 : vector<1x32x8xbf16> to vector<32x8xbf16>
    %50 = arith.truncf %4 : vector<16x32xf32> to vector<16x32xbf16>
    %cst_40 = arith.constant dense<0.000000e+00> : vector<16x8xf32>
    %51 = tpu.matmul %50, %49, %cst_40 {dimension_numbers = #tpu.dot_dimension_numbers<[1], [0], [0], [1], [0, 0, 1, 1], [], []>} : vector<16x32xbf16>, vector<32x8xbf16>, vector<16x8xf32> -> vector<16x8xf32>
    %c1_41 = arith.constant 1 : index
    %c0_42 = arith.constant 0 : index
    %c0_43 = arith.constant 0 : index
    %52 = vector.load %arg7[%c1_41, %c0_42, %c0_43] : memref<8x1x8xf32, #tpu.memory_space<vmem>>, vector<1x1x8xf32>
    %53 = vector.shape_cast %52 : vector<1x1x8xf32> to vector<1x8xf32>
    %54 = vector.broadcast %53 : vector<1x8xf32> to vector<16x8xf32>
    %55 = arith.addf %51, %54 : vector<16x8xf32>
    %c2 = arith.constant 2 : index
    %c0_44 = arith.constant 0 : index
    %c0_45 = arith.constant 0 : index
    %56 = vector.load %arg2[%c2, %c0_44, %c0_45] : memref<8x32x8xbf16, #tpu.memory_space<vmem>>, vector<1x32x8xbf16>
    %57 = vector.shape_cast %56 : vector<1x32x8xbf16> to vector<32x8xbf16>
    %58 = arith.truncf %4 : vector<16x32xf32> to vector<16x32xbf16>
    %cst_46 = arith.constant dense<0.000000e+00> : vector<16x8xf32>
    %59 = tpu.matmul %58, %57, %cst_46 {dimension_numbers = #tpu.dot_dimension_numbers<[1], [0], [0], [1], [0, 0, 1, 1], [], []>} : vector<16x32xbf16>, vector<32x8xbf16>, vector<16x8xf32> -> vector<16x8xf32>
    %c2_47 = arith.constant 2 : index
    %c0_48 = arith.constant 0 : index
    %c0_49 = arith.constant 0 : index
    %60 = vector.load %arg3[%c2_47, %c0_48, %c0_49] : memref<8x1x8xf32, #tpu.memory_space<vmem>>, vector<1x1x8xf32>
    %61 = vector.shape_cast %60 : vector<1x1x8xf32> to vector<1x8xf32>
    %62 = vector.broadcast %61 : vector<1x8xf32> to vector<16x8xf32>
    %63 = arith.addf %59, %62 : vector<16x8xf32>
    %c2_50 = arith.constant 2 : index
    %c0_51 = arith.constant 0 : index
    %c0_52 = arith.constant 0 : index
    %64 = vector.load %arg4[%c2_50, %c0_51, %c0_52] : memref<8x32x8xbf16, #tpu.memory_space<vmem>>, vector<1x32x8xbf16>
    %65 = vector.shape_cast %64 : vector<1x32x8xbf16> to vector<32x8xbf16>
    %66 = arith.truncf %4 : vector<16x32xf32> to vector<16x32xbf16>
    %cst_53 = arith.constant dense<0.000000e+00> : vector<16x8xf32>
    %67 = tpu.matmul %66, %65, %cst_53 {dimension_numbers = #tpu.dot_dimension_numbers<[1], [0], [0], [1], [0, 0, 1, 1], [], []>} : vector<16x32xbf16>, vector<32x8xbf16>, vector<16x8xf32> -> vector<16x8xf32>
    %c2_54 = arith.constant 2 : index
    %c0_55 = arith.constant 0 : index
    %c0_56 = arith.constant 0 : index
    %68 = vector.load %arg5[%c2_54, %c0_55, %c0_56] : memref<8x1x8xf32, #tpu.memory_space<vmem>>, vector<1x1x8xf32>
    %69 = vector.shape_cast %68 : vector<1x1x8xf32> to vector<1x8xf32>
    %70 = vector.broadcast %69 : vector<1x8xf32> to vector<16x8xf32>
    %71 = arith.addf %67, %70 : vector<16x8xf32>
    %c2_57 = arith.constant 2 : index
    %c0_58 = arith.constant 0 : index
    %c0_59 = arith.constant 0 : index
    %72 = vector.load %arg6[%c2_57, %c0_58, %c0_59] : memref<8x32x8xbf16, #tpu.memory_space<vmem>>, vector<1x32x8xbf16>
    %73 = vector.shape_cast %72 : vector<1x32x8xbf16> to vector<32x8xbf16>
    %74 = arith.truncf %4 : vector<16x32xf32> to vector<16x32xbf16>
    %cst_60 = arith.constant dense<0.000000e+00> : vector<16x8xf32>
    %75 = tpu.matmul %74, %73, %cst_60 {dimension_numbers = #tpu.dot_dimension_numbers<[1], [0], [0], [1], [0, 0, 1, 1], [], []>} : vector<16x32xbf16>, vector<32x8xbf16>, vector<16x8xf32> -> vector<16x8xf32>
    %c2_61 = arith.constant 2 : index
    %c0_62 = arith.constant 0 : index
    %c0_63 = arith.constant 0 : index
    %76 = vector.load %arg7[%c2_61, %c0_62, %c0_63] : memref<8x1x8xf32, #tpu.memory_space<vmem>>, vector<1x1x8xf32>
    %77 = vector.shape_cast %76 : vector<1x1x8xf32> to vector<1x8xf32>
    %78 = vector.broadcast %77 : vector<1x8xf32> to vector<16x8xf32>
    %79 = arith.addf %75, %78 : vector<16x8xf32>
    %c3 = arith.constant 3 : index
    %c0_64 = arith.constant 0 : index
    %c0_65 = arith.constant 0 : index
    %80 = vector.load %arg2[%c3, %c0_64, %c0_65] : memref<8x32x8xbf16, #tpu.memory_space<vmem>>, vector<1x32x8xbf16>
    %81 = vector.shape_cast %80 : vector<1x32x8xbf16> to vector<32x8xbf16>
    %82 = arith.truncf %4 : vector<16x32xf32> to vector<16x32xbf16>
    %cst_66 = arith.constant dense<0.000000e+00> : vector<16x8xf32>
    %83 = tpu.matmul %82, %81, %cst_66 {dimension_numbers = #tpu.dot_dimension_numbers<[1], [0], [0], [1], [0, 0, 1, 1], [], []>} : vector<16x32xbf16>, vector<32x8xbf16>, vector<16x8xf32> -> vector<16x8xf32>
    %c3_67 = arith.constant 3 : index
    %c0_68 = arith.constant 0 : index
    %c0_69 = arith.constant 0 : index
    %84 = vector.load %arg3[%c3_67, %c0_68, %c0_69] : memref<8x1x8xf32, #tpu.memory_space<vmem>>, vector<1x1x8xf32>
    %85 = vector.shape_cast %84 : vector<1x1x8xf32> to vector<1x8xf32>
    %86 = vector.broadcast %85 : vector<1x8xf32> to vector<16x8xf32>
    %87 = arith.addf %83, %86 : vector<16x8xf32>
    %c3_70 = arith.constant 3 : index
    %c0_71 = arith.constant 0 : index
    %c0_72 = arith.constant 0 : index
    %88 = vector.load %arg4[%c3_70, %c0_71, %c0_72] : memref<8x32x8xbf16, #tpu.memory_space<vmem>>, vector<1x32x8xbf16>
    %89 = vector.shape_cast %88 : vector<1x32x8xbf16> to vector<32x8xbf16>
    %90 = arith.truncf %4 : vector<16x32xf32> to vector<16x32xbf16>
    %cst_73 = arith.constant dense<0.000000e+00> : vector<16x8xf32>
    %91 = tpu.matmul %90, %89, %cst_73 {dimension_numbers = #tpu.dot_dimension_numbers<[1], [0], [0], [1], [0, 0, 1, 1], [], []>} : vector<16x32xbf16>, vector<32x8xbf16>, vector<16x8xf32> -> vector<16x8xf32>
    %c3_74 = arith.constant 3 : index
    %c0_75 = arith.constant 0 : index
    %c0_76 = arith.constant 0 : index
    %92 = vector.load %arg5[%c3_74, %c0_75, %c0_76] : memref<8x1x8xf32, #tpu.memory_space<vmem>>, vector<1x1x8xf32>
    %93 = vector.shape_cast %92 : vector<1x1x8xf32> to vector<1x8xf32>
    %94 = vector.broadcast %93 : vector<1x8xf32> to vector<16x8xf32>
    %95 = arith.addf %91, %94 : vector<16x8xf32>
    %c3_77 = arith.constant 3 : index
    %c0_78 = arith.constant 0 : index
    %c0_79 = arith.constant 0 : index
    %96 = vector.load %arg6[%c3_77, %c0_78, %c0_79] : memref<8x32x8xbf16, #tpu.memory_space<vmem>>, vector<1x32x8xbf16>
    %97 = vector.shape_cast %96 : vector<1x32x8xbf16> to vector<32x8xbf16>
    %98 = arith.truncf %4 : vector<16x32xf32> to vector<16x32xbf16>
    %cst_80 = arith.constant dense<0.000000e+00> : vector<16x8xf32>
    %99 = tpu.matmul %98, %97, %cst_80 {dimension_numbers = #tpu.dot_dimension_numbers<[1], [0], [0], [1], [0, 0, 1, 1], [], []>} : vector<16x32xbf16>, vector<32x8xbf16>, vector<16x8xf32> -> vector<16x8xf32>
    %c3_81 = arith.constant 3 : index
    %c0_82 = arith.constant 0 : index
    %c0_83 = arith.constant 0 : index
    %100 = vector.load %arg7[%c3_81, %c0_82, %c0_83] : memref<8x1x8xf32, #tpu.memory_space<vmem>>, vector<1x1x8xf32>
    %101 = vector.shape_cast %100 : vector<1x1x8xf32> to vector<1x8xf32>
    %102 = vector.broadcast %101 : vector<1x8xf32> to vector<16x8xf32>
    %103 = arith.addf %99, %102 : vector<16x8xf32>
    %104 = vector.extract_strided_slice %15 {offsets = [0, 0], sizes = [8, 8], strides = [1, 1]} : vector<16x8xf32> to vector<8x8xf32>
    %105 = vector.extract_strided_slice %23 {offsets = [0, 0], sizes = [8, 8], strides = [1, 1]} : vector<16x8xf32> to vector<8x8xf32>
    %106 = arith.truncf %104 : vector<8x8xf32> to vector<8x8xbf16>
    %107 = arith.truncf %105 : vector<8x8xf32> to vector<8x8xbf16>
    %cst_84 = arith.constant dense<0.000000e+00> : vector<8x8xf32>
    %108 = tpu.matmul %106, %107, %cst_84 {dimension_numbers = #tpu.dot_dimension_numbers<[1], [1], [0], [0], [0, 0, 1, 0], [], []>} : vector<8x8xbf16>, vector<8x8xbf16>, vector<8x8xf32> -> vector<8x8xf32>
    %cst_85 = arith.constant 0.353553385 : f32
    %109 = vector.broadcast %cst_85 : f32 to vector<8x8xf32>
    %110 = arith.mulf %108, %109 : vector<8x8xf32>
    %cst_86 = arith.constant -1.000000e+09 : f32
    %111 = vector.broadcast %cst_86 : f32 to vector<8x8xf32>
    %112 = arith.select %7, %110, %111 : vector<8x8xi1>, vector<8x8xf32>
    %cst_87 = arith.constant dense<0xFF800000> : vector<8xf32>
    %113 = vector.multi_reduction <maximumf>, %112, %cst_87 [1] : vector<8x8xf32> to vector<8xf32>
    %114 = vector.shape_cast %113 : vector<8xf32> to vector<8x1xf32>
    %115 = vector.broadcast %114 : vector<8x1xf32> to vector<8x8xf32>
    %116 = arith.subf %112, %115 : vector<8x8xf32>
    %117 = math.exp %116 : vector<8x8xf32>
    %cst_88 = arith.constant dense<0.000000e+00> : vector<8xf32>
    %118 = vector.multi_reduction <add>, %117, %cst_88 [1] : vector<8x8xf32> to vector<8xf32>
    %119 = vector.shape_cast %118 : vector<8xf32> to vector<8x1xf32>
    %120 = vector.broadcast %119 : vector<8x1xf32> to vector<8x8xf32>
    %121 = arith.divf %117, %120 : vector<8x8xf32>
    %122 = vector.extract_strided_slice %31 {offsets = [0, 0], sizes = [8, 8], strides = [1, 1]} : vector<16x8xf32> to vector<8x8xf32>
    %123 = arith.truncf %121 : vector<8x8xf32> to vector<8x8xbf16>
    %124 = arith.truncf %122 : vector<8x8xf32> to vector<8x8xbf16>
    %cst_89 = arith.constant dense<0.000000e+00> : vector<8x8xf32>
    %125 = tpu.matmul %123, %124, %cst_89 {dimension_numbers = #tpu.dot_dimension_numbers<[1], [0], [0], [1], [0, 0, 1, 1], [], []>} : vector<8x8xbf16>, vector<8x8xbf16>, vector<8x8xf32> -> vector<8x8xf32>
    %c0_90 = arith.constant 0 : index
    %c0_91 = arith.constant 0 : index
    %c0_92 = arith.constant 0 : index
    %126 = vector.load %arg8[%c0_90, %c0_91, %c0_92] : memref<8x8x32xbf16, #tpu.memory_space<vmem>>, vector<1x8x32xbf16>
    %127 = vector.shape_cast %126 : vector<1x8x32xbf16> to vector<8x32xbf16>
    %128 = arith.truncf %125 : vector<8x8xf32> to vector<8x8xbf16>
    %cst_93 = arith.constant dense<0.000000e+00> : vector<8x32xf32>
    %129 = tpu.matmul %128, %127, %cst_93 {dimension_numbers = #tpu.dot_dimension_numbers<[1], [0], [0], [1], [0, 0, 1, 1], [], []>} : vector<8x8xbf16>, vector<8x32xbf16>, vector<8x32xf32> -> vector<8x32xf32>
    %130 = vector.extract_strided_slice %39 {offsets = [0, 0], sizes = [8, 8], strides = [1, 1]} : vector<16x8xf32> to vector<8x8xf32>
    %131 = vector.extract_strided_slice %47 {offsets = [0, 0], sizes = [8, 8], strides = [1, 1]} : vector<16x8xf32> to vector<8x8xf32>
    %132 = arith.truncf %130 : vector<8x8xf32> to vector<8x8xbf16>
    %133 = arith.truncf %131 : vector<8x8xf32> to vector<8x8xbf16>
    %cst_94 = arith.constant dense<0.000000e+00> : vector<8x8xf32>
    %134 = tpu.matmul %132, %133, %cst_94 {dimension_numbers = #tpu.dot_dimension_numbers<[1], [1], [0], [0], [0, 0, 1, 0], [], []>} : vector<8x8xbf16>, vector<8x8xbf16>, vector<8x8xf32> -> vector<8x8xf32>
    %cst_95 = arith.constant 0.353553385 : f32
    %135 = vector.broadcast %cst_95 : f32 to vector<8x8xf32>
    %136 = arith.mulf %134, %135 : vector<8x8xf32>
    %cst_96 = arith.constant -1.000000e+09 : f32
    %137 = vector.broadcast %cst_96 : f32 to vector<8x8xf32>
    %138 = arith.select %7, %136, %137 : vector<8x8xi1>, vector<8x8xf32>
    %cst_97 = arith.constant dense<0xFF800000> : vector<8xf32>
    %139 = vector.multi_reduction <maximumf>, %138, %cst_97 [1] : vector<8x8xf32> to vector<8xf32>
    %140 = vector.shape_cast %139 : vector<8xf32> to vector<8x1xf32>
    %141 = vector.broadcast %140 : vector<8x1xf32> to vector<8x8xf32>
    %142 = arith.subf %138, %141 : vector<8x8xf32>
    %143 = math.exp %142 : vector<8x8xf32>
    %cst_98 = arith.constant dense<0.000000e+00> : vector<8xf32>
    %144 = vector.multi_reduction <add>, %143, %cst_98 [1] : vector<8x8xf32> to vector<8xf32>
    %145 = vector.shape_cast %144 : vector<8xf32> to vector<8x1xf32>
    %146 = vector.broadcast %145 : vector<8x1xf32> to vector<8x8xf32>
    %147 = arith.divf %143, %146 : vector<8x8xf32>
    %148 = vector.extract_strided_slice %55 {offsets = [0, 0], sizes = [8, 8], strides = [1, 1]} : vector<16x8xf32> to vector<8x8xf32>
    %149 = arith.truncf %147 : vector<8x8xf32> to vector<8x8xbf16>
    %150 = arith.truncf %148 : vector<8x8xf32> to vector<8x8xbf16>
    %cst_99 = arith.constant dense<0.000000e+00> : vector<8x8xf32>
    %151 = tpu.matmul %149, %150, %cst_99 {dimension_numbers = #tpu.dot_dimension_numbers<[1], [0], [0], [1], [0, 0, 1, 1], [], []>} : vector<8x8xbf16>, vector<8x8xbf16>, vector<8x8xf32> -> vector<8x8xf32>
    %c1_100 = arith.constant 1 : index
    %c0_101 = arith.constant 0 : index
    %c0_102 = arith.constant 0 : index
    %152 = vector.load %arg8[%c1_100, %c0_101, %c0_102] : memref<8x8x32xbf16, #tpu.memory_space<vmem>>, vector<1x8x32xbf16>
    %153 = vector.shape_cast %152 : vector<1x8x32xbf16> to vector<8x32xbf16>
    %154 = arith.truncf %151 : vector<8x8xf32> to vector<8x8xbf16>
    %cst_103 = arith.constant dense<0.000000e+00> : vector<8x32xf32>
    %155 = tpu.matmul %154, %153, %cst_103 {dimension_numbers = #tpu.dot_dimension_numbers<[1], [0], [0], [1], [0, 0, 1, 1], [], []>} : vector<8x8xbf16>, vector<8x32xbf16>, vector<8x32xf32> -> vector<8x32xf32>
    %156 = arith.addf %129, %155 : vector<8x32xf32>
    %157 = vector.extract_strided_slice %63 {offsets = [0, 0], sizes = [8, 8], strides = [1, 1]} : vector<16x8xf32> to vector<8x8xf32>
    %158 = vector.extract_strided_slice %71 {offsets = [0, 0], sizes = [8, 8], strides = [1, 1]} : vector<16x8xf32> to vector<8x8xf32>
    %159 = arith.truncf %157 : vector<8x8xf32> to vector<8x8xbf16>
    %160 = arith.truncf %158 : vector<8x8xf32> to vector<8x8xbf16>
    %cst_104 = arith.constant dense<0.000000e+00> : vector<8x8xf32>
    %161 = tpu.matmul %159, %160, %cst_104 {dimension_numbers = #tpu.dot_dimension_numbers<[1], [1], [0], [0], [0, 0, 1, 0], [], []>} : vector<8x8xbf16>, vector<8x8xbf16>, vector<8x8xf32> -> vector<8x8xf32>
    %cst_105 = arith.constant 0.353553385 : f32
    %162 = vector.broadcast %cst_105 : f32 to vector<8x8xf32>
    %163 = arith.mulf %161, %162 : vector<8x8xf32>
    %cst_106 = arith.constant -1.000000e+09 : f32
    %164 = vector.broadcast %cst_106 : f32 to vector<8x8xf32>
    %165 = arith.select %7, %163, %164 : vector<8x8xi1>, vector<8x8xf32>
    %cst_107 = arith.constant dense<0xFF800000> : vector<8xf32>
    %166 = vector.multi_reduction <maximumf>, %165, %cst_107 [1] : vector<8x8xf32> to vector<8xf32>
    %167 = vector.shape_cast %166 : vector<8xf32> to vector<8x1xf32>
    %168 = vector.broadcast %167 : vector<8x1xf32> to vector<8x8xf32>
    %169 = arith.subf %165, %168 : vector<8x8xf32>
    %170 = math.exp %169 : vector<8x8xf32>
    %cst_108 = arith.constant dense<0.000000e+00> : vector<8xf32>
    %171 = vector.multi_reduction <add>, %170, %cst_108 [1] : vector<8x8xf32> to vector<8xf32>
    %172 = vector.shape_cast %171 : vector<8xf32> to vector<8x1xf32>
    %173 = vector.broadcast %172 : vector<8x1xf32> to vector<8x8xf32>
    %174 = arith.divf %170, %173 : vector<8x8xf32>
    %175 = vector.extract_strided_slice %79 {offsets = [0, 0], sizes = [8, 8], strides = [1, 1]} : vector<16x8xf32> to vector<8x8xf32>
    %176 = arith.truncf %174 : vector<8x8xf32> to vector<8x8xbf16>
    %177 = arith.truncf %175 : vector<8x8xf32> to vector<8x8xbf16>
    %cst_109 = arith.constant dense<0.000000e+00> : vector<8x8xf32>
    %178 = tpu.matmul %176, %177, %cst_109 {dimension_numbers = #tpu.dot_dimension_numbers<[1], [0], [0], [1], [0, 0, 1, 1], [], []>} : vector<8x8xbf16>, vector<8x8xbf16>, vector<8x8xf32> -> vector<8x8xf32>
    %c2_110 = arith.constant 2 : index
    %c0_111 = arith.constant 0 : index
    %c0_112 = arith.constant 0 : index
    %179 = vector.load %arg8[%c2_110, %c0_111, %c0_112] : memref<8x8x32xbf16, #tpu.memory_space<vmem>>, vector<1x8x32xbf16>
    %180 = vector.shape_cast %179 : vector<1x8x32xbf16> to vector<8x32xbf16>
    %181 = arith.truncf %178 : vector<8x8xf32> to vector<8x8xbf16>
    %cst_113 = arith.constant dense<0.000000e+00> : vector<8x32xf32>
    %182 = tpu.matmul %181, %180, %cst_113 {dimension_numbers = #tpu.dot_dimension_numbers<[1], [0], [0], [1], [0, 0, 1, 1], [], []>} : vector<8x8xbf16>, vector<8x32xbf16>, vector<8x32xf32> -> vector<8x32xf32>
    %183 = arith.addf %156, %182 : vector<8x32xf32>
    %184 = vector.extract_strided_slice %87 {offsets = [0, 0], sizes = [8, 8], strides = [1, 1]} : vector<16x8xf32> to vector<8x8xf32>
    %185 = vector.extract_strided_slice %95 {offsets = [0, 0], sizes = [8, 8], strides = [1, 1]} : vector<16x8xf32> to vector<8x8xf32>
    %186 = arith.truncf %184 : vector<8x8xf32> to vector<8x8xbf16>
    %187 = arith.truncf %185 : vector<8x8xf32> to vector<8x8xbf16>
    %cst_114 = arith.constant dense<0.000000e+00> : vector<8x8xf32>
    %188 = tpu.matmul %186, %187, %cst_114 {dimension_numbers = #tpu.dot_dimension_numbers<[1], [1], [0], [0], [0, 0, 1, 0], [], []>} : vector<8x8xbf16>, vector<8x8xbf16>, vector<8x8xf32> -> vector<8x8xf32>
    %cst_115 = arith.constant 0.353553385 : f32
    %189 = vector.broadcast %cst_115 : f32 to vector<8x8xf32>
    %190 = arith.mulf %188, %189 : vector<8x8xf32>
    %cst_116 = arith.constant -1.000000e+09 : f32
    %191 = vector.broadcast %cst_116 : f32 to vector<8x8xf32>
    %192 = arith.select %7, %190, %191 : vector<8x8xi1>, vector<8x8xf32>
    %cst_117 = arith.constant dense<0xFF800000> : vector<8xf32>
    %193 = vector.multi_reduction <maximumf>, %192, %cst_117 [1] : vector<8x8xf32> to vector<8xf32>
    %194 = vector.shape_cast %193 : vector<8xf32> to vector<8x1xf32>
    %195 = vector.broadcast %194 : vector<8x1xf32> to vector<8x8xf32>
    %196 = arith.subf %192, %195 : vector<8x8xf32>
    %197 = math.exp %196 : vector<8x8xf32>
    %cst_118 = arith.constant dense<0.000000e+00> : vector<8xf32>
    %198 = vector.multi_reduction <add>, %197, %cst_118 [1] : vector<8x8xf32> to vector<8xf32>
    %199 = vector.shape_cast %198 : vector<8xf32> to vector<8x1xf32>
    %200 = vector.broadcast %199 : vector<8x1xf32> to vector<8x8xf32>
    %201 = arith.divf %197, %200 : vector<8x8xf32>
    %202 = vector.extract_strided_slice %103 {offsets = [0, 0], sizes = [8, 8], strides = [1, 1]} : vector<16x8xf32> to vector<8x8xf32>
    %203 = arith.truncf %201 : vector<8x8xf32> to vector<8x8xbf16>
    %204 = arith.truncf %202 : vector<8x8xf32> to vector<8x8xbf16>
    %cst_119 = arith.constant dense<0.000000e+00> : vector<8x8xf32>
    %205 = tpu.matmul %203, %204, %cst_119 {dimension_numbers = #tpu.dot_dimension_numbers<[1], [0], [0], [1], [0, 0, 1, 1], [], []>} : vector<8x8xbf16>, vector<8x8xbf16>, vector<8x8xf32> -> vector<8x8xf32>
    %c3_120 = arith.constant 3 : index
    %c0_121 = arith.constant 0 : index
    %c0_122 = arith.constant 0 : index
    %206 = vector.load %arg8[%c3_120, %c0_121, %c0_122] : memref<8x8x32xbf16, #tpu.memory_space<vmem>>, vector<1x8x32xbf16>
    %207 = vector.shape_cast %206 : vector<1x8x32xbf16> to vector<8x32xbf16>
    %208 = arith.truncf %205 : vector<8x8xf32> to vector<8x8xbf16>
    %cst_123 = arith.constant dense<0.000000e+00> : vector<8x32xf32>
    %209 = tpu.matmul %208, %207, %cst_123 {dimension_numbers = #tpu.dot_dimension_numbers<[1], [0], [0], [1], [0, 0, 1, 1], [], []>} : vector<8x8xbf16>, vector<8x32xbf16>, vector<8x32xf32> -> vector<8x32xf32>
    %210 = arith.addf %183, %209 : vector<8x32xf32>
    %c0_124 = arith.constant 0 : index
    %c0_125 = arith.constant 0 : index
    %c0_126 = arith.constant 0 : index
    %211 = vector.load %arg9[%c0_124, %c0_125, %c0_126] : memref<2x1x32xf32, #tpu.memory_space<vmem>>, vector<1x1x32xf32>
    %212 = vector.shape_cast %211 : vector<1x1x32xf32> to vector<1x32xf32>
    %213 = vector.broadcast %212 : vector<1x32xf32> to vector<8x32xf32>
    %214 = arith.addf %210, %213 : vector<8x32xf32>
    %215 = vector.extract_strided_slice %15 {offsets = [8, 0], sizes = [8, 8], strides = [1, 1]} : vector<16x8xf32> to vector<8x8xf32>
    %216 = vector.extract_strided_slice %23 {offsets = [8, 0], sizes = [8, 8], strides = [1, 1]} : vector<16x8xf32> to vector<8x8xf32>
    %217 = arith.truncf %215 : vector<8x8xf32> to vector<8x8xbf16>
    %218 = arith.truncf %216 : vector<8x8xf32> to vector<8x8xbf16>
    %cst_127 = arith.constant dense<0.000000e+00> : vector<8x8xf32>
    %219 = tpu.matmul %217, %218, %cst_127 {dimension_numbers = #tpu.dot_dimension_numbers<[1], [1], [0], [0], [0, 0, 1, 0], [], []>} : vector<8x8xbf16>, vector<8x8xbf16>, vector<8x8xf32> -> vector<8x8xf32>
    %cst_128 = arith.constant 0.353553385 : f32
    %220 = vector.broadcast %cst_128 : f32 to vector<8x8xf32>
    %221 = arith.mulf %219, %220 : vector<8x8xf32>
    %cst_129 = arith.constant -1.000000e+09 : f32
    %222 = vector.broadcast %cst_129 : f32 to vector<8x8xf32>
    %223 = arith.select %7, %221, %222 : vector<8x8xi1>, vector<8x8xf32>
    %cst_130 = arith.constant dense<0xFF800000> : vector<8xf32>
    %224 = vector.multi_reduction <maximumf>, %223, %cst_130 [1] : vector<8x8xf32> to vector<8xf32>
    %225 = vector.shape_cast %224 : vector<8xf32> to vector<8x1xf32>
    %226 = vector.broadcast %225 : vector<8x1xf32> to vector<8x8xf32>
    %227 = arith.subf %223, %226 : vector<8x8xf32>
    %228 = math.exp %227 : vector<8x8xf32>
    %cst_131 = arith.constant dense<0.000000e+00> : vector<8xf32>
    %229 = vector.multi_reduction <add>, %228, %cst_131 [1] : vector<8x8xf32> to vector<8xf32>
    %230 = vector.shape_cast %229 : vector<8xf32> to vector<8x1xf32>
    %231 = vector.broadcast %230 : vector<8x1xf32> to vector<8x8xf32>
    %232 = arith.divf %228, %231 : vector<8x8xf32>
    %233 = vector.extract_strided_slice %31 {offsets = [8, 0], sizes = [8, 8], strides = [1, 1]} : vector<16x8xf32> to vector<8x8xf32>
    %234 = arith.truncf %232 : vector<8x8xf32> to vector<8x8xbf16>
    %235 = arith.truncf %233 : vector<8x8xf32> to vector<8x8xbf16>
    %cst_132 = arith.constant dense<0.000000e+00> : vector<8x8xf32>
    %236 = tpu.matmul %234, %235, %cst_132 {dimension_numbers = #tpu.dot_dimension_numbers<[1], [0], [0], [1], [0, 0, 1, 1], [], []>} : vector<8x8xbf16>, vector<8x8xbf16>, vector<8x8xf32> -> vector<8x8xf32>
    %c0_133 = arith.constant 0 : index
    %c0_134 = arith.constant 0 : index
    %c0_135 = arith.constant 0 : index
    %237 = vector.load %arg8[%c0_133, %c0_134, %c0_135] : memref<8x8x32xbf16, #tpu.memory_space<vmem>>, vector<1x8x32xbf16>
    %238 = vector.shape_cast %237 : vector<1x8x32xbf16> to vector<8x32xbf16>
    %239 = arith.truncf %236 : vector<8x8xf32> to vector<8x8xbf16>
    %cst_136 = arith.constant dense<0.000000e+00> : vector<8x32xf32>
    %240 = tpu.matmul %239, %238, %cst_136 {dimension_numbers = #tpu.dot_dimension_numbers<[1], [0], [0], [1], [0, 0, 1, 1], [], []>} : vector<8x8xbf16>, vector<8x32xbf16>, vector<8x32xf32> -> vector<8x32xf32>
    %241 = vector.extract_strided_slice %39 {offsets = [8, 0], sizes = [8, 8], strides = [1, 1]} : vector<16x8xf32> to vector<8x8xf32>
    %242 = vector.extract_strided_slice %47 {offsets = [8, 0], sizes = [8, 8], strides = [1, 1]} : vector<16x8xf32> to vector<8x8xf32>
    %243 = arith.truncf %241 : vector<8x8xf32> to vector<8x8xbf16>
    %244 = arith.truncf %242 : vector<8x8xf32> to vector<8x8xbf16>
    %cst_137 = arith.constant dense<0.000000e+00> : vector<8x8xf32>
    %245 = tpu.matmul %243, %244, %cst_137 {dimension_numbers = #tpu.dot_dimension_numbers<[1], [1], [0], [0], [0, 0, 1, 0], [], []>} : vector<8x8xbf16>, vector<8x8xbf16>, vector<8x8xf32> -> vector<8x8xf32>
    %cst_138 = arith.constant 0.353553385 : f32
    %246 = vector.broadcast %cst_138 : f32 to vector<8x8xf32>
    %247 = arith.mulf %245, %246 : vector<8x8xf32>
    %cst_139 = arith.constant -1.000000e+09 : f32
    %248 = vector.broadcast %cst_139 : f32 to vector<8x8xf32>
    %249 = arith.select %7, %247, %248 : vector<8x8xi1>, vector<8x8xf32>
    %cst_140 = arith.constant dense<0xFF800000> : vector<8xf32>
    %250 = vector.multi_reduction <maximumf>, %249, %cst_140 [1] : vector<8x8xf32> to vector<8xf32>
    %251 = vector.shape_cast %250 : vector<8xf32> to vector<8x1xf32>
    %252 = vector.broadcast %251 : vector<8x1xf32> to vector<8x8xf32>
    %253 = arith.subf %249, %252 : vector<8x8xf32>
    %254 = math.exp %253 : vector<8x8xf32>
    %cst_141 = arith.constant dense<0.000000e+00> : vector<8xf32>
    %255 = vector.multi_reduction <add>, %254, %cst_141 [1] : vector<8x8xf32> to vector<8xf32>
    %256 = vector.shape_cast %255 : vector<8xf32> to vector<8x1xf32>
    %257 = vector.broadcast %256 : vector<8x1xf32> to vector<8x8xf32>
    %258 = arith.divf %254, %257 : vector<8x8xf32>
    %259 = vector.extract_strided_slice %55 {offsets = [8, 0], sizes = [8, 8], strides = [1, 1]} : vector<16x8xf32> to vector<8x8xf32>
    %260 = arith.truncf %258 : vector<8x8xf32> to vector<8x8xbf16>
    %261 = arith.truncf %259 : vector<8x8xf32> to vector<8x8xbf16>
    %cst_142 = arith.constant dense<0.000000e+00> : vector<8x8xf32>
    %262 = tpu.matmul %260, %261, %cst_142 {dimension_numbers = #tpu.dot_dimension_numbers<[1], [0], [0], [1], [0, 0, 1, 1], [], []>} : vector<8x8xbf16>, vector<8x8xbf16>, vector<8x8xf32> -> vector<8x8xf32>
    %c1_143 = arith.constant 1 : index
    %c0_144 = arith.constant 0 : index
    %c0_145 = arith.constant 0 : index
    %263 = vector.load %arg8[%c1_143, %c0_144, %c0_145] : memref<8x8x32xbf16, #tpu.memory_space<vmem>>, vector<1x8x32xbf16>
    %264 = vector.shape_cast %263 : vector<1x8x32xbf16> to vector<8x32xbf16>
    %265 = arith.truncf %262 : vector<8x8xf32> to vector<8x8xbf16>
    %cst_146 = arith.constant dense<0.000000e+00> : vector<8x32xf32>
    %266 = tpu.matmul %265, %264, %cst_146 {dimension_numbers = #tpu.dot_dimension_numbers<[1], [0], [0], [1], [0, 0, 1, 1], [], []>} : vector<8x8xbf16>, vector<8x32xbf16>, vector<8x32xf32> -> vector<8x32xf32>
    %267 = arith.addf %240, %266 : vector<8x32xf32>
    %268 = vector.extract_strided_slice %63 {offsets = [8, 0], sizes = [8, 8], strides = [1, 1]} : vector<16x8xf32> to vector<8x8xf32>
    %269 = vector.extract_strided_slice %71 {offsets = [8, 0], sizes = [8, 8], strides = [1, 1]} : vector<16x8xf32> to vector<8x8xf32>
    %270 = arith.truncf %268 : vector<8x8xf32> to vector<8x8xbf16>
    %271 = arith.truncf %269 : vector<8x8xf32> to vector<8x8xbf16>
    %cst_147 = arith.constant dense<0.000000e+00> : vector<8x8xf32>
    %272 = tpu.matmul %270, %271, %cst_147 {dimension_numbers = #tpu.dot_dimension_numbers<[1], [1], [0], [0], [0, 0, 1, 0], [], []>} : vector<8x8xbf16>, vector<8x8xbf16>, vector<8x8xf32> -> vector<8x8xf32>
    %cst_148 = arith.constant 0.353553385 : f32
    %273 = vector.broadcast %cst_148 : f32 to vector<8x8xf32>
    %274 = arith.mulf %272, %273 : vector<8x8xf32>
    %cst_149 = arith.constant -1.000000e+09 : f32
    %275 = vector.broadcast %cst_149 : f32 to vector<8x8xf32>
    %276 = arith.select %7, %274, %275 : vector<8x8xi1>, vector<8x8xf32>
    %cst_150 = arith.constant dense<0xFF800000> : vector<8xf32>
    %277 = vector.multi_reduction <maximumf>, %276, %cst_150 [1] : vector<8x8xf32> to vector<8xf32>
    %278 = vector.shape_cast %277 : vector<8xf32> to vector<8x1xf32>
    %279 = vector.broadcast %278 : vector<8x1xf32> to vector<8x8xf32>
    %280 = arith.subf %276, %279 : vector<8x8xf32>
    %281 = math.exp %280 : vector<8x8xf32>
    %cst_151 = arith.constant dense<0.000000e+00> : vector<8xf32>
    %282 = vector.multi_reduction <add>, %281, %cst_151 [1] : vector<8x8xf32> to vector<8xf32>
    %283 = vector.shape_cast %282 : vector<8xf32> to vector<8x1xf32>
    %284 = vector.broadcast %283 : vector<8x1xf32> to vector<8x8xf32>
    %285 = arith.divf %281, %284 : vector<8x8xf32>
    %286 = vector.extract_strided_slice %79 {offsets = [8, 0], sizes = [8, 8], strides = [1, 1]} : vector<16x8xf32> to vector<8x8xf32>
    %287 = arith.truncf %285 : vector<8x8xf32> to vector<8x8xbf16>
    %288 = arith.truncf %286 : vector<8x8xf32> to vector<8x8xbf16>
    %cst_152 = arith.constant dense<0.000000e+00> : vector<8x8xf32>
    %289 = tpu.matmul %287, %288, %cst_152 {dimension_numbers = #tpu.dot_dimension_numbers<[1], [0], [0], [1], [0, 0, 1, 1], [], []>} : vector<8x8xbf16>, vector<8x8xbf16>, vector<8x8xf32> -> vector<8x8xf32>
    %c2_153 = arith.constant 2 : index
    %c0_154 = arith.constant 0 : index
    %c0_155 = arith.constant 0 : index
    %290 = vector.load %arg8[%c2_153, %c0_154, %c0_155] : memref<8x8x32xbf16, #tpu.memory_space<vmem>>, vector<1x8x32xbf16>
    %291 = vector.shape_cast %290 : vector<1x8x32xbf16> to vector<8x32xbf16>
    %292 = arith.truncf %289 : vector<8x8xf32> to vector<8x8xbf16>
    %cst_156 = arith.constant dense<0.000000e+00> : vector<8x32xf32>
    %293 = tpu.matmul %292, %291, %cst_156 {dimension_numbers = #tpu.dot_dimension_numbers<[1], [0], [0], [1], [0, 0, 1, 1], [], []>} : vector<8x8xbf16>, vector<8x32xbf16>, vector<8x32xf32> -> vector<8x32xf32>
    %294 = arith.addf %267, %293 : vector<8x32xf32>
    %295 = vector.extract_strided_slice %87 {offsets = [8, 0], sizes = [8, 8], strides = [1, 1]} : vector<16x8xf32> to vector<8x8xf32>
    %296 = vector.extract_strided_slice %95 {offsets = [8, 0], sizes = [8, 8], strides = [1, 1]} : vector<16x8xf32> to vector<8x8xf32>
    %297 = arith.truncf %295 : vector<8x8xf32> to vector<8x8xbf16>
    %298 = arith.truncf %296 : vector<8x8xf32> to vector<8x8xbf16>
    %cst_157 = arith.constant dense<0.000000e+00> : vector<8x8xf32>
    %299 = tpu.matmul %297, %298, %cst_157 {dimension_numbers = #tpu.dot_dimension_numbers<[1], [1], [0], [0], [0, 0, 1, 0], [], []>} : vector<8x8xbf16>, vector<8x8xbf16>, vector<8x8xf32> -> vector<8x8xf32>
    %cst_158 = arith.constant 0.353553385 : f32
    %300 = vector.broadcast %cst_158 : f32 to vector<8x8xf32>
    %301 = arith.mulf %299, %300 : vector<8x8xf32>
    %cst_159 = arith.constant -1.000000e+09 : f32
    %302 = vector.broadcast %cst_159 : f32 to vector<8x8xf32>
    %303 = arith.select %7, %301, %302 : vector<8x8xi1>, vector<8x8xf32>
    %cst_160 = arith.constant dense<0xFF800000> : vector<8xf32>
    %304 = vector.multi_reduction <maximumf>, %303, %cst_160 [1] : vector<8x8xf32> to vector<8xf32>
    %305 = vector.shape_cast %304 : vector<8xf32> to vector<8x1xf32>
    %306 = vector.broadcast %305 : vector<8x1xf32> to vector<8x8xf32>
    %307 = arith.subf %303, %306 : vector<8x8xf32>
    %308 = math.exp %307 : vector<8x8xf32>
    %cst_161 = arith.constant dense<0.000000e+00> : vector<8xf32>
    %309 = vector.multi_reduction <add>, %308, %cst_161 [1] : vector<8x8xf32> to vector<8xf32>
    %310 = vector.shape_cast %309 : vector<8xf32> to vector<8x1xf32>
    %311 = vector.broadcast %310 : vector<8x1xf32> to vector<8x8xf32>
    %312 = arith.divf %308, %311 : vector<8x8xf32>
    %313 = vector.extract_strided_slice %103 {offsets = [8, 0], sizes = [8, 8], strides = [1, 1]} : vector<16x8xf32> to vector<8x8xf32>
    %314 = arith.truncf %312 : vector<8x8xf32> to vector<8x8xbf16>
    %315 = arith.truncf %313 : vector<8x8xf32> to vector<8x8xbf16>
    %cst_162 = arith.constant dense<0.000000e+00> : vector<8x8xf32>
    %316 = tpu.matmul %314, %315, %cst_162 {dimension_numbers = #tpu.dot_dimension_numbers<[1], [0], [0], [1], [0, 0, 1, 1], [], []>} : vector<8x8xbf16>, vector<8x8xbf16>, vector<8x8xf32> -> vector<8x8xf32>
    %c3_163 = arith.constant 3 : index
    %c0_164 = arith.constant 0 : index
    %c0_165 = arith.constant 0 : index
    %317 = vector.load %arg8[%c3_163, %c0_164, %c0_165] : memref<8x8x32xbf16, #tpu.memory_space<vmem>>, vector<1x8x32xbf16>
    %318 = vector.shape_cast %317 : vector<1x8x32xbf16> to vector<8x32xbf16>
    %319 = arith.truncf %316 : vector<8x8xf32> to vector<8x8xbf16>
    %cst_166 = arith.constant dense<0.000000e+00> : vector<8x32xf32>
    %320 = tpu.matmul %319, %318, %cst_166 {dimension_numbers = #tpu.dot_dimension_numbers<[1], [0], [0], [1], [0, 0, 1, 1], [], []>} : vector<8x8xbf16>, vector<8x32xbf16>, vector<8x32xf32> -> vector<8x32xf32>
    %321 = arith.addf %294, %320 : vector<8x32xf32>
    %c0_167 = arith.constant 0 : index
    %c0_168 = arith.constant 0 : index
    %c0_169 = arith.constant 0 : index
    %322 = vector.load %arg9[%c0_167, %c0_168, %c0_169] : memref<2x1x32xf32, #tpu.memory_space<vmem>>, vector<1x1x32xf32>
    %323 = vector.shape_cast %322 : vector<1x1x32xf32> to vector<1x32xf32>
    %324 = vector.broadcast %323 : vector<1x32xf32> to vector<8x32xf32>
    %325 = arith.addf %321, %324 : vector<8x32xf32>
    %326 = tpu.concatenate %214, %325 in 0 : vector<8x32xf32>, vector<8x32xf32> -> vector<16x32xf32>
    %327 = arith.addf %326, %4 : vector<16x32xf32>
    %c0_170 = arith.constant 0 : index
    %c0_171 = arith.constant 0 : index
    %c0_172 = arith.constant 0 : index
    %328 = vector.load %arg14[%c0_170, %c0_171, %c0_172] : memref<2x1x32xf32, #tpu.memory_space<vmem>>, vector<1x1x32xf32>
    %329 = vector.shape_cast %328 : vector<1x1x32xf32> to vector<1x32xf32>
    %c0_173 = arith.constant 0 : index
    %c0_174 = arith.constant 0 : index
    %c0_175 = arith.constant 0 : index
    %330 = vector.load %arg15[%c0_173, %c0_174, %c0_175] : memref<2x1x32xf32, #tpu.memory_space<vmem>>, vector<1x1x32xf32>
    %331 = vector.shape_cast %330 : vector<1x1x32xf32> to vector<1x32xf32>
    %cst_176 = arith.constant dense<0.000000e+00> : vector<16xf32>
    %332 = vector.multi_reduction <add>, %327, %cst_176 [1] : vector<16x32xf32> to vector<16xf32>
    %333 = vector.shape_cast %332 : vector<16xf32> to vector<16x1xf32>
    %cst_177 = arith.constant 3.200000e+01 : f32
    %334 = vector.broadcast %cst_177 : f32 to vector<16x1xf32>
    %335 = arith.divf %333, %334 : vector<16x1xf32>
    %336 = vector.broadcast %335 : vector<16x1xf32> to vector<16x32xf32>
    %337 = arith.subf %327, %336 : vector<16x32xf32>
    %338 = arith.mulf %337, %337 : vector<16x32xf32>
    %cst_178 = arith.constant dense<0.000000e+00> : vector<16xf32>
    %339 = vector.multi_reduction <add>, %338, %cst_178 [1] : vector<16x32xf32> to vector<16xf32>
    %340 = vector.shape_cast %339 : vector<16xf32> to vector<16x1xf32>
    %cst_179 = arith.constant 3.200000e+01 : f32
    %341 = vector.broadcast %cst_179 : f32 to vector<16x1xf32>
    %342 = arith.divf %340, %341 : vector<16x1xf32>
    %343 = vector.broadcast %335 : vector<16x1xf32> to vector<16x32xf32>
    %344 = arith.subf %327, %343 : vector<16x32xf32>
    %cst_180 = arith.constant 9.99999974E-6 : f32
    %345 = vector.broadcast %cst_180 : f32 to vector<16x1xf32>
    %346 = arith.addf %342, %345 : vector<16x1xf32>
    %347 = math.rsqrt %346 : vector<16x1xf32>
    %348 = vector.broadcast %347 : vector<16x1xf32> to vector<16x32xf32>
    %349 = arith.mulf %344, %348 : vector<16x32xf32>
    %350 = vector.broadcast %329 : vector<1x32xf32> to vector<16x32xf32>
    %351 = arith.mulf %349, %350 : vector<16x32xf32>
    %352 = vector.broadcast %331 : vector<1x32xf32> to vector<16x32xf32>
    %353 = arith.addf %351, %352 : vector<16x32xf32>
    %c0_181 = arith.constant 0 : index
    %c0_182 = arith.constant 0 : index
    %c0_183 = arith.constant 0 : index
    %354 = vector.load %arg10[%c0_181, %c0_182, %c0_183] : memref<2x32x64xbf16, #tpu.memory_space<vmem>>, vector<1x32x64xbf16>
    %355 = vector.shape_cast %354 : vector<1x32x64xbf16> to vector<32x64xbf16>
    %356 = arith.truncf %353 : vector<16x32xf32> to vector<16x32xbf16>
    %cst_184 = arith.constant dense<0.000000e+00> : vector<16x64xf32>
    %357 = tpu.matmul %356, %355, %cst_184 {dimension_numbers = #tpu.dot_dimension_numbers<[1], [0], [0], [1], [0, 0, 1, 1], [], []>} : vector<16x32xbf16>, vector<32x64xbf16>, vector<16x64xf32> -> vector<16x64xf32>
    %c0_185 = arith.constant 0 : index
    %c0_186 = arith.constant 0 : index
    %c0_187 = arith.constant 0 : index
    %358 = vector.load %arg11[%c0_185, %c0_186, %c0_187] : memref<2x1x64xf32, #tpu.memory_space<vmem>>, vector<1x1x64xf32>
    %359 = vector.shape_cast %358 : vector<1x1x64xf32> to vector<1x64xf32>
    %360 = vector.broadcast %359 : vector<1x64xf32> to vector<16x64xf32>
    %361 = arith.addf %357, %360 : vector<16x64xf32>
    %cst_188 = arith.constant 0.000000e+00 : f32
    %362 = vector.broadcast %cst_188 : f32 to vector<16x64xf32>
    %363 = arith.maximumf %361, %362 : vector<16x64xf32>
    %c0_189 = arith.constant 0 : index
    %c0_190 = arith.constant 0 : index
    %c0_191 = arith.constant 0 : index
    %364 = vector.load %arg12[%c0_189, %c0_190, %c0_191] : memref<2x64x32xbf16, #tpu.memory_space<vmem>>, vector<1x64x32xbf16>
    %365 = vector.shape_cast %364 : vector<1x64x32xbf16> to vector<64x32xbf16>
    %366 = arith.truncf %363 : vector<16x64xf32> to vector<16x64xbf16>
    %cst_192 = arith.constant dense<0.000000e+00> : vector<16x32xf32>
    %367 = tpu.matmul %366, %365, %cst_192 {dimension_numbers = #tpu.dot_dimension_numbers<[1], [0], [0], [1], [0, 0, 1, 1], [], []>} : vector<16x64xbf16>, vector<64x32xbf16>, vector<16x32xf32> -> vector<16x32xf32>
    %c0_193 = arith.constant 0 : index
    %c0_194 = arith.constant 0 : index
    %c0_195 = arith.constant 0 : index
    %368 = vector.load %arg13[%c0_193, %c0_194, %c0_195] : memref<2x1x32xf32, #tpu.memory_space<vmem>>, vector<1x1x32xf32>
    %369 = vector.shape_cast %368 : vector<1x1x32xf32> to vector<1x32xf32>
    %370 = vector.broadcast %369 : vector<1x32xf32> to vector<16x32xf32>
    %371 = arith.addf %367, %370 : vector<16x32xf32>
    %372 = arith.addf %371, %353 : vector<16x32xf32>
    %c0_196 = arith.constant 0 : index
    %c0_197 = arith.constant 0 : index
    %c0_198 = arith.constant 0 : index
    %373 = vector.load %arg16[%c0_196, %c0_197, %c0_198] : memref<2x1x32xf32, #tpu.memory_space<vmem>>, vector<1x1x32xf32>
    %374 = vector.shape_cast %373 : vector<1x1x32xf32> to vector<1x32xf32>
    %c0_199 = arith.constant 0 : index
    %c0_200 = arith.constant 0 : index
    %c0_201 = arith.constant 0 : index
    %375 = vector.load %arg17[%c0_199, %c0_200, %c0_201] : memref<2x1x32xf32, #tpu.memory_space<vmem>>, vector<1x1x32xf32>
    %376 = vector.shape_cast %375 : vector<1x1x32xf32> to vector<1x32xf32>
    %cst_202 = arith.constant dense<0.000000e+00> : vector<16xf32>
    %377 = vector.multi_reduction <add>, %372, %cst_202 [1] : vector<16x32xf32> to vector<16xf32>
    %378 = vector.shape_cast %377 : vector<16xf32> to vector<16x1xf32>
    %cst_203 = arith.constant 3.200000e+01 : f32
    %379 = vector.broadcast %cst_203 : f32 to vector<16x1xf32>
    %380 = arith.divf %378, %379 : vector<16x1xf32>
    %381 = vector.broadcast %380 : vector<16x1xf32> to vector<16x32xf32>
    %382 = arith.subf %372, %381 : vector<16x32xf32>
    %383 = arith.mulf %382, %382 : vector<16x32xf32>
    %cst_204 = arith.constant dense<0.000000e+00> : vector<16xf32>
    %384 = vector.multi_reduction <add>, %383, %cst_204 [1] : vector<16x32xf32> to vector<16xf32>
    %385 = vector.shape_cast %384 : vector<16xf32> to vector<16x1xf32>
    %cst_205 = arith.constant 3.200000e+01 : f32
    %386 = vector.broadcast %cst_205 : f32 to vector<16x1xf32>
    %387 = arith.divf %385, %386 : vector<16x1xf32>
    %388 = vector.broadcast %380 : vector<16x1xf32> to vector<16x32xf32>
    %389 = arith.subf %372, %388 : vector<16x32xf32>
    %cst_206 = arith.constant 9.99999974E-6 : f32
    %390 = vector.broadcast %cst_206 : f32 to vector<16x1xf32>
    %391 = arith.addf %387, %390 : vector<16x1xf32>
    %392 = math.rsqrt %391 : vector<16x1xf32>
    %393 = vector.broadcast %392 : vector<16x1xf32> to vector<16x32xf32>
    %394 = arith.mulf %389, %393 : vector<16x32xf32>
    %395 = vector.broadcast %374 : vector<1x32xf32> to vector<16x32xf32>
    %396 = arith.mulf %394, %395 : vector<16x32xf32>
    %397 = vector.broadcast %376 : vector<1x32xf32> to vector<16x32xf32>
    %398 = arith.addf %396, %397 : vector<16x32xf32>
    %c4 = arith.constant 4 : index
    %c0_207 = arith.constant 0 : index
    %c0_208 = arith.constant 0 : index
    %399 = vector.load %arg2[%c4, %c0_207, %c0_208] : memref<8x32x8xbf16, #tpu.memory_space<vmem>>, vector<1x32x8xbf16>
    %400 = vector.shape_cast %399 : vector<1x32x8xbf16> to vector<32x8xbf16>
    %401 = arith.truncf %398 : vector<16x32xf32> to vector<16x32xbf16>
    %cst_209 = arith.constant dense<0.000000e+00> : vector<16x8xf32>
    %402 = tpu.matmul %401, %400, %cst_209 {dimension_numbers = #tpu.dot_dimension_numbers<[1], [0], [0], [1], [0, 0, 1, 1], [], []>} : vector<16x32xbf16>, vector<32x8xbf16>, vector<16x8xf32> -> vector<16x8xf32>
    %c4_210 = arith.constant 4 : index
    %c0_211 = arith.constant 0 : index
    %c0_212 = arith.constant 0 : index
    %403 = vector.load %arg3[%c4_210, %c0_211, %c0_212] : memref<8x1x8xf32, #tpu.memory_space<vmem>>, vector<1x1x8xf32>
    %404 = vector.shape_cast %403 : vector<1x1x8xf32> to vector<1x8xf32>
    %405 = vector.broadcast %404 : vector<1x8xf32> to vector<16x8xf32>
    %406 = arith.addf %402, %405 : vector<16x8xf32>
    %c4_213 = arith.constant 4 : index
    %c0_214 = arith.constant 0 : index
    %c0_215 = arith.constant 0 : index
    %407 = vector.load %arg4[%c4_213, %c0_214, %c0_215] : memref<8x32x8xbf16, #tpu.memory_space<vmem>>, vector<1x32x8xbf16>
    %408 = vector.shape_cast %407 : vector<1x32x8xbf16> to vector<32x8xbf16>
    %409 = arith.truncf %398 : vector<16x32xf32> to vector<16x32xbf16>
    %cst_216 = arith.constant dense<0.000000e+00> : vector<16x8xf32>
    %410 = tpu.matmul %409, %408, %cst_216 {dimension_numbers = #tpu.dot_dimension_numbers<[1], [0], [0], [1], [0, 0, 1, 1], [], []>} : vector<16x32xbf16>, vector<32x8xbf16>, vector<16x8xf32> -> vector<16x8xf32>
    %c4_217 = arith.constant 4 : index
    %c0_218 = arith.constant 0 : index
    %c0_219 = arith.constant 0 : index
    %411 = vector.load %arg5[%c4_217, %c0_218, %c0_219] : memref<8x1x8xf32, #tpu.memory_space<vmem>>, vector<1x1x8xf32>
    %412 = vector.shape_cast %411 : vector<1x1x8xf32> to vector<1x8xf32>
    %413 = vector.broadcast %412 : vector<1x8xf32> to vector<16x8xf32>
    %414 = arith.addf %410, %413 : vector<16x8xf32>
    %c4_220 = arith.constant 4 : index
    %c0_221 = arith.constant 0 : index
    %c0_222 = arith.constant 0 : index
    %415 = vector.load %arg6[%c4_220, %c0_221, %c0_222] : memref<8x32x8xbf16, #tpu.memory_space<vmem>>, vector<1x32x8xbf16>
    %416 = vector.shape_cast %415 : vector<1x32x8xbf16> to vector<32x8xbf16>
    %417 = arith.truncf %398 : vector<16x32xf32> to vector<16x32xbf16>
    %cst_223 = arith.constant dense<0.000000e+00> : vector<16x8xf32>
    %418 = tpu.matmul %417, %416, %cst_223 {dimension_numbers = #tpu.dot_dimension_numbers<[1], [0], [0], [1], [0, 0, 1, 1], [], []>} : vector<16x32xbf16>, vector<32x8xbf16>, vector<16x8xf32> -> vector<16x8xf32>
    %c4_224 = arith.constant 4 : index
    %c0_225 = arith.constant 0 : index
    %c0_226 = arith.constant 0 : index
    %419 = vector.load %arg7[%c4_224, %c0_225, %c0_226] : memref<8x1x8xf32, #tpu.memory_space<vmem>>, vector<1x1x8xf32>
    %420 = vector.shape_cast %419 : vector<1x1x8xf32> to vector<1x8xf32>
    %421 = vector.broadcast %420 : vector<1x8xf32> to vector<16x8xf32>
    %422 = arith.addf %418, %421 : vector<16x8xf32>
    %c5 = arith.constant 5 : index
    %c0_227 = arith.constant 0 : index
    %c0_228 = arith.constant 0 : index
    %423 = vector.load %arg2[%c5, %c0_227, %c0_228] : memref<8x32x8xbf16, #tpu.memory_space<vmem>>, vector<1x32x8xbf16>
    %424 = vector.shape_cast %423 : vector<1x32x8xbf16> to vector<32x8xbf16>
    %425 = arith.truncf %398 : vector<16x32xf32> to vector<16x32xbf16>
    %cst_229 = arith.constant dense<0.000000e+00> : vector<16x8xf32>
    %426 = tpu.matmul %425, %424, %cst_229 {dimension_numbers = #tpu.dot_dimension_numbers<[1], [0], [0], [1], [0, 0, 1, 1], [], []>} : vector<16x32xbf16>, vector<32x8xbf16>, vector<16x8xf32> -> vector<16x8xf32>
    %c5_230 = arith.constant 5 : index
    %c0_231 = arith.constant 0 : index
    %c0_232 = arith.constant 0 : index
    %427 = vector.load %arg3[%c5_230, %c0_231, %c0_232] : memref<8x1x8xf32, #tpu.memory_space<vmem>>, vector<1x1x8xf32>
    %428 = vector.shape_cast %427 : vector<1x1x8xf32> to vector<1x8xf32>
    %429 = vector.broadcast %428 : vector<1x8xf32> to vector<16x8xf32>
    %430 = arith.addf %426, %429 : vector<16x8xf32>
    %c5_233 = arith.constant 5 : index
    %c0_234 = arith.constant 0 : index
    %c0_235 = arith.constant 0 : index
    %431 = vector.load %arg4[%c5_233, %c0_234, %c0_235] : memref<8x32x8xbf16, #tpu.memory_space<vmem>>, vector<1x32x8xbf16>
    %432 = vector.shape_cast %431 : vector<1x32x8xbf16> to vector<32x8xbf16>
    %433 = arith.truncf %398 : vector<16x32xf32> to vector<16x32xbf16>
    %cst_236 = arith.constant dense<0.000000e+00> : vector<16x8xf32>
    %434 = tpu.matmul %433, %432, %cst_236 {dimension_numbers = #tpu.dot_dimension_numbers<[1], [0], [0], [1], [0, 0, 1, 1], [], []>} : vector<16x32xbf16>, vector<32x8xbf16>, vector<16x8xf32> -> vector<16x8xf32>
    %c5_237 = arith.constant 5 : index
    %c0_238 = arith.constant 0 : index
    %c0_239 = arith.constant 0 : index
    %435 = vector.load %arg5[%c5_237, %c0_238, %c0_239] : memref<8x1x8xf32, #tpu.memory_space<vmem>>, vector<1x1x8xf32>
    %436 = vector.shape_cast %435 : vector<1x1x8xf32> to vector<1x8xf32>
    %437 = vector.broadcast %436 : vector<1x8xf32> to vector<16x8xf32>
    %438 = arith.addf %434, %437 : vector<16x8xf32>
    %c5_240 = arith.constant 5 : index
    %c0_241 = arith.constant 0 : index
    %c0_242 = arith.constant 0 : index
    %439 = vector.load %arg6[%c5_240, %c0_241, %c0_242] : memref<8x32x8xbf16, #tpu.memory_space<vmem>>, vector<1x32x8xbf16>
    %440 = vector.shape_cast %439 : vector<1x32x8xbf16> to vector<32x8xbf16>
    %441 = arith.truncf %398 : vector<16x32xf32> to vector<16x32xbf16>
    %cst_243 = arith.constant dense<0.000000e+00> : vector<16x8xf32>
    %442 = tpu.matmul %441, %440, %cst_243 {dimension_numbers = #tpu.dot_dimension_numbers<[1], [0], [0], [1], [0, 0, 1, 1], [], []>} : vector<16x32xbf16>, vector<32x8xbf16>, vector<16x8xf32> -> vector<16x8xf32>
    %c5_244 = arith.constant 5 : index
    %c0_245 = arith.constant 0 : index
    %c0_246 = arith.constant 0 : index
    %443 = vector.load %arg7[%c5_244, %c0_245, %c0_246] : memref<8x1x8xf32, #tpu.memory_space<vmem>>, vector<1x1x8xf32>
    %444 = vector.shape_cast %443 : vector<1x1x8xf32> to vector<1x8xf32>
    %445 = vector.broadcast %444 : vector<1x8xf32> to vector<16x8xf32>
    %446 = arith.addf %442, %445 : vector<16x8xf32>
    %c6 = arith.constant 6 : index
    %c0_247 = arith.constant 0 : index
    %c0_248 = arith.constant 0 : index
    %447 = vector.load %arg2[%c6, %c0_247, %c0_248] : memref<8x32x8xbf16, #tpu.memory_space<vmem>>, vector<1x32x8xbf16>
    %448 = vector.shape_cast %447 : vector<1x32x8xbf16> to vector<32x8xbf16>
    %449 = arith.truncf %398 : vector<16x32xf32> to vector<16x32xbf16>
    %cst_249 = arith.constant dense<0.000000e+00> : vector<16x8xf32>
    %450 = tpu.matmul %449, %448, %cst_249 {dimension_numbers = #tpu.dot_dimension_numbers<[1], [0], [0], [1], [0, 0, 1, 1], [], []>} : vector<16x32xbf16>, vector<32x8xbf16>, vector<16x8xf32> -> vector<16x8xf32>
    %c6_250 = arith.constant 6 : index
    %c0_251 = arith.constant 0 : index
    %c0_252 = arith.constant 0 : index
    %451 = vector.load %arg3[%c6_250, %c0_251, %c0_252] : memref<8x1x8xf32, #tpu.memory_space<vmem>>, vector<1x1x8xf32>
    %452 = vector.shape_cast %451 : vector<1x1x8xf32> to vector<1x8xf32>
    %453 = vector.broadcast %452 : vector<1x8xf32> to vector<16x8xf32>
    %454 = arith.addf %450, %453 : vector<16x8xf32>
    %c6_253 = arith.constant 6 : index
    %c0_254 = arith.constant 0 : index
    %c0_255 = arith.constant 0 : index
    %455 = vector.load %arg4[%c6_253, %c0_254, %c0_255] : memref<8x32x8xbf16, #tpu.memory_space<vmem>>, vector<1x32x8xbf16>
    %456 = vector.shape_cast %455 : vector<1x32x8xbf16> to vector<32x8xbf16>
    %457 = arith.truncf %398 : vector<16x32xf32> to vector<16x32xbf16>
    %cst_256 = arith.constant dense<0.000000e+00> : vector<16x8xf32>
    %458 = tpu.matmul %457, %456, %cst_256 {dimension_numbers = #tpu.dot_dimension_numbers<[1], [0], [0], [1], [0, 0, 1, 1], [], []>} : vector<16x32xbf16>, vector<32x8xbf16>, vector<16x8xf32> -> vector<16x8xf32>
    %c6_257 = arith.constant 6 : index
    %c0_258 = arith.constant 0 : index
    %c0_259 = arith.constant 0 : index
    %459 = vector.load %arg5[%c6_257, %c0_258, %c0_259] : memref<8x1x8xf32, #tpu.memory_space<vmem>>, vector<1x1x8xf32>
    %460 = vector.shape_cast %459 : vector<1x1x8xf32> to vector<1x8xf32>
    %461 = vector.broadcast %460 : vector<1x8xf32> to vector<16x8xf32>
    %462 = arith.addf %458, %461 : vector<16x8xf32>
    %c6_260 = arith.constant 6 : index
    %c0_261 = arith.constant 0 : index
    %c0_262 = arith.constant 0 : index
    %463 = vector.load %arg6[%c6_260, %c0_261, %c0_262] : memref<8x32x8xbf16, #tpu.memory_space<vmem>>, vector<1x32x8xbf16>
    %464 = vector.shape_cast %463 : vector<1x32x8xbf16> to vector<32x8xbf16>
    %465 = arith.truncf %398 : vector<16x32xf32> to vector<16x32xbf16>
    %cst_263 = arith.constant dense<0.000000e+00> : vector<16x8xf32>
    %466 = tpu.matmul %465, %464, %cst_263 {dimension_numbers = #tpu.dot_dimension_numbers<[1], [0], [0], [1], [0, 0, 1, 1], [], []>} : vector<16x32xbf16>, vector<32x8xbf16>, vector<16x8xf32> -> vector<16x8xf32>
    %c6_264 = arith.constant 6 : index
    %c0_265 = arith.constant 0 : index
    %c0_266 = arith.constant 0 : index
    %467 = vector.load %arg7[%c6_264, %c0_265, %c0_266] : memref<8x1x8xf32, #tpu.memory_space<vmem>>, vector<1x1x8xf32>
    %468 = vector.shape_cast %467 : vector<1x1x8xf32> to vector<1x8xf32>
    %469 = vector.broadcast %468 : vector<1x8xf32> to vector<16x8xf32>
    %470 = arith.addf %466, %469 : vector<16x8xf32>
    %c7 = arith.constant 7 : index
    %c0_267 = arith.constant 0 : index
    %c0_268 = arith.constant 0 : index
    %471 = vector.load %arg2[%c7, %c0_267, %c0_268] : memref<8x32x8xbf16, #tpu.memory_space<vmem>>, vector<1x32x8xbf16>
    %472 = vector.shape_cast %471 : vector<1x32x8xbf16> to vector<32x8xbf16>
    %473 = arith.truncf %398 : vector<16x32xf32> to vector<16x32xbf16>
    %cst_269 = arith.constant dense<0.000000e+00> : vector<16x8xf32>
    %474 = tpu.matmul %473, %472, %cst_269 {dimension_numbers = #tpu.dot_dimension_numbers<[1], [0], [0], [1], [0, 0, 1, 1], [], []>} : vector<16x32xbf16>, vector<32x8xbf16>, vector<16x8xf32> -> vector<16x8xf32>
    %c7_270 = arith.constant 7 : index
    %c0_271 = arith.constant 0 : index
    %c0_272 = arith.constant 0 : index
    %475 = vector.load %arg3[%c7_270, %c0_271, %c0_272] : memref<8x1x8xf32, #tpu.memory_space<vmem>>, vector<1x1x8xf32>
    %476 = vector.shape_cast %475 : vector<1x1x8xf32> to vector<1x8xf32>
    %477 = vector.broadcast %476 : vector<1x8xf32> to vector<16x8xf32>
    %478 = arith.addf %474, %477 : vector<16x8xf32>
    %c7_273 = arith.constant 7 : index
    %c0_274 = arith.constant 0 : index
    %c0_275 = arith.constant 0 : index
    %479 = vector.load %arg4[%c7_273, %c0_274, %c0_275] : memref<8x32x8xbf16, #tpu.memory_space<vmem>>, vector<1x32x8xbf16>
    %480 = vector.shape_cast %479 : vector<1x32x8xbf16> to vector<32x8xbf16>
    %481 = arith.truncf %398 : vector<16x32xf32> to vector<16x32xbf16>
    %cst_276 = arith.constant dense<0.000000e+00> : vector<16x8xf32>
    %482 = tpu.matmul %481, %480, %cst_276 {dimension_numbers = #tpu.dot_dimension_numbers<[1], [0], [0], [1], [0, 0, 1, 1], [], []>} : vector<16x32xbf16>, vector<32x8xbf16>, vector<16x8xf32> -> vector<16x8xf32>
    %c7_277 = arith.constant 7 : index
    %c0_278 = arith.constant 0 : index
    %c0_279 = arith.constant 0 : index
    %483 = vector.load %arg5[%c7_277, %c0_278, %c0_279] : memref<8x1x8xf32, #tpu.memory_space<vmem>>, vector<1x1x8xf32>
    %484 = vector.shape_cast %483 : vector<1x1x8xf32> to vector<1x8xf32>
    %485 = vector.broadcast %484 : vector<1x8xf32> to vector<16x8xf32>
    %486 = arith.addf %482, %485 : vector<16x8xf32>
    %c7_280 = arith.constant 7 : index
    %c0_281 = arith.constant 0 : index
    %c0_282 = arith.constant 0 : index
    %487 = vector.load %arg6[%c7_280, %c0_281, %c0_282] : memref<8x32x8xbf16, #tpu.memory_space<vmem>>, vector<1x32x8xbf16>
    %488 = vector.shape_cast %487 : vector<1x32x8xbf16> to vector<32x8xbf16>
    %489 = arith.truncf %398 : vector<16x32xf32> to vector<16x32xbf16>
    %cst_283 = arith.constant dense<0.000000e+00> : vector<16x8xf32>
    %490 = tpu.matmul %489, %488, %cst_283 {dimension_numbers = #tpu.dot_dimension_numbers<[1], [0], [0], [1], [0, 0, 1, 1], [], []>} : vector<16x32xbf16>, vector<32x8xbf16>, vector<16x8xf32> -> vector<16x8xf32>
    %c7_284 = arith.constant 7 : index
    %c0_285 = arith.constant 0 : index
    %c0_286 = arith.constant 0 : index
    %491 = vector.load %arg7[%c7_284, %c0_285, %c0_286] : memref<8x1x8xf32, #tpu.memory_space<vmem>>, vector<1x1x8xf32>
    %492 = vector.shape_cast %491 : vector<1x1x8xf32> to vector<1x8xf32>
    %493 = vector.broadcast %492 : vector<1x8xf32> to vector<16x8xf32>
    %494 = arith.addf %490, %493 : vector<16x8xf32>
    %495 = vector.extract_strided_slice %406 {offsets = [0, 0], sizes = [8, 8], strides = [1, 1]} : vector<16x8xf32> to vector<8x8xf32>
    %496 = vector.extract_strided_slice %414 {offsets = [0, 0], sizes = [8, 8], strides = [1, 1]} : vector<16x8xf32> to vector<8x8xf32>
    %497 = arith.truncf %495 : vector<8x8xf32> to vector<8x8xbf16>
    %498 = arith.truncf %496 : vector<8x8xf32> to vector<8x8xbf16>
    %cst_287 = arith.constant dense<0.000000e+00> : vector<8x8xf32>
    %499 = tpu.matmul %497, %498, %cst_287 {dimension_numbers = #tpu.dot_dimension_numbers<[1], [1], [0], [0], [0, 0, 1, 0], [], []>} : vector<8x8xbf16>, vector<8x8xbf16>, vector<8x8xf32> -> vector<8x8xf32>
    %cst_288 = arith.constant 0.353553385 : f32
    %500 = vector.broadcast %cst_288 : f32 to vector<8x8xf32>
    %501 = arith.mulf %499, %500 : vector<8x8xf32>
    %cst_289 = arith.constant -1.000000e+09 : f32
    %502 = vector.broadcast %cst_289 : f32 to vector<8x8xf32>
    %503 = arith.select %7, %501, %502 : vector<8x8xi1>, vector<8x8xf32>
    %cst_290 = arith.constant dense<0xFF800000> : vector<8xf32>
    %504 = vector.multi_reduction <maximumf>, %503, %cst_290 [1] : vector<8x8xf32> to vector<8xf32>
    %505 = vector.shape_cast %504 : vector<8xf32> to vector<8x1xf32>
    %506 = vector.broadcast %505 : vector<8x1xf32> to vector<8x8xf32>
    %507 = arith.subf %503, %506 : vector<8x8xf32>
    %508 = math.exp %507 : vector<8x8xf32>
    %cst_291 = arith.constant dense<0.000000e+00> : vector<8xf32>
    %509 = vector.multi_reduction <add>, %508, %cst_291 [1] : vector<8x8xf32> to vector<8xf32>
    %510 = vector.shape_cast %509 : vector<8xf32> to vector<8x1xf32>
    %511 = vector.broadcast %510 : vector<8x1xf32> to vector<8x8xf32>
    %512 = arith.divf %508, %511 : vector<8x8xf32>
    %513 = vector.extract_strided_slice %422 {offsets = [0, 0], sizes = [8, 8], strides = [1, 1]} : vector<16x8xf32> to vector<8x8xf32>
    %514 = arith.truncf %512 : vector<8x8xf32> to vector<8x8xbf16>
    %515 = arith.truncf %513 : vector<8x8xf32> to vector<8x8xbf16>
    %cst_292 = arith.constant dense<0.000000e+00> : vector<8x8xf32>
    %516 = tpu.matmul %514, %515, %cst_292 {dimension_numbers = #tpu.dot_dimension_numbers<[1], [0], [0], [1], [0, 0, 1, 1], [], []>} : vector<8x8xbf16>, vector<8x8xbf16>, vector<8x8xf32> -> vector<8x8xf32>
    %c4_293 = arith.constant 4 : index
    %c0_294 = arith.constant 0 : index
    %c0_295 = arith.constant 0 : index
    %517 = vector.load %arg8[%c4_293, %c0_294, %c0_295] : memref<8x8x32xbf16, #tpu.memory_space<vmem>>, vector<1x8x32xbf16>
    %518 = vector.shape_cast %517 : vector<1x8x32xbf16> to vector<8x32xbf16>
    %519 = arith.truncf %516 : vector<8x8xf32> to vector<8x8xbf16>
    %cst_296 = arith.constant dense<0.000000e+00> : vector<8x32xf32>
    %520 = tpu.matmul %519, %518, %cst_296 {dimension_numbers = #tpu.dot_dimension_numbers<[1], [0], [0], [1], [0, 0, 1, 1], [], []>} : vector<8x8xbf16>, vector<8x32xbf16>, vector<8x32xf32> -> vector<8x32xf32>
    %521 = vector.extract_strided_slice %430 {offsets = [0, 0], sizes = [8, 8], strides = [1, 1]} : vector<16x8xf32> to vector<8x8xf32>
    %522 = vector.extract_strided_slice %438 {offsets = [0, 0], sizes = [8, 8], strides = [1, 1]} : vector<16x8xf32> to vector<8x8xf32>
    %523 = arith.truncf %521 : vector<8x8xf32> to vector<8x8xbf16>
    %524 = arith.truncf %522 : vector<8x8xf32> to vector<8x8xbf16>
    %cst_297 = arith.constant dense<0.000000e+00> : vector<8x8xf32>
    %525 = tpu.matmul %523, %524, %cst_297 {dimension_numbers = #tpu.dot_dimension_numbers<[1], [1], [0], [0], [0, 0, 1, 0], [], []>} : vector<8x8xbf16>, vector<8x8xbf16>, vector<8x8xf32> -> vector<8x8xf32>
    %cst_298 = arith.constant 0.353553385 : f32
    %526 = vector.broadcast %cst_298 : f32 to vector<8x8xf32>
    %527 = arith.mulf %525, %526 : vector<8x8xf32>
    %cst_299 = arith.constant -1.000000e+09 : f32
    %528 = vector.broadcast %cst_299 : f32 to vector<8x8xf32>
    %529 = arith.select %7, %527, %528 : vector<8x8xi1>, vector<8x8xf32>
    %cst_300 = arith.constant dense<0xFF800000> : vector<8xf32>
    %530 = vector.multi_reduction <maximumf>, %529, %cst_300 [1] : vector<8x8xf32> to vector<8xf32>
    %531 = vector.shape_cast %530 : vector<8xf32> to vector<8x1xf32>
    %532 = vector.broadcast %531 : vector<8x1xf32> to vector<8x8xf32>
    %533 = arith.subf %529, %532 : vector<8x8xf32>
    %534 = math.exp %533 : vector<8x8xf32>
    %cst_301 = arith.constant dense<0.000000e+00> : vector<8xf32>
    %535 = vector.multi_reduction <add>, %534, %cst_301 [1] : vector<8x8xf32> to vector<8xf32>
    %536 = vector.shape_cast %535 : vector<8xf32> to vector<8x1xf32>
    %537 = vector.broadcast %536 : vector<8x1xf32> to vector<8x8xf32>
    %538 = arith.divf %534, %537 : vector<8x8xf32>
    %539 = vector.extract_strided_slice %446 {offsets = [0, 0], sizes = [8, 8], strides = [1, 1]} : vector<16x8xf32> to vector<8x8xf32>
    %540 = arith.truncf %538 : vector<8x8xf32> to vector<8x8xbf16>
    %541 = arith.truncf %539 : vector<8x8xf32> to vector<8x8xbf16>
    %cst_302 = arith.constant dense<0.000000e+00> : vector<8x8xf32>
    %542 = tpu.matmul %540, %541, %cst_302 {dimension_numbers = #tpu.dot_dimension_numbers<[1], [0], [0], [1], [0, 0, 1, 1], [], []>} : vector<8x8xbf16>, vector<8x8xbf16>, vector<8x8xf32> -> vector<8x8xf32>
    %c5_303 = arith.constant 5 : index
    %c0_304 = arith.constant 0 : index
    %c0_305 = arith.constant 0 : index
    %543 = vector.load %arg8[%c5_303, %c0_304, %c0_305] : memref<8x8x32xbf16, #tpu.memory_space<vmem>>, vector<1x8x32xbf16>
    %544 = vector.shape_cast %543 : vector<1x8x32xbf16> to vector<8x32xbf16>
    %545 = arith.truncf %542 : vector<8x8xf32> to vector<8x8xbf16>
    %cst_306 = arith.constant dense<0.000000e+00> : vector<8x32xf32>
    %546 = tpu.matmul %545, %544, %cst_306 {dimension_numbers = #tpu.dot_dimension_numbers<[1], [0], [0], [1], [0, 0, 1, 1], [], []>} : vector<8x8xbf16>, vector<8x32xbf16>, vector<8x32xf32> -> vector<8x32xf32>
    %547 = arith.addf %520, %546 : vector<8x32xf32>
    %548 = vector.extract_strided_slice %454 {offsets = [0, 0], sizes = [8, 8], strides = [1, 1]} : vector<16x8xf32> to vector<8x8xf32>
    %549 = vector.extract_strided_slice %462 {offsets = [0, 0], sizes = [8, 8], strides = [1, 1]} : vector<16x8xf32> to vector<8x8xf32>
    %550 = arith.truncf %548 : vector<8x8xf32> to vector<8x8xbf16>
    %551 = arith.truncf %549 : vector<8x8xf32> to vector<8x8xbf16>
    %cst_307 = arith.constant dense<0.000000e+00> : vector<8x8xf32>
    %552 = tpu.matmul %550, %551, %cst_307 {dimension_numbers = #tpu.dot_dimension_numbers<[1], [1], [0], [0], [0, 0, 1, 0], [], []>} : vector<8x8xbf16>, vector<8x8xbf16>, vector<8x8xf32> -> vector<8x8xf32>
    %cst_308 = arith.constant 0.353553385 : f32
    %553 = vector.broadcast %cst_308 : f32 to vector<8x8xf32>
    %554 = arith.mulf %552, %553 : vector<8x8xf32>
    %cst_309 = arith.constant -1.000000e+09 : f32
    %555 = vector.broadcast %cst_309 : f32 to vector<8x8xf32>
    %556 = arith.select %7, %554, %555 : vector<8x8xi1>, vector<8x8xf32>
    %cst_310 = arith.constant dense<0xFF800000> : vector<8xf32>
    %557 = vector.multi_reduction <maximumf>, %556, %cst_310 [1] : vector<8x8xf32> to vector<8xf32>
    %558 = vector.shape_cast %557 : vector<8xf32> to vector<8x1xf32>
    %559 = vector.broadcast %558 : vector<8x1xf32> to vector<8x8xf32>
    %560 = arith.subf %556, %559 : vector<8x8xf32>
    %561 = math.exp %560 : vector<8x8xf32>
    %cst_311 = arith.constant dense<0.000000e+00> : vector<8xf32>
    %562 = vector.multi_reduction <add>, %561, %cst_311 [1] : vector<8x8xf32> to vector<8xf32>
    %563 = vector.shape_cast %562 : vector<8xf32> to vector<8x1xf32>
    %564 = vector.broadcast %563 : vector<8x1xf32> to vector<8x8xf32>
    %565 = arith.divf %561, %564 : vector<8x8xf32>
    %566 = vector.extract_strided_slice %470 {offsets = [0, 0], sizes = [8, 8], strides = [1, 1]} : vector<16x8xf32> to vector<8x8xf32>
    %567 = arith.truncf %565 : vector<8x8xf32> to vector<8x8xbf16>
    %568 = arith.truncf %566 : vector<8x8xf32> to vector<8x8xbf16>
    %cst_312 = arith.constant dense<0.000000e+00> : vector<8x8xf32>
    %569 = tpu.matmul %567, %568, %cst_312 {dimension_numbers = #tpu.dot_dimension_numbers<[1], [0], [0], [1], [0, 0, 1, 1], [], []>} : vector<8x8xbf16>, vector<8x8xbf16>, vector<8x8xf32> -> vector<8x8xf32>
    %c6_313 = arith.constant 6 : index
    %c0_314 = arith.constant 0 : index
    %c0_315 = arith.constant 0 : index
    %570 = vector.load %arg8[%c6_313, %c0_314, %c0_315] : memref<8x8x32xbf16, #tpu.memory_space<vmem>>, vector<1x8x32xbf16>
    %571 = vector.shape_cast %570 : vector<1x8x32xbf16> to vector<8x32xbf16>
    %572 = arith.truncf %569 : vector<8x8xf32> to vector<8x8xbf16>
    %cst_316 = arith.constant dense<0.000000e+00> : vector<8x32xf32>
    %573 = tpu.matmul %572, %571, %cst_316 {dimension_numbers = #tpu.dot_dimension_numbers<[1], [0], [0], [1], [0, 0, 1, 1], [], []>} : vector<8x8xbf16>, vector<8x32xbf16>, vector<8x32xf32> -> vector<8x32xf32>
    %574 = arith.addf %547, %573 : vector<8x32xf32>
    %575 = vector.extract_strided_slice %478 {offsets = [0, 0], sizes = [8, 8], strides = [1, 1]} : vector<16x8xf32> to vector<8x8xf32>
    %576 = vector.extract_strided_slice %486 {offsets = [0, 0], sizes = [8, 8], strides = [1, 1]} : vector<16x8xf32> to vector<8x8xf32>
    %577 = arith.truncf %575 : vector<8x8xf32> to vector<8x8xbf16>
    %578 = arith.truncf %576 : vector<8x8xf32> to vector<8x8xbf16>
    %cst_317 = arith.constant dense<0.000000e+00> : vector<8x8xf32>
    %579 = tpu.matmul %577, %578, %cst_317 {dimension_numbers = #tpu.dot_dimension_numbers<[1], [1], [0], [0], [0, 0, 1, 0], [], []>} : vector<8x8xbf16>, vector<8x8xbf16>, vector<8x8xf32> -> vector<8x8xf32>
    %cst_318 = arith.constant 0.353553385 : f32
    %580 = vector.broadcast %cst_318 : f32 to vector<8x8xf32>
    %581 = arith.mulf %579, %580 : vector<8x8xf32>
    %cst_319 = arith.constant -1.000000e+09 : f32
    %582 = vector.broadcast %cst_319 : f32 to vector<8x8xf32>
    %583 = arith.select %7, %581, %582 : vector<8x8xi1>, vector<8x8xf32>
    %cst_320 = arith.constant dense<0xFF800000> : vector<8xf32>
    %584 = vector.multi_reduction <maximumf>, %583, %cst_320 [1] : vector<8x8xf32> to vector<8xf32>
    %585 = vector.shape_cast %584 : vector<8xf32> to vector<8x1xf32>
    %586 = vector.broadcast %585 : vector<8x1xf32> to vector<8x8xf32>
    %587 = arith.subf %583, %586 : vector<8x8xf32>
    %588 = math.exp %587 : vector<8x8xf32>
    %cst_321 = arith.constant dense<0.000000e+00> : vector<8xf32>
    %589 = vector.multi_reduction <add>, %588, %cst_321 [1] : vector<8x8xf32> to vector<8xf32>
    %590 = vector.shape_cast %589 : vector<8xf32> to vector<8x1xf32>
    %591 = vector.broadcast %590 : vector<8x1xf32> to vector<8x8xf32>
    %592 = arith.divf %588, %591 : vector<8x8xf32>
    %593 = vector.extract_strided_slice %494 {offsets = [0, 0], sizes = [8, 8], strides = [1, 1]} : vector<16x8xf32> to vector<8x8xf32>
    %594 = arith.truncf %592 : vector<8x8xf32> to vector<8x8xbf16>
    %595 = arith.truncf %593 : vector<8x8xf32> to vector<8x8xbf16>
    %cst_322 = arith.constant dense<0.000000e+00> : vector<8x8xf32>
    %596 = tpu.matmul %594, %595, %cst_322 {dimension_numbers = #tpu.dot_dimension_numbers<[1], [0], [0], [1], [0, 0, 1, 1], [], []>} : vector<8x8xbf16>, vector<8x8xbf16>, vector<8x8xf32> -> vector<8x8xf32>
    %c7_323 = arith.constant 7 : index
    %c0_324 = arith.constant 0 : index
    %c0_325 = arith.constant 0 : index
    %597 = vector.load %arg8[%c7_323, %c0_324, %c0_325] : memref<8x8x32xbf16, #tpu.memory_space<vmem>>, vector<1x8x32xbf16>
    %598 = vector.shape_cast %597 : vector<1x8x32xbf16> to vector<8x32xbf16>
    %599 = arith.truncf %596 : vector<8x8xf32> to vector<8x8xbf16>
    %cst_326 = arith.constant dense<0.000000e+00> : vector<8x32xf32>
    %600 = tpu.matmul %599, %598, %cst_326 {dimension_numbers = #tpu.dot_dimension_numbers<[1], [0], [0], [1], [0, 0, 1, 1], [], []>} : vector<8x8xbf16>, vector<8x32xbf16>, vector<8x32xf32> -> vector<8x32xf32>
    %601 = arith.addf %574, %600 : vector<8x32xf32>
    %c1_327 = arith.constant 1 : index
    %c0_328 = arith.constant 0 : index
    %c0_329 = arith.constant 0 : index
    %602 = vector.load %arg9[%c1_327, %c0_328, %c0_329] : memref<2x1x32xf32, #tpu.memory_space<vmem>>, vector<1x1x32xf32>
    %603 = vector.shape_cast %602 : vector<1x1x32xf32> to vector<1x32xf32>
    %604 = vector.broadcast %603 : vector<1x32xf32> to vector<8x32xf32>
    %605 = arith.addf %601, %604 : vector<8x32xf32>
    %606 = vector.extract_strided_slice %406 {offsets = [8, 0], sizes = [8, 8], strides = [1, 1]} : vector<16x8xf32> to vector<8x8xf32>
    %607 = vector.extract_strided_slice %414 {offsets = [8, 0], sizes = [8, 8], strides = [1, 1]} : vector<16x8xf32> to vector<8x8xf32>
    %608 = arith.truncf %606 : vector<8x8xf32> to vector<8x8xbf16>
    %609 = arith.truncf %607 : vector<8x8xf32> to vector<8x8xbf16>
    %cst_330 = arith.constant dense<0.000000e+00> : vector<8x8xf32>
    %610 = tpu.matmul %608, %609, %cst_330 {dimension_numbers = #tpu.dot_dimension_numbers<[1], [1], [0], [0], [0, 0, 1, 0], [], []>} : vector<8x8xbf16>, vector<8x8xbf16>, vector<8x8xf32> -> vector<8x8xf32>
    %cst_331 = arith.constant 0.353553385 : f32
    %611 = vector.broadcast %cst_331 : f32 to vector<8x8xf32>
    %612 = arith.mulf %610, %611 : vector<8x8xf32>
    %cst_332 = arith.constant -1.000000e+09 : f32
    %613 = vector.broadcast %cst_332 : f32 to vector<8x8xf32>
    %614 = arith.select %7, %612, %613 : vector<8x8xi1>, vector<8x8xf32>
    %cst_333 = arith.constant dense<0xFF800000> : vector<8xf32>
    %615 = vector.multi_reduction <maximumf>, %614, %cst_333 [1] : vector<8x8xf32> to vector<8xf32>
    %616 = vector.shape_cast %615 : vector<8xf32> to vector<8x1xf32>
    %617 = vector.broadcast %616 : vector<8x1xf32> to vector<8x8xf32>
    %618 = arith.subf %614, %617 : vector<8x8xf32>
    %619 = math.exp %618 : vector<8x8xf32>
    %cst_334 = arith.constant dense<0.000000e+00> : vector<8xf32>
    %620 = vector.multi_reduction <add>, %619, %cst_334 [1] : vector<8x8xf32> to vector<8xf32>
    %621 = vector.shape_cast %620 : vector<8xf32> to vector<8x1xf32>
    %622 = vector.broadcast %621 : vector<8x1xf32> to vector<8x8xf32>
    %623 = arith.divf %619, %622 : vector<8x8xf32>
    %624 = vector.extract_strided_slice %422 {offsets = [8, 0], sizes = [8, 8], strides = [1, 1]} : vector<16x8xf32> to vector<8x8xf32>
    %625 = arith.truncf %623 : vector<8x8xf32> to vector<8x8xbf16>
    %626 = arith.truncf %624 : vector<8x8xf32> to vector<8x8xbf16>
    %cst_335 = arith.constant dense<0.000000e+00> : vector<8x8xf32>
    %627 = tpu.matmul %625, %626, %cst_335 {dimension_numbers = #tpu.dot_dimension_numbers<[1], [0], [0], [1], [0, 0, 1, 1], [], []>} : vector<8x8xbf16>, vector<8x8xbf16>, vector<8x8xf32> -> vector<8x8xf32>
    %c4_336 = arith.constant 4 : index
    %c0_337 = arith.constant 0 : index
    %c0_338 = arith.constant 0 : index
    %628 = vector.load %arg8[%c4_336, %c0_337, %c0_338] : memref<8x8x32xbf16, #tpu.memory_space<vmem>>, vector<1x8x32xbf16>
    %629 = vector.shape_cast %628 : vector<1x8x32xbf16> to vector<8x32xbf16>
    %630 = arith.truncf %627 : vector<8x8xf32> to vector<8x8xbf16>
    %cst_339 = arith.constant dense<0.000000e+00> : vector<8x32xf32>
    %631 = tpu.matmul %630, %629, %cst_339 {dimension_numbers = #tpu.dot_dimension_numbers<[1], [0], [0], [1], [0, 0, 1, 1], [], []>} : vector<8x8xbf16>, vector<8x32xbf16>, vector<8x32xf32> -> vector<8x32xf32>
    %632 = vector.extract_strided_slice %430 {offsets = [8, 0], sizes = [8, 8], strides = [1, 1]} : vector<16x8xf32> to vector<8x8xf32>
    %633 = vector.extract_strided_slice %438 {offsets = [8, 0], sizes = [8, 8], strides = [1, 1]} : vector<16x8xf32> to vector<8x8xf32>
    %634 = arith.truncf %632 : vector<8x8xf32> to vector<8x8xbf16>
    %635 = arith.truncf %633 : vector<8x8xf32> to vector<8x8xbf16>
    %cst_340 = arith.constant dense<0.000000e+00> : vector<8x8xf32>
    %636 = tpu.matmul %634, %635, %cst_340 {dimension_numbers = #tpu.dot_dimension_numbers<[1], [1], [0], [0], [0, 0, 1, 0], [], []>} : vector<8x8xbf16>, vector<8x8xbf16>, vector<8x8xf32> -> vector<8x8xf32>
    %cst_341 = arith.constant 0.353553385 : f32
    %637 = vector.broadcast %cst_341 : f32 to vector<8x8xf32>
    %638 = arith.mulf %636, %637 : vector<8x8xf32>
    %cst_342 = arith.constant -1.000000e+09 : f32
    %639 = vector.broadcast %cst_342 : f32 to vector<8x8xf32>
    %640 = arith.select %7, %638, %639 : vector<8x8xi1>, vector<8x8xf32>
    %cst_343 = arith.constant dense<0xFF800000> : vector<8xf32>
    %641 = vector.multi_reduction <maximumf>, %640, %cst_343 [1] : vector<8x8xf32> to vector<8xf32>
    %642 = vector.shape_cast %641 : vector<8xf32> to vector<8x1xf32>
    %643 = vector.broadcast %642 : vector<8x1xf32> to vector<8x8xf32>
    %644 = arith.subf %640, %643 : vector<8x8xf32>
    %645 = math.exp %644 : vector<8x8xf32>
    %cst_344 = arith.constant dense<0.000000e+00> : vector<8xf32>
    %646 = vector.multi_reduction <add>, %645, %cst_344 [1] : vector<8x8xf32> to vector<8xf32>
    %647 = vector.shape_cast %646 : vector<8xf32> to vector<8x1xf32>
    %648 = vector.broadcast %647 : vector<8x1xf32> to vector<8x8xf32>
    %649 = arith.divf %645, %648 : vector<8x8xf32>
    %650 = vector.extract_strided_slice %446 {offsets = [8, 0], sizes = [8, 8], strides = [1, 1]} : vector<16x8xf32> to vector<8x8xf32>
    %651 = arith.truncf %649 : vector<8x8xf32> to vector<8x8xbf16>
    %652 = arith.truncf %650 : vector<8x8xf32> to vector<8x8xbf16>
    %cst_345 = arith.constant dense<0.000000e+00> : vector<8x8xf32>
    %653 = tpu.matmul %651, %652, %cst_345 {dimension_numbers = #tpu.dot_dimension_numbers<[1], [0], [0], [1], [0, 0, 1, 1], [], []>} : vector<8x8xbf16>, vector<8x8xbf16>, vector<8x8xf32> -> vector<8x8xf32>
    %c5_346 = arith.constant 5 : index
    %c0_347 = arith.constant 0 : index
    %c0_348 = arith.constant 0 : index
    %654 = vector.load %arg8[%c5_346, %c0_347, %c0_348] : memref<8x8x32xbf16, #tpu.memory_space<vmem>>, vector<1x8x32xbf16>
    %655 = vector.shape_cast %654 : vector<1x8x32xbf16> to vector<8x32xbf16>
    %656 = arith.truncf %653 : vector<8x8xf32> to vector<8x8xbf16>
    %cst_349 = arith.constant dense<0.000000e+00> : vector<8x32xf32>
    %657 = tpu.matmul %656, %655, %cst_349 {dimension_numbers = #tpu.dot_dimension_numbers<[1], [0], [0], [1], [0, 0, 1, 1], [], []>} : vector<8x8xbf16>, vector<8x32xbf16>, vector<8x32xf32> -> vector<8x32xf32>
    %658 = arith.addf %631, %657 : vector<8x32xf32>
    %659 = vector.extract_strided_slice %454 {offsets = [8, 0], sizes = [8, 8], strides = [1, 1]} : vector<16x8xf32> to vector<8x8xf32>
    %660 = vector.extract_strided_slice %462 {offsets = [8, 0], sizes = [8, 8], strides = [1, 1]} : vector<16x8xf32> to vector<8x8xf32>
    %661 = arith.truncf %659 : vector<8x8xf32> to vector<8x8xbf16>
    %662 = arith.truncf %660 : vector<8x8xf32> to vector<8x8xbf16>
    %cst_350 = arith.constant dense<0.000000e+00> : vector<8x8xf32>
    %663 = tpu.matmul %661, %662, %cst_350 {dimension_numbers = #tpu.dot_dimension_numbers<[1], [1], [0], [0], [0, 0, 1, 0], [], []>} : vector<8x8xbf16>, vector<8x8xbf16>, vector<8x8xf32> -> vector<8x8xf32>
    %cst_351 = arith.constant 0.353553385 : f32
    %664 = vector.broadcast %cst_351 : f32 to vector<8x8xf32>
    %665 = arith.mulf %663, %664 : vector<8x8xf32>
    %cst_352 = arith.constant -1.000000e+09 : f32
    %666 = vector.broadcast %cst_352 : f32 to vector<8x8xf32>
    %667 = arith.select %7, %665, %666 : vector<8x8xi1>, vector<8x8xf32>
    %cst_353 = arith.constant dense<0xFF800000> : vector<8xf32>
    %668 = vector.multi_reduction <maximumf>, %667, %cst_353 [1] : vector<8x8xf32> to vector<8xf32>
    %669 = vector.shape_cast %668 : vector<8xf32> to vector<8x1xf32>
    %670 = vector.broadcast %669 : vector<8x1xf32> to vector<8x8xf32>
    %671 = arith.subf %667, %670 : vector<8x8xf32>
    %672 = math.exp %671 : vector<8x8xf32>
    %cst_354 = arith.constant dense<0.000000e+00> : vector<8xf32>
    %673 = vector.multi_reduction <add>, %672, %cst_354 [1] : vector<8x8xf32> to vector<8xf32>
    %674 = vector.shape_cast %673 : vector<8xf32> to vector<8x1xf32>
    %675 = vector.broadcast %674 : vector<8x1xf32> to vector<8x8xf32>
    %676 = arith.divf %672, %675 : vector<8x8xf32>
    %677 = vector.extract_strided_slice %470 {offsets = [8, 0], sizes = [8, 8], strides = [1, 1]} : vector<16x8xf32> to vector<8x8xf32>
    %678 = arith.truncf %676 : vector<8x8xf32> to vector<8x8xbf16>
    %679 = arith.truncf %677 : vector<8x8xf32> to vector<8x8xbf16>
    %cst_355 = arith.constant dense<0.000000e+00> : vector<8x8xf32>
    %680 = tpu.matmul %678, %679, %cst_355 {dimension_numbers = #tpu.dot_dimension_numbers<[1], [0], [0], [1], [0, 0, 1, 1], [], []>} : vector<8x8xbf16>, vector<8x8xbf16>, vector<8x8xf32> -> vector<8x8xf32>
    %c6_356 = arith.constant 6 : index
    %c0_357 = arith.constant 0 : index
    %c0_358 = arith.constant 0 : index
    %681 = vector.load %arg8[%c6_356, %c0_357, %c0_358] : memref<8x8x32xbf16, #tpu.memory_space<vmem>>, vector<1x8x32xbf16>
    %682 = vector.shape_cast %681 : vector<1x8x32xbf16> to vector<8x32xbf16>
    %683 = arith.truncf %680 : vector<8x8xf32> to vector<8x8xbf16>
    %cst_359 = arith.constant dense<0.000000e+00> : vector<8x32xf32>
    %684 = tpu.matmul %683, %682, %cst_359 {dimension_numbers = #tpu.dot_dimension_numbers<[1], [0], [0], [1], [0, 0, 1, 1], [], []>} : vector<8x8xbf16>, vector<8x32xbf16>, vector<8x32xf32> -> vector<8x32xf32>
    %685 = arith.addf %658, %684 : vector<8x32xf32>
    %686 = vector.extract_strided_slice %478 {offsets = [8, 0], sizes = [8, 8], strides = [1, 1]} : vector<16x8xf32> to vector<8x8xf32>
    %687 = vector.extract_strided_slice %486 {offsets = [8, 0], sizes = [8, 8], strides = [1, 1]} : vector<16x8xf32> to vector<8x8xf32>
    %688 = arith.truncf %686 : vector<8x8xf32> to vector<8x8xbf16>
    %689 = arith.truncf %687 : vector<8x8xf32> to vector<8x8xbf16>
    %cst_360 = arith.constant dense<0.000000e+00> : vector<8x8xf32>
    %690 = tpu.matmul %688, %689, %cst_360 {dimension_numbers = #tpu.dot_dimension_numbers<[1], [1], [0], [0], [0, 0, 1, 0], [], []>} : vector<8x8xbf16>, vector<8x8xbf16>, vector<8x8xf32> -> vector<8x8xf32>
    %cst_361 = arith.constant 0.353553385 : f32
    %691 = vector.broadcast %cst_361 : f32 to vector<8x8xf32>
    %692 = arith.mulf %690, %691 : vector<8x8xf32>
    %cst_362 = arith.constant -1.000000e+09 : f32
    %693 = vector.broadcast %cst_362 : f32 to vector<8x8xf32>
    %694 = arith.select %7, %692, %693 : vector<8x8xi1>, vector<8x8xf32>
    %cst_363 = arith.constant dense<0xFF800000> : vector<8xf32>
    %695 = vector.multi_reduction <maximumf>, %694, %cst_363 [1] : vector<8x8xf32> to vector<8xf32>
    %696 = vector.shape_cast %695 : vector<8xf32> to vector<8x1xf32>
    %697 = vector.broadcast %696 : vector<8x1xf32> to vector<8x8xf32>
    %698 = arith.subf %694, %697 : vector<8x8xf32>
    %699 = math.exp %698 : vector<8x8xf32>
    %cst_364 = arith.constant dense<0.000000e+00> : vector<8xf32>
    %700 = vector.multi_reduction <add>, %699, %cst_364 [1] : vector<8x8xf32> to vector<8xf32>
    %701 = vector.shape_cast %700 : vector<8xf32> to vector<8x1xf32>
    %702 = vector.broadcast %701 : vector<8x1xf32> to vector<8x8xf32>
    %703 = arith.divf %699, %702 : vector<8x8xf32>
    %704 = vector.extract_strided_slice %494 {offsets = [8, 0], sizes = [8, 8], strides = [1, 1]} : vector<16x8xf32> to vector<8x8xf32>
    %705 = arith.truncf %703 : vector<8x8xf32> to vector<8x8xbf16>
    %706 = arith.truncf %704 : vector<8x8xf32> to vector<8x8xbf16>
    %cst_365 = arith.constant dense<0.000000e+00> : vector<8x8xf32>
    %707 = tpu.matmul %705, %706, %cst_365 {dimension_numbers = #tpu.dot_dimension_numbers<[1], [0], [0], [1], [0, 0, 1, 1], [], []>} : vector<8x8xbf16>, vector<8x8xbf16>, vector<8x8xf32> -> vector<8x8xf32>
    %c7_366 = arith.constant 7 : index
    %c0_367 = arith.constant 0 : index
    %c0_368 = arith.constant 0 : index
    %708 = vector.load %arg8[%c7_366, %c0_367, %c0_368] : memref<8x8x32xbf16, #tpu.memory_space<vmem>>, vector<1x8x32xbf16>
    %709 = vector.shape_cast %708 : vector<1x8x32xbf16> to vector<8x32xbf16>
    %710 = arith.truncf %707 : vector<8x8xf32> to vector<8x8xbf16>
    %cst_369 = arith.constant dense<0.000000e+00> : vector<8x32xf32>
    %711 = tpu.matmul %710, %709, %cst_369 {dimension_numbers = #tpu.dot_dimension_numbers<[1], [0], [0], [1], [0, 0, 1, 1], [], []>} : vector<8x8xbf16>, vector<8x32xbf16>, vector<8x32xf32> -> vector<8x32xf32>
    %712 = arith.addf %685, %711 : vector<8x32xf32>
    %c1_370 = arith.constant 1 : index
    %c0_371 = arith.constant 0 : index
    %c0_372 = arith.constant 0 : index
    %713 = vector.load %arg9[%c1_370, %c0_371, %c0_372] : memref<2x1x32xf32, #tpu.memory_space<vmem>>, vector<1x1x32xf32>
    %714 = vector.shape_cast %713 : vector<1x1x32xf32> to vector<1x32xf32>
    %715 = vector.broadcast %714 : vector<1x32xf32> to vector<8x32xf32>
    %716 = arith.addf %712, %715 : vector<8x32xf32>
    %717 = tpu.concatenate %605, %716 in 0 : vector<8x32xf32>, vector<8x32xf32> -> vector<16x32xf32>
    %718 = arith.addf %717, %398 : vector<16x32xf32>
    %c1_373 = arith.constant 1 : index
    %c0_374 = arith.constant 0 : index
    %c0_375 = arith.constant 0 : index
    %719 = vector.load %arg14[%c1_373, %c0_374, %c0_375] : memref<2x1x32xf32, #tpu.memory_space<vmem>>, vector<1x1x32xf32>
    %720 = vector.shape_cast %719 : vector<1x1x32xf32> to vector<1x32xf32>
    %c1_376 = arith.constant 1 : index
    %c0_377 = arith.constant 0 : index
    %c0_378 = arith.constant 0 : index
    %721 = vector.load %arg15[%c1_376, %c0_377, %c0_378] : memref<2x1x32xf32, #tpu.memory_space<vmem>>, vector<1x1x32xf32>
    %722 = vector.shape_cast %721 : vector<1x1x32xf32> to vector<1x32xf32>
    %cst_379 = arith.constant dense<0.000000e+00> : vector<16xf32>
    %723 = vector.multi_reduction <add>, %718, %cst_379 [1] : vector<16x32xf32> to vector<16xf32>
    %724 = vector.shape_cast %723 : vector<16xf32> to vector<16x1xf32>
    %cst_380 = arith.constant 3.200000e+01 : f32
    %725 = vector.broadcast %cst_380 : f32 to vector<16x1xf32>
    %726 = arith.divf %724, %725 : vector<16x1xf32>
    %727 = vector.broadcast %726 : vector<16x1xf32> to vector<16x32xf32>
    %728 = arith.subf %718, %727 : vector<16x32xf32>
    %729 = arith.mulf %728, %728 : vector<16x32xf32>
    %cst_381 = arith.constant dense<0.000000e+00> : vector<16xf32>
    %730 = vector.multi_reduction <add>, %729, %cst_381 [1] : vector<16x32xf32> to vector<16xf32>
    %731 = vector.shape_cast %730 : vector<16xf32> to vector<16x1xf32>
    %cst_382 = arith.constant 3.200000e+01 : f32
    %732 = vector.broadcast %cst_382 : f32 to vector<16x1xf32>
    %733 = arith.divf %731, %732 : vector<16x1xf32>
    %734 = vector.broadcast %726 : vector<16x1xf32> to vector<16x32xf32>
    %735 = arith.subf %718, %734 : vector<16x32xf32>
    %cst_383 = arith.constant 9.99999974E-6 : f32
    %736 = vector.broadcast %cst_383 : f32 to vector<16x1xf32>
    %737 = arith.addf %733, %736 : vector<16x1xf32>
    %738 = math.rsqrt %737 : vector<16x1xf32>
    %739 = vector.broadcast %738 : vector<16x1xf32> to vector<16x32xf32>
    %740 = arith.mulf %735, %739 : vector<16x32xf32>
    %741 = vector.broadcast %720 : vector<1x32xf32> to vector<16x32xf32>
    %742 = arith.mulf %740, %741 : vector<16x32xf32>
    %743 = vector.broadcast %722 : vector<1x32xf32> to vector<16x32xf32>
    %744 = arith.addf %742, %743 : vector<16x32xf32>
    %c1_384 = arith.constant 1 : index
    %c0_385 = arith.constant 0 : index
    %c0_386 = arith.constant 0 : index
    %745 = vector.load %arg10[%c1_384, %c0_385, %c0_386] : memref<2x32x64xbf16, #tpu.memory_space<vmem>>, vector<1x32x64xbf16>
    %746 = vector.shape_cast %745 : vector<1x32x64xbf16> to vector<32x64xbf16>
    %747 = arith.truncf %744 : vector<16x32xf32> to vector<16x32xbf16>
    %cst_387 = arith.constant dense<0.000000e+00> : vector<16x64xf32>
    %748 = tpu.matmul %747, %746, %cst_387 {dimension_numbers = #tpu.dot_dimension_numbers<[1], [0], [0], [1], [0, 0, 1, 1], [], []>} : vector<16x32xbf16>, vector<32x64xbf16>, vector<16x64xf32> -> vector<16x64xf32>
    %c1_388 = arith.constant 1 : index
    %c0_389 = arith.constant 0 : index
    %c0_390 = arith.constant 0 : index
    %749 = vector.load %arg11[%c1_388, %c0_389, %c0_390] : memref<2x1x64xf32, #tpu.memory_space<vmem>>, vector<1x1x64xf32>
    %750 = vector.shape_cast %749 : vector<1x1x64xf32> to vector<1x64xf32>
    %751 = vector.broadcast %750 : vector<1x64xf32> to vector<16x64xf32>
    %752 = arith.addf %748, %751 : vector<16x64xf32>
    %cst_391 = arith.constant 0.000000e+00 : f32
    %753 = vector.broadcast %cst_391 : f32 to vector<16x64xf32>
    %754 = arith.maximumf %752, %753 : vector<16x64xf32>
    %c1_392 = arith.constant 1 : index
    %c0_393 = arith.constant 0 : index
    %c0_394 = arith.constant 0 : index
    %755 = vector.load %arg12[%c1_392, %c0_393, %c0_394] : memref<2x64x32xbf16, #tpu.memory_space<vmem>>, vector<1x64x32xbf16>
    %756 = vector.shape_cast %755 : vector<1x64x32xbf16> to vector<64x32xbf16>
    %757 = arith.truncf %754 : vector<16x64xf32> to vector<16x64xbf16>
    %cst_395 = arith.constant dense<0.000000e+00> : vector<16x32xf32>
    %758 = tpu.matmul %757, %756, %cst_395 {dimension_numbers = #tpu.dot_dimension_numbers<[1], [0], [0], [1], [0, 0, 1, 1], [], []>} : vector<16x64xbf16>, vector<64x32xbf16>, vector<16x32xf32> -> vector<16x32xf32>
    %c1_396 = arith.constant 1 : index
    %c0_397 = arith.constant 0 : index
    %c0_398 = arith.constant 0 : index
    %759 = vector.load %arg13[%c1_396, %c0_397, %c0_398] : memref<2x1x32xf32, #tpu.memory_space<vmem>>, vector<1x1x32xf32>
    %760 = vector.shape_cast %759 : vector<1x1x32xf32> to vector<1x32xf32>
    %761 = vector.broadcast %760 : vector<1x32xf32> to vector<16x32xf32>
    %762 = arith.addf %758, %761 : vector<16x32xf32>
    %763 = arith.addf %762, %744 : vector<16x32xf32>
    %c1_399 = arith.constant 1 : index
    %c0_400 = arith.constant 0 : index
    %c0_401 = arith.constant 0 : index
    %764 = vector.load %arg16[%c1_399, %c0_400, %c0_401] : memref<2x1x32xf32, #tpu.memory_space<vmem>>, vector<1x1x32xf32>
    %765 = vector.shape_cast %764 : vector<1x1x32xf32> to vector<1x32xf32>
    %c1_402 = arith.constant 1 : index
    %c0_403 = arith.constant 0 : index
    %c0_404 = arith.constant 0 : index
    %766 = vector.load %arg17[%c1_402, %c0_403, %c0_404] : memref<2x1x32xf32, #tpu.memory_space<vmem>>, vector<1x1x32xf32>
    %767 = vector.shape_cast %766 : vector<1x1x32xf32> to vector<1x32xf32>
    %cst_405 = arith.constant dense<0.000000e+00> : vector<16xf32>
    %768 = vector.multi_reduction <add>, %763, %cst_405 [1] : vector<16x32xf32> to vector<16xf32>
    %769 = vector.shape_cast %768 : vector<16xf32> to vector<16x1xf32>
    %cst_406 = arith.constant 3.200000e+01 : f32
    %770 = vector.broadcast %cst_406 : f32 to vector<16x1xf32>
    %771 = arith.divf %769, %770 : vector<16x1xf32>
    %772 = vector.broadcast %771 : vector<16x1xf32> to vector<16x32xf32>
    %773 = arith.subf %763, %772 : vector<16x32xf32>
    %774 = arith.mulf %773, %773 : vector<16x32xf32>
    %cst_407 = arith.constant dense<0.000000e+00> : vector<16xf32>
    %775 = vector.multi_reduction <add>, %774, %cst_407 [1] : vector<16x32xf32> to vector<16xf32>
    %776 = vector.shape_cast %775 : vector<16xf32> to vector<16x1xf32>
    %cst_408 = arith.constant 3.200000e+01 : f32
    %777 = vector.broadcast %cst_408 : f32 to vector<16x1xf32>
    %778 = arith.divf %776, %777 : vector<16x1xf32>
    %779 = vector.broadcast %771 : vector<16x1xf32> to vector<16x32xf32>
    %780 = arith.subf %763, %779 : vector<16x32xf32>
    %cst_409 = arith.constant 9.99999974E-6 : f32
    %781 = vector.broadcast %cst_409 : f32 to vector<16x1xf32>
    %782 = arith.addf %778, %781 : vector<16x1xf32>
    %783 = math.rsqrt %782 : vector<16x1xf32>
    %784 = vector.broadcast %783 : vector<16x1xf32> to vector<16x32xf32>
    %785 = arith.mulf %780, %784 : vector<16x32xf32>
    %786 = vector.broadcast %765 : vector<1x32xf32> to vector<16x32xf32>
    %787 = arith.mulf %785, %786 : vector<16x32xf32>
    %788 = vector.broadcast %767 : vector<1x32xf32> to vector<16x32xf32>
    %789 = arith.addf %787, %788 : vector<16x32xf32>
    %c0_410 = arith.constant 0 : index
    %c0_411 = arith.constant 0 : index
    %790 = vector.load %arg18[%c0_410, %c0_411] : memref<32x10xbf16, #tpu.memory_space<vmem>>, vector<32x10xbf16>
    %791 = arith.truncf %789 : vector<16x32xf32> to vector<16x32xbf16>
    %cst_412 = arith.constant dense<0.000000e+00> : vector<16x10xf32>
    %792 = tpu.matmul %791, %790, %cst_412 {dimension_numbers = #tpu.dot_dimension_numbers<[1], [0], [0], [1], [0, 0, 1, 1], [], []>} : vector<16x32xbf16>, vector<32x10xbf16>, vector<16x10xf32> -> vector<16x10xf32>
    %c0_413 = arith.constant 0 : index
    %c0_414 = arith.constant 0 : index
    %793 = vector.load %arg19[%c0_413, %c0_414] : memref<1x10xf32, #tpu.memory_space<vmem>>, vector<1x10xf32>
    %794 = vector.broadcast %793 : vector<1x10xf32> to vector<16x10xf32>
    %795 = arith.addf %792, %794 : vector<16x10xf32>
    %796 = vector.extract_strided_slice %795 {offsets = [0, 0], sizes = [8, 10], strides = [1, 1]} : vector<16x10xf32> to vector<8x10xf32>
    %797 = vector.extract_strided_slice %795 {offsets = [8, 0], sizes = [8, 10], strides = [1, 1]} : vector<16x10xf32> to vector<8x10xf32>
    %798 = arith.maximumf %796, %797 : vector<8x10xf32>
    %799 = arith.subf %796, %798 : vector<8x10xf32>
    %800 = math.exp %799 : vector<8x10xf32>
    %801 = arith.subf %797, %798 : vector<8x10xf32>
    %802 = math.exp %801 : vector<8x10xf32>
    %803 = arith.addf %800, %802 : vector<8x10xf32>
    %cst_415 = arith.constant 1.000000e+00 : f32
    %804 = vector.broadcast %cst_415 : f32 to vector<8x10xf32>
    %805 = arith.divf %804, %803 : vector<8x10xf32>
    %806 = arith.mulf %800, %805 : vector<8x10xf32>
    %807 = arith.mulf %802, %805 : vector<8x10xf32>
    %808 = tpu.concatenate %806, %807 in 1 : vector<8x10xf32>, vector<8x10xf32> -> vector<8x20xf32>
    %c0_416 = arith.constant 0 : index
    %c0_417 = arith.constant 0 : index
    %809 = vector.load %arg20[%c0_416, %c0_417] : memref<8x20xf32, #tpu.memory_space<vmem>>, vector<8x20xf32>
    tpu.vector_store %arg20[%c0_416, %c0_417], %808 {strides = array<i32>} : memref<8x20xf32, #tpu.memory_space<vmem>>, vector<8x20xf32>,
    return
  }
}

</mosaic_0001>

<bundles_post_ra>
// kernel: forward.1
= control target key start
LH: loop header
LB: loop body
LE: loop exit
PB: predicated region body
PF: predicated region fallthrough
CT: control target
= control target key end

     0   :  { %v5951_v0 = vmov 0.0   ;;  %vm5952_vm0 = vmmov 0   ;;  %vm103_vm1 = vcmask 261120   ;;  %vm872_vm2 = vcmask 64512   ;;  %s7151_s2 = inlined_call_operand.vmem [shape: bf16[8,32,8], index: 2, kind: input, shape index: {}]   ;;  %s7152_s4 = inlined_call_operand.vmem [shape: bf16[8,32,8], index: 4, kind: input, shape index: {}]   ;;  %s7153_s0 = inlined_call_operand.vmem [shape: f32[16,32], index: 0, kind: input, shape index: {}]   ;;  %s7154_s1 = inlined_call_operand.vmem [shape: f32[16,32], index: 1, kind: input, shape index: {}]   ;;  %s7155_s6 = inlined_call_operand.vmem [shape: bf16[8,32,8], index: 6, kind: input, shape index: {}]   ;;  %s7156_s5 = inlined_call_operand.vmem [shape: f32[8,1,8], index: 5, kind: input, shape index: {}]   ;;  %s7157_s3 = inlined_call_operand.vmem [shape: f32[8,1,8], index: 3, kind: input, shape index: {}]   ;;  %s7158_s7 = inlined_call_operand.vmem [shape: f32[8,1,8], index: 7, kind: input, shape index: {}]   ;;  %s7159_s8 = inlined_call_operand.vmem [shape: bf16[8,8,32], index: 8, kind: input, shape index: {}]   ;;  %s7160_s9 = inlined_call_operand.vmem [shape: f32[2,1,32], index: 9, kind: input, shape index: {}]   ;;  %s7161_s10 = inlined_call_operand.vmem [shape: bf16[2,32,64], index: 10, kind: input, shape index: {}]   ;;  %s7162_s12 = inlined_call_operand.vmem [shape: bf16[2,64,32], index: 12, kind: input, shape index: {}]   ;;  %s7163_s14 = inlined_call_operand.vmem [shape: f32[2,1,32], index: 14, kind: input, shape index: {}]   ;;  %s7164_s15 = inlined_call_operand.vmem [shape: f32[2,1,32], index: 15, kind: input, shape index: {}]   ;;  %s7165_s11 = inlined_call_operand.vmem [shape: f32[2,1,64], index: 11, kind: input, shape index: {}]   ;;  %s7166_s13 = inlined_call_operand.vmem [shape: f32[2,1,32], index: 13, kind: input, shape index: {}]   ;;  %s7167_s16 = inlined_call_operand.vmem [shape: f32[2,1,32], index: 16, kind: input, shape index: {}]   ;;  %s7168_s17 = inlined_call_operand.vmem [shape: f32[2,1,32], index: 17, kind: input, shape index: {}]   ;;  %s7169_s18 = inlined_call_operand.vmem [shape: bf16[32,10], index: 18, kind: input, shape index: {}]   ;;  %s7170_s19 = inlined_call_operand.vmem [shape: f32[1,10], index: 19, kind: input, shape index: {}]   ;;  %s7171_s20 = inlined_call_operand.vmem [shape: f32[8,20], index: 20, kind: output, shape index: {}]  }
   0x1   :  { %7177 = sst [smem:[#allocation2_spill]] %s7151_s2  ;;  %5272 = vmatprep.subr.bf16.mxu0 %v5951_v0  ;;  %5280 = vmatprep.subr.bf16.mxu1 %v5951_v0  ;;  %v4780_v34 = vld [vmem:[%s7156_s5] ss:$0 sm:$0xff]  ;;  %vm937_vm3 = vcmask 1043456   ;;  %v4793_v55 = vld [vmem:[%s7157_s3 + $0x1] ss:$0 sm:$0xff] }
   0x2   :  { %7178 = sst [smem:[#allocation3_spill]] %s7152_s4  ;;  %s7182_s23 = sld [smem:[#allocation2_spill]]  ;;  %5276 = vmatprep.mubr.msk.bf16.mxu0 %vm5952_vm0, %v5951_v0  ;;  %5284 = vmatprep.mubr.msk.bf16.mxu1 %vm5952_vm0, %v5951_v0  ;;  %v4776_v40 = vld [vmem:[%s7157_s3] ss:$0 sm:$0xff]  ;;  %vm2285_vm5 = vcmask 523264   ;;  %vm4768_vm6 = vcmask 80896  }
   0x3   :  { %7179 = sst [smem:[#allocation4_spill]] %s7153_s0  ;;  %s7183_s25 = sld [smem:[#allocation3_spill]]  ;;  %v4784_v49 = vld [vmem:[%s7158_s7] ss:$0 sm:$0xff]  ;;  %vm4770_vm7 = vcmask 162816  }
   0x4   :  { %7180 = sst [smem:[#allocation5_spill]] %s7154_s1  ;;  %s7184_s30 = sld [smem:[#allocation4_spill]] }
   0x5   :  { %7181 = sst [smem:[#allocation6_spill]] %s7155_s6  ;;  %s7185_s24 = sld [smem:[#allocation5_spill]] }
   0x6   :  { %s7186_s28 = sld [smem:[#allocation6_spill]] }
   0x8   :  { %v5803_v1 = vld [vmem:[%s7182_s23] sm:$0xff]   ;;  %v5805_v3 = vld [vmem:[%s7182_s23 + $0x8] sm:$0xff]   ;;  %v5811_v15 = vld [vmem:[%s7182_s23 + $0x10] sm:$0xff]  }
   0x9   :  { %v5804_v2 = vld [vmem:[%s7183_s25] sm:$0xff]   ;;  %5273 = vmatpush3.bf16.msra.mxu0 %v5803_v1  ;;  %v5806_v4 = vld [vmem:[%s7183_s25 + $0x8] sm:$0xff]   ;;  %v5812_v17 = vld [vmem:[%s7182_s23 + $0x18] sm:$0xff]  }
   0xa   :  { %5281 = vmatpush3.bf16.msra.mxu1 %v5804_v2  ;;  %5274 = vmatprep.subr.bf16.mxu0 %v5951_v0  ;;  %v66_v5 = vld [vmem:[%s7184_s30] sm:$0xff]  ;;  %v67_v6 = vld [vmem:[%s7184_s30 + $0x8] sm:$0xff]  ;;  %v5809_v18 = vld [vmem:[%s7183_s25 + $0x10] sm:$0xff]  }
   0xb   :  { %5282 = vmatprep.subr.bf16.mxu1 %v5951_v0  ;;  %v70_v7 = vld [vmem:[%s7185_s24] sm:$0xff]  ;;  %v68_v8 = vmul.f32 5.656854, %v66_v5  ;;  %v69_v9 = vmul.f32 5.656854, %v67_v6  ;;  %v71_v10 = vld [vmem:[%s7185_s24 + $0x8] sm:$0xff] }
   0xc   :  { %v5807_v13 = vld [vmem:[%s7186_s28] sm:$0xff]   ;;  %v5808_v16 = vld [vmem:[%s7186_s28 + $0x8] sm:$0xff]   ;;  %v5815_v19 = vld [vmem:[%s7186_s28 + $0x10] sm:$0xff]  }
   0xd   :  { %5275 = vmatpush3.bf16.msra.mxu0 %v5805_v3  ;;  %v6091_v11 = vadd.f32 %v70_v7, %v68_v8  ;;  %v6093_v12 = vadd.f32 %v71_v10, %v69_v9  ;;  %v5810_v20 = vld [vmem:[%s7183_s25 + $0x18] sm:$0xff]   ;;  %v5813_v21 = vld [vmem:[%s7182_s23 + $0x20] sm:$0xff]   ;;  %v5814_v24 = vld [vmem:[%s7182_s23 + $0x28] sm:$0xff]  }
   0xe   :  { %5283 = vmatpush3.bf16.msra.mxu1 %v5806_v4  ;;  %5288 = vmatprep.subr.bf16.mxu0 %v5951_v0  ;;  %v5817_v22 = vld [vmem:[%s7186_s28 + $0x18] sm:$0xff]   ;;  %v5819_v23 = vld [vmem:[%s7183_s25 + $0x20] sm:$0xff]   ;;  %v5821_v25 = vld [vmem:[%s7183_s25 + $0x28] sm:$0xff]  }
   0xf   :  { %5296 = vmatprep.subr.bf16.mxu1 %v5951_v0  ;;  %v6102_v14 = vpack.c.bf16 %v6093_v12, %v6091_v11  ;;  %v5816_v26 = vld [vmem:[%s7186_s28 + $0x20] sm:$0xff]   ;;  %v5823_v27 = vld [vmem:[%s7182_s23 + $0x30] sm:$0xff]   ;;  %v5818_v28 = vld [vmem:[%s7186_s28 + $0x28] sm:$0xff]  }
  0x10   :  { %v5820_v29 = vld [vmem:[%s7183_s25 + $0x30] sm:$0xff]   ;;  %v5822_v30 = vld [vmem:[%s7183_s25 + $0x38] sm:$0xff]   ;;  %v4802_v3 = vld [vmem:[%s7156_s5 + $0x1] ss:$0 sm:$0xff] }
  0x11   :  { %5277 = vmatmul.mubr.msk.bf16.vlgmr.msra.gmra.mrb[0].mxu0 %vm103_vm1, %v6102_v14  ;;  %5285 = vmatmul.mubr.msk.bf16.vlgmr.msra.gmra.mrb[0].mxu1 %vm103_vm1, %v6102_v14  ;;  %v5824_v31 = vld [vmem:[%s7182_s23 + $0x38] sm:$0xff]   ;;  %v5825_v32 = vld [vmem:[%s7186_s28 + $0x30] sm:$0xff]  }
  0x12   :  { %5289 = vmatpush3.bf16.msra.mxu0 %v5807_v13  ;;  %5292 = vmatprep.mubr.msk.bf16.mxu0 %vm5952_vm0, %v5951_v0  ;;  %v5826_v33 = vld [vmem:[%s7186_s28 + $0x38] sm:$0xff]  }
  0x13   :  { %5290 = vmatprep.subr.bf16.mxu0 %v5951_v0  ;;  %5297 = vmatpush3.bf16.msra.mxu1 %v5811_v15  ;;  %v6266_v15 = vld [vmem:[%s7157_s3 + $0x2] ss:$0 sm:$0xff] }
  0x14   :  { %5298 = vmatprep.subr.bf16.mxu1 %v5951_v0  ;;  %5300 = vmatprep.mubr.msk.bf16.mxu1 %vm5952_vm0, %v5951_v0 }
  0x16   :  { %5291 = vmatpush3.bf16.msra.mxu0 %v5808_v16 }
  0x17   :  { %5304 = vmatprep.subr.bf16.mxu0 %v5951_v0  ;;  %5299 = vmatpush3.bf16.msra.mxu1 %v5812_v17 }
  0x18   :  { %5312 = vmatprep.subr.bf16.mxu1 %v5951_v0 }
  0x19   :  { %5293 = vmatmul.mubr.msk.bf16.vlgmr.msra.gmra.mrb[4].mxu0 %vm103_vm1, %v6102_v14 }
  0x1a   :  { %5305 = vmatpush3.bf16.msra.mxu0 %v5809_v18  ;;  %5308 = vmatprep.mubr.msk.bf16.mxu0 %vm5952_vm0, %v5951_v0 }
  0x1b   :  { %5306 = vmatprep.subr.bf16.mxu0 %v5951_v0  ;;  %5301 = vmatmul.mubr.msk.bf16.vlgmr.msra.gmra.mrb[4].mxu1 %vm103_vm1, %v6102_v14 }
  0x1c   :  { %5313 = vmatpush3.bf16.msra.mxu1 %v5815_v19  ;;  %5316 = vmatprep.mubr.msk.bf16.mxu1 %vm5952_vm0, %v5951_v0 }
  0x1d   :  { %5314 = vmatprep.subr.bf16.mxu1 %v5951_v0 }
  0x1e   :  { %5307 = vmatpush3.bf16.msra.mxu0 %v5810_v20 }
  0x1f   :  { %5320 = vmatprep.subr.bf16.mxu0 %v5951_v0 }
  0x20   :  { %5315 = vmatpush3.bf16.msra.mxu1 %v5817_v22  ;;  %v6279_v22 = vld [vmem:[%s7158_s7 + $0x2] ss:$0 sm:$0xff] }
  0x21   :  { %5309 = vmatmul.mubr.msk.bf16.vlgmr.msra.gmra.mrb[8].mxu0 %vm103_vm1, %v6102_v14  ;;  %5328 = vmatprep.subr.bf16.mxu1 %v5951_v0 }
  0x22   :  { %5321 = vmatpush3.bf16.msra.mxu0 %v5813_v21  ;;  %5324 = vmatprep.mubr.msk.bf16.mxu0 %vm5952_vm0, %v5951_v0 }
  0x23   :  { %5322 = vmatprep.subr.bf16.mxu0 %v5951_v0  ;;  %5317 = vmatmul.mubr.msk.bf16.vlgmr.msra.gmra.mrb[8].mxu1 %vm103_vm1, %v6102_v14 }
  0x24   :  { %5329 = vmatpush3.bf16.msra.mxu1 %v5819_v23  ;;  %5332 = vmatprep.mubr.msk.bf16.mxu1 %vm5952_vm0, %v5951_v0 }
  0x25   :  { %5330 = vmatprep.subr.bf16.mxu1 %v5951_v0 }
  0x26   :  { %5323 = vmatpush3.bf16.msra.mxu0 %v5814_v24 }
  0x27   :  { %5336 = vmatprep.subr.bf16.mxu0 %v5951_v0 }
  0x28   :  { %5331 = vmatpush3.bf16.msra.mxu1 %v5821_v25 }
  0x29   :  { %5325 = vmatmul.mubr.msk.bf16.vlgmr.msra.gmra.mrb[12].mxu0 %vm103_vm1, %v6102_v14  ;;  %5344 = vmatprep.subr.bf16.mxu1 %v5951_v0 }
  0x2a   :  { %5337 = vmatpush3.bf16.msra.mxu0 %v5816_v26  ;;  %5340 = vmatprep.mubr.msk.bf16.mxu0 %vm5952_vm0, %v5951_v0 }
  0x2b   :  { %5338 = vmatprep.subr.bf16.mxu0 %v5951_v0  ;;  %5333 = vmatmul.mubr.msk.bf16.vlgmr.msra.gmra.mrb[12].mxu1 %vm103_vm1, %v6102_v14 }
  0x2c   :  { %5345 = vmatpush3.bf16.msra.mxu1 %v5823_v27  ;;  %5348 = vmatprep.mubr.msk.bf16.mxu1 %vm5952_vm0, %v5951_v0 }
  0x2d   :  { %5346 = vmatprep.subr.bf16.mxu1 %v5951_v0 }
  0x2e   :  { %5339 = vmatpush3.bf16.msra.mxu0 %v5818_v28  ;;  %v6289_v28 = vld [vmem:[%s7156_s5 + $0x3] ss:$0 sm:$0xff] }
  0x2f   :  { %5352 = vmatprep.subr.bf16.mxu0 %v5951_v0 }
  0x30   :  { %5347 = vmatpush3.bf16.msra.mxu1 %v5824_v31 }
  0x31   :  { %5341 = vmatmul.mubr.msk.bf16.vlgmr.msra.gmra.mrb[16].mxu0 %vm103_vm1, %v6102_v14  ;;  %5360 = vmatprep.subr.bf16.mxu1 %v5951_v0 }
  0x32   :  { %5353 = vmatpush3.bf16.msra.mxu0 %v5820_v29  ;;  %5356 = vmatprep.mubr.msk.bf16.mxu0 %vm5952_vm0, %v5951_v0 }
  0x33   :  { %5354 = vmatprep.subr.bf16.mxu0 %v5951_v0  ;;  %5349 = vmatmul.mubr.msk.bf16.vlgmr.msra.gmra.mrb[16].mxu1 %vm103_vm1, %v6102_v14 }
  0x34   :  { %5361 = vmatpush3.bf16.msra.mxu1 %v5825_v32  ;;  %5364 = vmatprep.mubr.msk.bf16.mxu1 %vm5952_vm0, %v5951_v0 }
  0x35   :  { %5362 = vmatprep.subr.bf16.mxu1 %v5951_v0 }
  0x36   :  { %5355 = vmatpush3.bf16.msra.mxu0 %v5822_v30 }
  0x37   :  { %5368 = vmatprep.subr.bf16.mxu0 %v5951_v0 }
  0x38   :  { %5363 = vmatpush3.bf16.msra.mxu1 %v5826_v33 }
  0x39   :  { %5357 = vmatmul.mubr.msk.bf16.vlgmr.msra.gmra.mrb[20].mxu0 %vm103_vm1, %v6102_v14  ;;  %5374 = vmatprep.subr.bf16.mxu1 %v5951_v0 }
  0x3a   :  { %5370 = vmatprep.mubr.msk.bf16.mxu0 %vm5952_vm0, %v5951_v0 }
  0x3b   :  { %5365 = vmatmul.mubr.msk.bf16.vlgmr.msra.gmra.mrb[20].mxu1 %vm103_vm1, %v6102_v14 }
  0x3c   :  { %5376 = vmatprep.mubr.msk.bf16.mxu1 %vm5952_vm0, %v5951_v0 }
  0xe4   :  { %v141_v35 = vpop.f32.mrb[0].mxu0  ;;  %v205_v36 = vpop.f32.mrb[0].mxu1 }
  0xe5   :  { %v206_v37 = vadd.f32 %v4780_v34, %v205_v36  ;;  %v5278_v38 = vpop.f32.mrb[1].mxu0  ;;  %v5286_v39 = vpop.f32.mrb[1].mxu1  ;;  %v142_v50 = vadd.f32 %v4776_v40, %v141_v35 }
  0xe6   :  { %v144_v41 = vpop.f32.mrb[2].mxu0  ;;  %v208_v42 = vpop.f32.mrb[2].mxu1 }
  0xe7   :  { %v871_v43 = vpack.c.bf16 %v206_v37, %v206_v37  ;;  %v6235_v44 = vadd.f32 %v4776_v40, %v144_v41  ;;  %v5279_v45 = vpop.f32.mrb[3].mxu0  ;;  %v6237_v46 = vadd.f32 %v4780_v34, %v208_v42  ;;  %v5287_v47 = vpop.f32.mrb[3].mxu1  ;;  %v870_v57 = vpack.c.bf16 %v142_v50, %v142_v50 }
  0xe8   :  { %v74_v34 = vlaneseq }
  0xe9   :  { %v877_v48 = vsel %vm872_vm2, %v871_v43, 0 }
  0xea   :  { %5369 = vmatpush3.bf16.xpose.msra.mxu0 %v877_v48  ;;  %v75_v35 = vshrl.u32 %v74_v34, 7  ;;  %v77_v36 = vand.u32 127, %v74_v34 }
  0xeb   :  { %5380 = vmatprep.subr.bf16.mxu0 %v5951_v0 }
  0xec   :  { %v269_v51 = vpop.f32.mrb[4].mxu0  ;;  %vm6296_vm4 = vcmp.le.s32.totalorder %v77_v36, %v75_v35 }
  0xed   :  { %v270_v52 = vadd.f32 %v4784_v49, %v269_v51  ;;  %v5294_v53 = vpop.f32.mrb[5].mxu0 }
  0xee   :  { %v272_v54 = vpop.f32.mrb[6].mxu0  ;;  %v335_v56 = vpop.f32.mrb[4].mxu1 }
  0xef   :  { %v933_v58 = vpack.c.bf16 %v270_v52, %v270_v52  ;;  %v6247_v59 = vadd.f32 %v4784_v49, %v272_v54  ;;  %v5295_v60 = vpop.f32.mrb[7].mxu0  ;;  %v5302_v61 = vpop.f32.mrb[5].mxu1  ;;  %v336_v14 = vadd.f32 %v4793_v55, %v335_v56 }
  0xf0   :  { %v338_v62 = vpop.f32.mrb[6].mxu1 }
  0xf1   :  { %v939_v63 = vsel %vm937_vm3, %v933_v58, 0  ;;  %5371 = vmatmul.mubr.msk.bf16.vlgmr.msra.gmra.mrb[24].mxu0 %vm872_vm2, %v870_v57  ;;  %v6251_v1 = vadd.f32 %v4793_v55, %v338_v62  ;;  %v5303_v2 = vpop.f32.mrb[7].mxu1  ;;  %v983_v17 = vpack.c.bf16 %v336_v14, %v336_v14 }
  0xf2   :  { %5375 = vmatpush3.bf16.msra.mxu1 %v939_v63  ;;  %5382 = vmatprep.mubr.msk.bf16.mxu0 %vm5952_vm0, %v5951_v0 }
  0xf3   :  { %5386 = vmatprep.subr.bf16.mxu1 %v5951_v0 }
  0xf4   :  { %v401_v4 = vpop.f32.mrb[8].mxu0 }
  0xf5   :  { %v402_v5 = vadd.f32 %v4802_v3, %v401_v4  ;;  %v5310_v6 = vpop.f32.mrb[9].mxu0 }
  0xf6   :  { %v404_v7 = vpop.f32.mrb[10].mxu0 }
  0xf7   :  { %v984_v8 = vpack.c.bf16 %v402_v5, %v402_v5  ;;  %v6259_v9 = vadd.f32 %v4802_v3, %v404_v7  ;;  %v5311_v10 = vpop.f32.mrb[11].mxu0  ;;  %v467_v3 = vpop.f32.mrb[8].mxu1  ;;  %v4811_v5 = vld [vmem:[%s7158_s7 + $0x1] ss:$0 sm:$0xff] }
  0xf8   :  { %v5318_v4 = vpop.f32.mrb[9].mxu1  ;;  %v4829_v10 = vld [vmem:[%s7156_s5 + $0x2] ss:$0 sm:$0xff] }
  0xf9   :  { %v989_v13 = vsel %vm872_vm2, %v984_v8, 0  ;;  %v470_v6 = vpop.f32.mrb[10].mxu1 }
  0xfa   :  { %5381 = vmatpush3.bf16.xpose.msra.mxu0 %v989_v13  ;;  %v5319_v7 = vpop.f32.mrb[11].mxu1  ;;  %v6311_v8 = vadd.f32 %v4811_v5, %v470_v6 }
  0xfb   :  { %5392 = vmatprep.subr.bf16.mxu0 %v5951_v0 }
  0xfc   :  { %v6268_v16 = vpop.f32.mrb[12].mxu0 }
  0xfd   :  { %v5326_v18 = vpop.f32.mrb[13].mxu0 }
  0xfe   :  { %v536_v19 = vpop.f32.mrb[14].mxu0  ;;  %v599_v13 = vpop.f32.mrb[12].mxu1 }
  0xff   :  { %v6271_v20 = vadd.f32 %v6266_v15, %v536_v19  ;;  %v5327_v21 = vpop.f32.mrb[15].mxu0  ;;  %v5334_v14 = vpop.f32.mrb[13].mxu1  ;;  %v600_v4 = vadd.f32 %v4829_v10, %v599_v13 }
 0x100   :  { %v6321_v21 = vld [vmem:[%s7157_s3 + $0x3] ss:$0 sm:$0xff] }
 0x101   :  { %5383 = vmatmul.mubr.msk.bf16.vlgmr.msra.gmra.mrb[28].mxu0 %vm872_vm2, %v983_v17  ;;  %v602_v17 = vpop.f32.mrb[14].mxu1 }
 0x102   :  { %5394 = vmatprep.mubr.msk.bf16.mxu0 %vm5952_vm0, %v5951_v0  ;;  %v6316_v18 = vadd.f32 %v4829_v10, %v602_v17  ;;  %v5335_v19 = vpop.f32.mrb[15].mxu1 }
 0x103   :  { %v534_v19 = vadd.f32 %v6266_v15, %v6268_v16 }
 0x104   :  { %v6281_v23 = vpop.f32.mrb[16].mxu0 }
 0x105   :  { %v5342_v24 = vpop.f32.mrb[17].mxu0  ;;  %v1187_v10 = vpack.c.bf16 %v534_v19, %v534_v19 }
 0x106   :  { %v668_v25 = vpop.f32.mrb[18].mxu0  ;;  %v6323_v24 = vpop.f32.mrb[16].mxu1 }
 0x107   :  { %v6284_v26 = vadd.f32 %v6279_v22, %v668_v25  ;;  %v5343_v27 = vpop.f32.mrb[19].mxu0  ;;  %v5350_v25 = vpop.f32.mrb[17].mxu1 }
 0x108   :  { %v734_v27 = vpop.f32.mrb[18].mxu1 }
 0x10c   :  { %v6291_v29 = vpop.f32.mrb[20].mxu0 }
 0x10d   :  { %v5358_v30 = vpop.f32.mrb[21].mxu0 }
 0x10e   :  { %v800_v31 = vpop.f32.mrb[22].mxu0  ;;  %v6326_v30 = vadd.f32 %v6321_v21, %v734_v27 }
 0x10f   :  { %v6294_v32 = vadd.f32 %v6289_v28, %v800_v31  ;;  %v5359_v33 = vpop.f32.mrb[23].mxu0  ;;  %v5351_v31 = vpop.f32.mrb[19].mxu1 }
 0x110   :  { %v6331_v33 = vld [vmem:[%s7158_s7 + $0x3] ss:$0 sm:$0xff]  ;;  %v6333_v34 = vpop.f32.mrb[20].mxu1 }
 0x111   :  { %v5366_v35 = vpop.f32.mrb[21].mxu1 }
 0x112   :  { %v866_v36 = vpop.f32.mrb[22].mxu1 }
 0x1c4   :  { %v913_v37 = vpop.f32.mrb[24].mxu0 }
 0x1c5   :  { %v919_v39 = vmul.f32 0.35355338, %v913_v37  ;;  %v5372_v40 = vpop.f32.mrb[25].mxu0  ;;  %v6336_v37 = vadd.f32 %v6331_v33, %v866_v36 }
 0x1c6   :  { %v916_v41 = vpop.f32.mrb[26].mxu0 }
 0x1c7   :  { %v5373_v42 = vpop.f32.mrb[27].mxu0  ;;  %v920_v43 = vsel %vm6296_vm4, %v919_v39, -1e+09  ;;  %v5367_v39 = vpop.f32.mrb[23].mxu1  ;;  %v468_v41 = vadd.f32 %v4811_v5, %v467_v3  ;;  %v1188_v5 = vpack.c.bf16 %v600_v4, %v600_v4  ;;  %v732_v4 = vadd.f32 %v6321_v21, %v6323_v24 }
 0x1c8   :  { %v921_v45 = vsel %vm872_vm2, %v920_v43, -inf }
 0x1c9   :  { %922 = vmax.xlane.f32.xlu0 %v921_v45  ;;  %v1045_v42 = vpack.c.bf16 %v468_v41, %v468_v41  ;;  %v1193_v14 = vsel %vm872_vm2, %v1188_v5, 0  ;;  %v1346_v5 = vpack.c.bf16 %v732_v4, %v732_v4 }
 0x1d4   :  { %v1025_v47 = vpop.f32.mrb[28].mxu0 }
 0x1d5   :  { %v1031_v48 = vmul.f32 0.35355338, %v1025_v47  ;;  %v5384_v49 = vpop.f32.mrb[29].mxu0  ;;  %v1050_v47 = vsel %vm937_vm3, %v1045_v42, 0 }
 0x1d6   :  { %v1028_v50 = vpop.f32.mrb[30].mxu0 }
 0x1d7   :  { %v5385_v51 = vpop.f32.mrb[31].mxu0  ;;  %v1032_v52 = vsel %vm6296_vm4, %v1031_v48, -1e+09 }
 0x1d8   :  { %v1033_v53 = vsel %vm872_vm2, %v1032_v52, -inf  ;;  %v981_v51 = vld [vmem:[%s7159_s8] sm:$0xf] }
 0x1d9   :  { %1034 = vmax.xlane.f32.xlu0 %v1033_v53 }
 0x256   :  { %v923_v54 = vpop.xlane.xlu0 %922 }
 0x257   :  { %v924_v55 = vsub.f32 %v920_v43, %v923_v54  ;;  %v6347_v54 = vsel %vm937_vm3, %v981_v51, 0 }
 0x259   :  { %v925_v56 = vmul.f32 1.442695, %v924_v55  ;;  %v4873_v55 = vld [vmem:[%s7159_s8 + $0x4] sm:$0xf] }
 0x25b   :  { %5865 = vpow2.f32 %v925_v56  ;;  %v6358_v56 = vsel %vm937_vm3, %v4873_v55, 0  ;;  %v4878_v55 = vld [vmem:[%s7159_s8 + $0x8] sm:$0xf] }
 0x25c   :  { %5393 = vmatpush3.bf16.msra.mxu0 %v6358_v56 }
 0x25d   :  { %5404 = vmatprep.subr.bf16.mxu0 %v5951_v0 }
 0x265   :  { %v5866_v57 = vpop.eup %5865 }
 0x266   :  { %v1035_v58 = vpop.xlane.xlu0 %1034  ;;  %v927_v60 = vsel %vm872_vm2, %v5866_v57, 0.0 }
 0x267   :  { %v1036_v61 = vsub.f32 %v1032_v52, %v1035_v58  ;;  %928 = vadd.xlane.f32.xlu1 %v927_v60 }
 0x269   :  { %v1037_v62 = vmul.f32 1.442695, %v1036_v61 }
 0x26b   :  { %5867 = vpow2.f32 %v1037_v62 }
 0x275   :  { %v5868_v63 = vpop.eup %5867 }
 0x276   :  { %v1039_v2 = vsel %vm872_vm2, %v5868_v63, 0.0 }
 0x277   :  { %1040 = vadd.xlane.f32.xlu1 %v1039_v2 }
 0x2f4   :  { %v929_v40 = vpop.xlane.xlu1 %928 }
 0x2f5   :  { %5869 = vrcp.f32 %v929_v40 }
 0x2ff   :  { %v5870_v43 = vpop.eup %5869 }
 0x300   :  { %v931_v45 = vmul.f32 %v5870_v43, %v5866_v57  ;;  %v666_v57 = vadd.f32 %v6279_v22, %v6281_v23 }
 0x302   :  { %v932_v48 = vpack.c.bf16 %v931_v45, %v931_v45  ;;  %v1249_v58 = vpack.c.bf16 %v666_v57, %v666_v57  ;;  %v6389_v57 = vsel %vm937_vm3, %v4878_v55, 0  ;;  %v1623_v55 = vpack.c.bf16 %v6251_v1, %v6251_v1 }
 0x304   :  { %5377 = vmatmul.mubr.msk.bf16.vlgmr.msra.gmra.mrb[24].mxu1 %vm872_vm2, %v932_v48  ;;  %v1041_v49 = vpop.xlane.xlu1 %1040  ;;  %v1254_v2 = vsel %vm937_vm3, %v1249_v58, 0 }
 0x305   :  { %5871 = vrcp.f32 %v1041_v49  ;;  %5387 = vmatpush3.bf16.msra.mxu1 %v1050_v47  ;;  %5388 = vmatprep.mubr.msk.bf16.mxu1 %vm5952_vm0, %v5951_v0 }
 0x306   :  { %5398 = vmatprep.subr.bf16.mxu1 %v5951_v0 }
 0x30f   :  { %v5872_v50 = vpop.eup %5871 }
 0x310   :  { %v1043_v52 = vmul.f32 %v5872_v50, %v5868_v63 }
 0x312   :  { %v1044_v53 = vpack.c.bf16 %v1043_v52, %v1043_v52 }
 0x314   :  { %5389 = vmatmul.mubr.msk.bf16.vlgmr.msra.gmra.mrb[28].mxu1 %vm872_vm2, %v1044_v53 }
 0x315   :  { %5399 = vmatpush3.bf16.msra.mxu1 %v6347_v54  ;;  %5400 = vmatprep.mubr.msk.bf16.mxu1 %vm5952_vm0, %v5951_v0 }
 0x316   :  { %5410 = vmatprep.subr.bf16.mxu1 %v5951_v0 }
 0x3d7   :  { %v975_v60 = vpop.f32.mrb[24].mxu1 }
 0x3d8   :  { %v982_v61 = vpack.c.bf16 %v975_v60, %v975_v60  ;;  %v5378_v62 = vpop.f32.mrb[25].mxu1  ;;  %v798_v60 = vadd.f32 %v6289_v28, %v6291_v29  ;;  %v864_v28 = vadd.f32 %v6331_v33, %v6333_v34 }
 0x3d9   :  { %v978_v63 = vpop.f32.mrb[26].mxu1 }
 0x3da   :  { %v5379_v3 = vpop.f32.mrb[27].mxu1  ;;  %5401 = vmatmul.mubr.msk.bf16.vlgmr.msra.gmra.mrb[32].mxu1 %vm872_vm2, %v982_v61  ;;  %v1347_v62 = vpack.c.bf16 %v798_v60, %v798_v60  ;;  %v1408_v29 = vpack.c.bf16 %v864_v28, %v864_v28 }
 0x3db   :  { %5411 = vmatpush3.bf16.msra.mxu1 %v1254_v2  ;;  %5412 = vmatprep.mubr.msk.bf16.mxu1 %vm5952_vm0, %v5951_v0 }
 0x3dc   :  { %5422 = vmatprep.subr.bf16.mxu1 %v5951_v0  ;;  %v1352_v3 = vsel %vm872_vm2, %v1347_v62, 0 }
 0x3e7   :  { %v1086_v6 = vpop.f32.mrb[28].mxu1 }
 0x3e8   :  { %v1094_v22 = vpack.c.bf16 %v1086_v6, %v1086_v6  ;;  %v5390_v23 = vpop.f32.mrb[29].mxu1 }
 0x3e9   :  { %v1089_v7 = vpop.f32.mrb[30].mxu1 }
 0x3ea   :  { %v5391_v17 = vpop.f32.mrb[31].mxu1  ;;  %5395 = vmatmul.mubr.msk.bf16.vlgmr.msra.gmra.mrb[32].mxu0 %vm872_vm2, %v1094_v22 }
 0x3eb   :  { %5405 = vmatpush3.bf16.xpose.msra.mxu0 %v1193_v14  ;;  %5406 = vmatprep.mubr.msk.bf16.mxu0 %vm5952_vm0, %v5951_v0  ;;  %v1413_v14 = vsel %vm937_vm3, %v1408_v29, 0 }
 0x3ec   :  { %5416 = vmatprep.subr.bf16.mxu0 %v5951_v0 }
 0x3f2   :  { %5407 = vmatmul.mubr.msk.bf16.vlgmr.msra.gmra.mrb[36].mxu0 %vm872_vm2, %v1187_v10 }
 0x3f3   :  { %5418 = vmatprep.mubr.msk.bf16.mxu0 %vm5952_vm0, %v5951_v0  ;;  %5417 = vmatpush3.bf16.msra.mxu0 %v6389_v57 }
 0x3f4   :  { %5428 = vmatprep.subr.bf16.mxu0 %v5951_v0 }
 0x4ad   :  { %v1181_v13 = vpop.f32.mrb[32].mxu1 }
 0x4ae   :  { %v5402_v25 = vpop.f32.mrb[33].mxu1 }
 0x4af   :  { %v1184_v27 = vpop.f32.mrb[34].mxu1 }
 0x4b0   :  { %v5403_v31 = vpop.f32.mrb[35].mxu1 }
 0x4bd   :  { %v1135_v35 = vpop.f32.mrb[32].mxu0 }
 0x4be   :  { %v6379_v36 = vadd.f32 %v1181_v13, %v1135_v35  ;;  %v5396_v39 = vpop.f32.mrb[33].mxu0 }
 0x4bf   :  { %v1138_v40 = vpop.f32.mrb[34].mxu0 }
 0x4c0   :  { %v5397_v41 = vpop.f32.mrb[35].mxu0 }
 0x4c5   :  { %v1229_v42 = vpop.f32.mrb[36].mxu0 }
 0x4c6   :  { %v1235_v15 = vmul.f32 0.35355338, %v1229_v42  ;;  %v5408_v16 = vpop.f32.mrb[37].mxu0 }
 0x4c7   :  { %v1232_v43 = vpop.f32.mrb[38].mxu0  ;;  %v4882_v16 = vld [vmem:[%s7159_s8 + $0xc] sm:$0xf] }
 0x4c8   :  { %v5409_v45 = vpop.f32.mrb[39].mxu0  ;;  %v1236_v47 = vsel %vm6296_vm4, %v1235_v15, -1e+09 }
 0x4c9   :  { %v1237_v48 = vsel %vm872_vm2, %v1236_v47, -inf  ;;  %v6423_v45 = vsel %vm937_vm3, %v4882_v16, 0 }
 0x4ca   :  { %1238 = vmax.xlane.f32.xlu0 %v1237_v48 }
 0x557   :  { %v1239_v49 = vpop.xlane.xlu0 %1238 }
 0x558   :  { %v1240_v50 = vsub.f32 %v1236_v47, %v1239_v49 }
 0x55a   :  { %v1241_v51 = vmul.f32 1.442695, %v1240_v50 }
 0x55c   :  { %5873 = vpow2.f32 %v1241_v51 }
 0x566   :  { %v5874_v52 = vpop.eup %5873 }
 0x567   :  { %v1243_v53 = vsel %vm872_vm2, %v5874_v52, 0.0 }
 0x568   :  { %1244 = vadd.xlane.f32.xlu1 %v1243_v53  ;;  %v1513_v53 = vpack.c.bf16 %v6235_v44, %v6235_v44  ;;  %v1575_v44 = vpack.c.bf16 %v6247_v59, %v6247_v59 }
 0x56a   :  { %v1580_v62 = vsel %vm937_vm3, %v1575_v44, 0 }
 0x5f5   :  { %v1245_v58 = vpop.xlane.xlu1 %1244 }
 0x5f6   :  { %5875 = vrcp.f32 %v1245_v58 }
 0x600   :  { %v5876_v61 = vpop.eup %5875 }
 0x601   :  { %v1247_v63 = vmul.f32 %v5876_v61, %v5874_v52  ;;  %v1624_v52 = vpack.c.bf16 %v6259_v9, %v6259_v9 }
 0x603   :  { %v1248_v2 = vpack.c.bf16 %v1247_v63, %v1247_v63 }
 0x605   :  { %5413 = vmatmul.mubr.msk.bf16.vlgmr.msra.gmra.mrb[36].mxu1 %vm872_vm2, %v1248_v2 }
 0x606   :  { %5423 = vmatpush3.bf16.xpose.msra.mxu1 %v1352_v3  ;;  %5424 = vmatprep.mubr.msk.bf16.mxu1 %vm5952_vm0, %v5951_v0 }
 0x607   :  { %5434 = vmatprep.subr.bf16.mxu1 %v5951_v0 }
 0x60d   :  { %5425 = vmatmul.mubr.msk.bf16.vlgmr.msra.gmra.mrb[40].mxu1 %vm872_vm2, %v1346_v5 }
 0x60e   :  { %5436 = vmatprep.mubr.msk.bf16.mxu1 %vm5952_vm0, %v5951_v0  ;;  %5435 = vmatpush3.bf16.msra.mxu1 %v6423_v45 }
 0x60f   :  { %5446 = vmatprep.subr.bf16.mxu1 %v5951_v0 }
 0x6d8   :  { %v1290_v6 = vpop.f32.mrb[36].mxu1 }
 0x6d9   :  { %v1298_v22 = vpack.c.bf16 %v1290_v6, %v1290_v6  ;;  %v5414_v23 = vpop.f32.mrb[37].mxu1 }
 0x6da   :  { %v1293_v7 = vpop.f32.mrb[38].mxu1 }
 0x6db   :  { %v5415_v17 = vpop.f32.mrb[39].mxu1  ;;  %5419 = vmatmul.mubr.msk.bf16.vlgmr.msra.gmra.mrb[40].mxu0 %vm872_vm2, %v1298_v22 }
 0x6dc   :  { %5429 = vmatpush3.bf16.msra.mxu0 %v1413_v14  ;;  %5430 = vmatprep.mubr.msk.bf16.mxu0 %vm5952_vm0, %v5951_v0 }
 0x6dd   :  { %5440 = vmatprep.subr.bf16.mxu0 %v5951_v0 }
 0x6e0   :  { %v1388_v21 = vpop.f32.mrb[40].mxu1 }
 0x6e1   :  { %v1394_v24 = vmul.f32 0.35355338, %v1388_v21  ;;  %v5426_v19 = vpop.f32.mrb[41].mxu1 }
 0x6e2   :  { %v1391_v33 = vpop.f32.mrb[42].mxu1 }
 0x6e3   :  { %v5427_v34 = vpop.f32.mrb[43].mxu1  ;;  %v1395_v10 = vsel %vm6296_vm4, %v1394_v24, -1e+09 }
 0x6e4   :  { %v1396_v13 = vsel %vm872_vm2, %v1395_v10, -inf }
 0x6e5   :  { %1397 = vmax.xlane.f32.xlu0 %v1396_v13 }
 0x772   :  { %v1398_v25 = vpop.xlane.xlu0 %1397 }
 0x773   :  { %v1399_v27 = vsub.f32 %v1395_v10, %v1398_v25 }
 0x775   :  { %v1400_v31 = vmul.f32 1.442695, %v1399_v27 }
 0x777   :  { %5877 = vpow2.f32 %v1400_v31 }
 0x781   :  { %v5878_v35 = vpop.eup %5877 }
 0x782   :  { %v1402_v39 = vsel %vm872_vm2, %v5878_v35, 0.0 }
 0x783   :  { %1403 = vadd.xlane.f32.xlu1 %v1402_v39 }
 0x7ae   :  { %v1339_v40 = vpop.f32.mrb[40].mxu0 }
 0x7af   :  { %v6417_v41 = vadd.f32 %v1339_v40, %v6379_v36  ;;  %v5420_v42 = vpop.f32.mrb[41].mxu0  ;;  %v1514_v36 = vpack.c.bf16 %v6237_v46, %v6237_v46  ;;  %v1629_v46 = vsel %vm872_vm2, %v1624_v52, 0 }
 0x7b0   :  { %v1342_v15 = vpop.f32.mrb[42].mxu0 }
 0x7b1   :  { %v5421_v43 = vpop.f32.mrb[43].mxu0  ;;  %v1519_v51 = vsel %vm872_vm2, %v1514_v36, 0 }
 0x810   :  { %v1404_v47 = vpop.xlane.xlu1 %1403 }
 0x811   :  { %5879 = vrcp.f32 %v1404_v47  ;;  %v1685_v47 = vpack.c.bf16 %v6311_v8, %v6311_v8  ;;  %v1881_v8 = vpack.c.bf16 %v6284_v26, %v6284_v26 }
 0x813   :  { %v1886_v44 = vsel %vm937_vm3, %v1881_v8, 0 }
 0x81b   :  { %v5880_v48 = vpop.eup %5879 }
 0x81c   :  { %v1406_v49 = vmul.f32 %v5880_v48, %v5878_v35 }
 0x81e   :  { %v1407_v50 = vpack.c.bf16 %v1406_v49, %v1406_v49  ;;  %v1690_v49 = vsel %vm937_vm3, %v1685_v47, 0 }
 0x820   :  { %5431 = vmatmul.mubr.msk.bf16.vlgmr.msra.gmra.mrb[44].mxu0 %vm872_vm2, %v1407_v50 }
 0x821   :  { %5441 = vmatpush3.bf16.xpose.msra.mxu0 %v1519_v51  ;;  %5442 = vmatprep.mubr.msk.bf16.mxu0 %vm5952_vm0, %v5951_v0 }
 0x822   :  { %5452 = vmatprep.subr.bf16.mxu0 %v5951_v0 }
 0x828   :  { %5443 = vmatmul.mubr.msk.bf16.vlgmr.msra.gmra.mrb[48].mxu0 %vm872_vm2, %v1513_v53 }
 0x829   :  { %5453 = vmatpush3.bf16.xpose.msra.mxu0 %v1629_v46  ;;  %5454 = vmatprep.mubr.msk.bf16.mxu0 %vm5952_vm0, %v5951_v0 }
 0x82a   :  { %5464 = vmatprep.subr.bf16.mxu0 %v5951_v0 }
 0x830   :  { %5455 = vmatmul.mubr.msk.bf16.vlgmr.msra.gmra.mrb[52].mxu0 %vm872_vm2, %v1623_v55 }
 0x831   :  { %5465 = vmatpush3.bf16.msra.mxu0 %v6358_v56  ;;  %5466 = vmatprep.mubr.msk.bf16.mxu0 %vm5952_vm0, %v5951_v0 }
 0x832   :  { %5476 = vmatprep.subr.bf16.mxu0 %v5951_v0 }
 0x8f3   :  { %v1449_v9 = vpop.f32.mrb[44].mxu0 }
 0x8f4   :  { %v1457_v58 = vpack.c.bf16 %v1449_v9, %v1449_v9  ;;  %v5432_v60 = vpop.f32.mrb[45].mxu0 }
 0x8f5   :  { %v1452_v61 = vpop.f32.mrb[46].mxu0 }
 0x8f6   :  { %v5433_v63 = vpop.f32.mrb[47].mxu0  ;;  %5437 = vmatmul.mubr.msk.bf16.vlgmr.msra.gmra.mrb[44].mxu1 %vm872_vm2, %v1457_v58 }
 0x8f7   :  { %5447 = vmatpush3.bf16.msra.mxu1 %v1580_v62  ;;  %5448 = vmatprep.mubr.msk.bf16.mxu1 %vm5952_vm0, %v5951_v0 }
 0x8f8   :  { %5458 = vmatprep.subr.bf16.mxu1 %v5951_v0 }
 0x8fb   :  { %v1555_v1 = vpop.f32.mrb[48].mxu0 }
 0x8fc   :  { %v1561_v56 = vmul.f32 0.35355338, %v1555_v1  ;;  %v5444_v2 = vpop.f32.mrb[49].mxu0  ;;  %v1819_v1 = vpack.c.bf16 %v6271_v20, %v6271_v20 }
 0x8fd   :  { %v1558_v3 = vpop.f32.mrb[50].mxu0 }
 0x8fe   :  { %v5445_v59 = vpop.f32.mrb[51].mxu0  ;;  %v1562_v4 = vsel %vm6296_vm4, %v1561_v56, -1e+09 }
 0x8ff   :  { %v1563_v5 = vsel %vm872_vm2, %v1562_v4, -inf }
 0x900   :  { %1564 = vmax.xlane.f32.xlu0 %v1563_v5 }
 0x903   :  { %v1665_v28 = vpop.f32.mrb[52].mxu0 }
 0x904   :  { %v1671_v29 = vmul.f32 0.35355338, %v1665_v28  ;;  %v5456_v6 = vpop.f32.mrb[53].mxu0 }
 0x905   :  { %v1668_v22 = vpop.f32.mrb[54].mxu0 }
 0x906   :  { %v5457_v23 = vpop.f32.mrb[55].mxu0  ;;  %v1672_v7 = vsel %vm6296_vm4, %v1671_v29, -1e+09 }
 0x907   :  { %v1673_v14 = vsel %vm872_vm2, %v1672_v7, -inf }
 0x908   :  { %1674 = vmax.xlane.f32.xlu1 %v1673_v14 }
 0x98d   :  { %v1565_v17 = vpop.xlane.xlu0 %1564 }
 0x98e   :  { %v1566_v21 = vsub.f32 %v1562_v4, %v1565_v17 }
 0x990   :  { %v1567_v24 = vmul.f32 1.442695, %v1566_v21 }
 0x992   :  { %5881 = vpow2.f32 %v1567_v24 }
 0x995   :  { %v1675_v19 = vpop.xlane.xlu1 %1674 }
 0x996   :  { %v1676_v33 = vsub.f32 %v1672_v7, %v1675_v19 }
 0x998   :  { %v1677_v34 = vmul.f32 1.442695, %v1676_v33 }
 0x99a   :  { %5883 = vpow2.f32 %v1677_v34 }
 0x99c   :  { %v5882_v10 = vpop.eup %5881 }
 0x99d   :  { %v1569_v13 = vsel %vm872_vm2, %v5882_v10, 0.0 }
 0x99e   :  { %1570 = vadd.xlane.f32.xlu0 %v1569_v13  ;;  %v1974_v13 = vpack.c.bf16 %v6294_v32, %v6294_v32  ;;  %v2035_v32 = vpack.c.bf16 %v6336_v37, %v6336_v37 }
 0x9a4   :  { %v5884_v25 = vpop.eup %5883 }
 0x9a5   :  { %v1679_v27 = vsel %vm872_vm2, %v5884_v25, 0.0 }
 0x9a6   :  { %1680 = vadd.xlane.f32.xlu1 %v1679_v27 }
 0x9c9   :  { %v1498_v31 = vpop.f32.mrb[44].mxu1 }
 0x9ca   :  { %v6466_v35 = vadd.f32 %v1498_v31, %v6417_v41  ;;  %v5438_v39 = vpop.f32.mrb[45].mxu1  ;;  %v1979_v31 = vsel %vm872_vm2, %v1974_v13, 0  ;;  %v5828_v13 = vld [vmem:[%s7161_s10 + $0x8] sm:$0xff]  }
 0x9cb   :  { %v1501_v40 = vpop.f32.mrb[46].mxu1  ;;  %v1973_v39 = vpack.c.bf16 %v6326_v30, %v6326_v30  ;;  %v4884_v30 = vld [vmem:[%s7160_s9] ss:$0 sm:$0xff] }
 0x9cc   :  { %v5439_v42 = vpop.f32.mrb[47].mxu1  ;;  %v1512_v37 = vadd.f32 %v4884_v30, %v6466_v35 }
 0x9ce   :  { %v2128_v8 = vadd.f32 %v1512_v37, %v6091_v11 }
 0xa2b   :  { %v1571_v15 = vpop.xlane.xlu0 %1570 }
 0xa2c   :  { %5885 = vrcp.f32 %v1571_v15 }
 0xa33   :  { %v1681_v16 = vpop.xlane.xlu1 %1680 }
 0xa34   :  { %5887 = vrcp.f32 %v1681_v16 }
 0xa36   :  { %v5886_v43 = vpop.eup %5885 }
 0xa37   :  { %v1573_v48 = vmul.f32 %v5886_v43, %v5882_v10  ;;  %v2040_v43 = vsel %vm937_vm3, %v2035_v32, 0 }
 0xa39   :  { %v1574_v36 = vpack.c.bf16 %v1573_v48, %v1573_v48 }
 0xa3b   :  { %5449 = vmatmul.mubr.msk.bf16.vlgmr.msra.gmra.mrb[48].mxu1 %vm872_vm2, %v1574_v36 }
 0xa3c   :  { %5459 = vmatpush3.bf16.msra.mxu1 %v1690_v49  ;;  %5460 = vmatprep.mubr.msk.bf16.mxu1 %vm5952_vm0, %v5951_v0 }
 0xa3d   :  { %5470 = vmatprep.subr.bf16.mxu1 %v5951_v0 }
 0xa3e   :  { %v5888_v41 = vpop.eup %5887 }
 0xa3f   :  { %v1683_v50 = vmul.f32 %v5888_v41, %v5884_v25 }
 0xa41   :  { %v1684_v51 = vpack.c.bf16 %v1683_v50, %v1683_v50 }
 0xa43   :  { %5461 = vmatmul.mubr.msk.bf16.vlgmr.msra.gmra.mrb[52].mxu1 %vm872_vm2, %v1684_v51 }
 0xa44   :  { %5471 = vmatpush3.bf16.msra.mxu1 %v6347_v54  ;;  %5472 = vmatprep.mubr.msk.bf16.mxu1 %vm5952_vm0, %v5951_v0  ;;  %v1820_v54 = vpack.c.bf16 %v6316_v18, %v6316_v18 }
 0xa45   :  { %5482 = vmatprep.subr.bf16.mxu1 %v5951_v0 }
 0xa46   :  { %v1825_v62 = vsel %vm872_vm2, %v1820_v54, 0 }
 0xb0e   :  { %v1616_v52 = vpop.f32.mrb[48].mxu1 }
 0xb0f   :  { %v1622_v53 = vpack.c.bf16 %v1616_v52, %v1616_v52  ;;  %v5450_v46 = vpop.f32.mrb[49].mxu1  ;;  %v2132_v52 = vsel %vm103_vm1, %v2128_v8, 0.0 }
 0xb10   :  { %v1619_v55 = vpop.f32.mrb[50].mxu1 }
 0xb11   :  { %v5451_v9 = vpop.f32.mrb[51].mxu1  ;;  %5473 = vmatmul.mubr.msk.bf16.vlgmr.msra.gmra.mrb[56].mxu1 %vm872_vm2, %v1622_v53 }
 0xb12   :  { %5483 = vmatpush3.bf16.msra.mxu1 %v1886_v44  ;;  %5484 = vmatprep.mubr.msk.bf16.mxu1 %vm5952_vm0, %v5951_v0 }
 0xb13   :  { %5494 = vmatprep.subr.bf16.mxu1 %v5951_v0 }
 0xb16   :  { %v1726_v58 = vpop.f32.mrb[52].mxu1 }
 0xb17   :  { %v1732_v26 = vpack.c.bf16 %v1726_v58, %v1726_v58  ;;  %v5462_v60 = vpop.f32.mrb[53].mxu1 }
 0xb18   :  { %v1729_v61 = vpop.f32.mrb[54].mxu1 }
 0xb19   :  { %v5463_v63 = vpop.f32.mrb[55].mxu1  ;;  %5467 = vmatmul.mubr.msk.bf16.vlgmr.msra.gmra.mrb[56].mxu0 %vm872_vm2, %v1732_v26 }
 0xb1a   :  { %5477 = vmatpush3.bf16.xpose.msra.mxu0 %v1825_v62  ;;  %5478 = vmatprep.mubr.msk.bf16.mxu0 %vm5952_vm0, %v5951_v0 }
 0xb1b   :  { %5488 = vmatprep.subr.bf16.mxu0 %v5951_v0 }
 0xb21   :  { %5479 = vmatmul.mubr.msk.bf16.vlgmr.msra.gmra.mrb[60].mxu0 %vm872_vm2, %v1819_v1 }
 0xb22   :  { %5489 = vmatpush3.bf16.msra.mxu0 %v6389_v57  ;;  %5490 = vmatprep.mubr.msk.bf16.mxu0 %vm5952_vm0, %v5951_v0 }
 0xb23   :  { %5500 = vmatprep.subr.bf16.mxu0 %v5951_v0 }
 0xbe4   :  { %v1813_v18 = vpop.f32.mrb[56].mxu1 }
 0xbe5   :  { %v5474_v56 = vpop.f32.mrb[57].mxu1 }
 0xbe6   :  { %v1816_v2 = vpop.f32.mrb[58].mxu1 }
 0xbe7   :  { %v5475_v3 = vpop.f32.mrb[59].mxu1 }
 0xbec   :  { %v1770_v59 = vpop.f32.mrb[56].mxu0 }
 0xbed   :  { %v6501_v4 = vadd.f32 %v1813_v18, %v1770_v59  ;;  %v5468_v5 = vpop.f32.mrb[57].mxu0 }
 0xbee   :  { %v1773_v28 = vpop.f32.mrb[58].mxu0 }
 0xbef   :  { %v5469_v29 = vpop.f32.mrb[59].mxu0 }
 0xbf4   :  { %v1861_v20 = vpop.f32.mrb[60].mxu0 }
 0xbf5   :  { %v1867_v6 = vmul.f32 0.35355338, %v1861_v20  ;;  %v5480_v22 = vpop.f32.mrb[61].mxu0 }
 0xbf6   :  { %v1864_v23 = vpop.f32.mrb[62].mxu0 }
 0xbf7   :  { %v5481_v57 = vpop.f32.mrb[63].mxu0  ;;  %v1868_v7 = vsel %vm6296_vm4, %v1867_v6, -1e+09 }
 0xbf8   :  { %v1869_v14 = vsel %vm872_vm2, %v1868_v7, -inf }
 0xbf9   :  { %1870 = vmax.xlane.f32.xlu0 %v1869_v14 }
 0xc86   :  { %v1871_v17 = vpop.xlane.xlu0 %1870 }
 0xc87   :  { %v1872_v21 = vsub.f32 %v1868_v7, %v1871_v17 }
 0xc89   :  { %v1873_v24 = vmul.f32 1.442695, %v1872_v21 }
 0xc8b   :  { %5889 = vpow2.f32 %v1873_v24 }
 0xc95   :  { %v5890_v19 = vpop.eup %5889 }
 0xc96   :  { %v1875_v33 = vsel %vm872_vm2, %v5890_v19, 0.0 }
 0xc97   :  { %1876 = vadd.xlane.f32.xlu1 %v1875_v33 }
 0xd24   :  { %v1877_v34 = vpop.xlane.xlu1 %1876 }
 0xd25   :  { %5891 = vrcp.f32 %v1877_v34 }
 0xd2f   :  { %v5892_v10 = vpop.eup %5891 }
 0xd30   :  { %v1879_v25 = vmul.f32 %v5892_v10, %v5890_v19  ;;  %v5827_v10 = vld [vmem:[%s7161_s10] sm:$0xff]  }
 0xd32   :  { %v1880_v27 = vpack.c.bf16 %v1879_v25, %v1879_v25  ;;  %v5830_v25 = vld [vmem:[%s7162_s12 + $0x8] sm:$0xff]  }
 0xd34   :  { %5485 = vmatmul.mubr.msk.bf16.vlgmr.msra.gmra.mrb[60].mxu1 %vm872_vm2, %v1880_v27 }
 0xd35   :  { %5495 = vmatpush3.bf16.xpose.msra.mxu1 %v1979_v31  ;;  %5496 = vmatprep.mubr.msk.bf16.mxu1 %vm5952_vm0, %v5951_v0 }
 0xd36   :  { %5506 = vmatprep.subr.bf16.mxu1 %v5951_v0 }
 0xd3c   :  { %5497 = vmatmul.mubr.msk.bf16.vlgmr.msra.gmra.mrb[64].mxu1 %vm872_vm2, %v1973_v39 }
 0xd3d   :  { %5507 = vmatpush3.bf16.msra.mxu1 %v6423_v45  ;;  %5508 = vmatprep.mubr.msk.bf16.mxu1 %vm5952_vm0, %v5951_v0 }
 0xd3e   :  { %5520 = vmatprep.subr.bf16.mxu1 %v5951_v0 }
 0xe07   :  { %v1922_v40 = vpop.f32.mrb[60].mxu1 }
 0xe08   :  { %v1928_v42 = vpack.c.bf16 %v1922_v40, %v1922_v40  ;;  %v5486_v15 = vpop.f32.mrb[61].mxu1 }
 0xe09   :  { %v1925_v16 = vpop.f32.mrb[62].mxu1 }
 0xe0a   :  { %v5487_v47 = vpop.f32.mrb[63].mxu1  ;;  %5491 = vmatmul.mubr.msk.bf16.vlgmr.msra.gmra.mrb[64].mxu0 %vm872_vm2, %v1928_v42 }
 0xe0b   :  { %5501 = vmatpush3.bf16.msra.mxu0 %v2040_v43  ;;  %5502 = vmatprep.mubr.msk.bf16.mxu0 %vm5952_vm0, %v5951_v0  ;;  %v4897_v43 = vld [vmem:[%s7163_s14] ss:$0 sm:$0xff] }
 0xe0c   :  { %5512 = vmatprep.subr.bf16.mxu0 %v5951_v0 }
 0xe0f   :  { %v2015_v45 = vpop.f32.mrb[64].mxu1 }
 0xe10   :  { %v2021_v48 = vmul.f32 0.35355338, %v2015_v45  ;;  %v5498_v36 = vpop.f32.mrb[65].mxu1  ;;  %v4898_v45 = vld [vmem:[%s7164_s15] ss:$0 sm:$0xff] }
 0xe11   :  { %v2018_v49 = vpop.f32.mrb[66].mxu1 }
 0xe12   :  { %v5499_v41 = vpop.f32.mrb[67].mxu1  ;;  %v2022_v50 = vsel %vm6296_vm4, %v2021_v48, -1e+09 }
 0xe13   :  { %v2023_v51 = vsel %vm872_vm2, %v2022_v50, -inf }
 0xe14   :  { %2024 = vmax.xlane.f32.xlu0 %v2023_v51  ;;  %v5832_v51 = vld [vmem:[%s7162_s12 + $0x18] sm:$0xff]  }
 0xe18   :  { %2133 = vadd.xlane.f32.xlu0 %v2132_v52 }
 0xea1   :  { %v2025_v53 = vpop.xlane.xlu0 %2024 }
 0xea2   :  { %v2026_v46 = vsub.f32 %v2022_v50, %v2025_v53  ;;  %v5831_v50 = vld [vmem:[%s7162_s12 + $0x10] sm:$0xff]  }
 0xea4   :  { %v2027_v55 = vmul.f32 1.442695, %v2026_v46 }
 0xea5   :  { %v2134_v35 = vpop.xlane.xlu0 %2133 }
 0xea6   :  { %5893 = vpow2.f32 %v2027_v55  ;;  %v2139_v44 = vmul.f32 0.03125, %v2134_v35 }
 0xea8   :  { %v6537_v9 = vsub.f32 %v2128_v8, %v2139_v44  ;;  %v4899_v8 = vld [vmem:[%s7165_s11] ss:$0 sm:$0xff] }
 0xeaa   :  { %v2143_v54 = vmul.f32 %v6537_v9, %v6537_v9 }
 0xeac   :  { %v2145_v58 = vsel %vm103_vm1, %v2143_v54, 0.0 }
 0xead   :  { %2146 = vadd.xlane.f32.xlu0 %v2145_v58 }
 0xeb0   :  { %v5894_v26 = vpop.eup %5893 }
 0xeb1   :  { %v2029_v11 = vsel %vm872_vm2, %v5894_v26, 0.0 }
 0xeb2   :  { %2030 = vadd.xlane.f32.xlu1 %v2029_v11 }
 0xedd   :  { %v1966_v60 = vpop.f32.mrb[64].mxu0 }
 0xede   :  { %v1972_v61 = vadd.f32 %v1966_v60, %v6501_v4  ;;  %v5492_v62 = vpop.f32.mrb[65].mxu0 }
 0xedf   :  { %v1969_v63 = vpop.f32.mrb[66].mxu0 }
 0xee0   :  { %v5493_v1 = vpop.f32.mrb[67].mxu0 }
 0xf3a   :  { %v2147_v27 = vpop.xlane.xlu0 %2146 }
 0xf3b   :  { %v2151_v31 = vmul.f32 0.03125, %v2147_v27 }
 0xf3d   :  { %v2153_v39 = vadd.f32 1e-05, %v2151_v31 }
 0xf3f   :  { %v2031_v18 = vpop.xlane.xlu1 %2030 }
 0xf40   :  { %5895 = vrcp.f32 %v2031_v18 }
 0xf41   :  { %5897 = vrsqrt.f32 %v2153_v39 }
 0xf4a   :  { %v5896_v56 = vpop.eup %5895 }
 0xf4b   :  { %v2033_v2 = vmul.f32 %v5896_v56, %v5894_v26  ;;  %v5898_v15 = vpop.eup %5897  ;;  %v4903_v26 = vld [vmem:[%s7166_s13] ss:$0 sm:$0xff] }
 0xf4c   :  { %v2157_v16 = vmul.f32 %v5898_v15, %v6537_v9 }
 0xf4d   :  { %v2034_v3 = vpack.c.bf16 %v2033_v2, %v2033_v2 }
 0xf4f   :  { %5503 = vmatmul.mubr.msk.bf16.vlgmr.msra.gmra.mrb[68].mxu0 %vm872_vm2, %v2034_v3 }
 0xf50   :  { %5516 = vmatprep.mubr.msk.bf16.mxu0 %vm5952_vm0, %v5951_v0  ;;  %5513 = vmatpush3.bf16.msra.mxu0 %v5827_v10 }
 0xf51   :  { %5514 = vmatprep.subr.bf16.mxu0 %v5951_v0 }
 0xf54   :  { %5515 = vmatpush3.bf16.msra.mxu0 %v5828_v13 }
 0xf55   :  { %5532 = vmatprep.subr.bf16.mxu0 %v5951_v0 }
0x1022   :  { %v2076_v59 = vpop.f32.mrb[68].mxu0 }
0x1023   :  { %v2082_v5 = vpack.c.bf16 %v2076_v59, %v2076_v59  ;;  %v5504_v28 = vpop.f32.mrb[69].mxu0 }
0x1024   :  { %v2079_v29 = vpop.f32.mrb[70].mxu0 }
0x1025   :  { %v5505_v20 = vpop.f32.mrb[71].mxu0  ;;  %5509 = vmatmul.mubr.msk.bf16.vlgmr.msra.gmra.mrb[68].mxu1 %vm872_vm2, %v2082_v5 }
0x1026   :  { %5528 = vmatprep.mubr.msk.bf16.mxu1 %vm5952_vm0, %v5951_v0 }
0x10f8   :  { %v2120_v4 = vpop.f32.mrb[68].mxu1 }
0x10f9   :  { %v2126_v6 = vadd.f32 %v2120_v4, %v1972_v61  ;;  %v5510_v22 = vpop.f32.mrb[69].mxu1 }
0x10fa   :  { %v2123_v23 = vpop.f32.mrb[70].mxu1 }
0x10fb   :  { %v2127_v57 = vadd.f32 %v4884_v30, %v2126_v6  ;;  %v5511_v7 = vpop.f32.mrb[71].mxu1  ;;  %v2165_v30 = vmul.f32 %v4897_v43, %v2157_v16 }
0x10fc   :  { %v5833_v7 = vld [vmem:[%s7182_s23 + $0x40] sm:$0xff]  }
0x10fd   :  { %v2129_v14 = vadd.f32 %v2127_v57, %v6093_v12  ;;  %v5829_v12 = vld [vmem:[%s7162_s12] sm:$0xff]   ;;  %v2173_v36 = vadd.f32 %v4898_v45, %v2165_v30 }
0x10fe   :  { %5521 = vmatpush3.bf16.msra.mxu1 %v5829_v12 }
0x10ff   :  { %v2135_v17 = vsel %vm103_vm1, %v2129_v14, 0.0  ;;  %5522 = vmatprep.subr.bf16.mxu1 %v5951_v0 }
0x1100   :  { %2136 = vadd.xlane.f32.xlu1 %v2135_v17  ;;  %v5835_v17 = vld [vmem:[%s7182_s23 + $0x48] sm:$0xff]  }
0x1102   :  { %5523 = vmatpush3.bf16.msra.mxu1 %v5830_v25  ;;  %v4909_v25 = vld [vmem:[%s7167_s16] ss:$0 sm:$0xff] }
0x1103   :  { %5524 = vmatprep.subr.bf16.mxu1 %v5951_v0 }
0x1106   :  { %5525 = vmatpush3.bf16.msra.mxu1 %v5831_v50  ;;  %v5845_v50 = vld [vmem:[%s7186_s28 + $0x50] sm:$0xff]  }
0x1107   :  { %5526 = vmatprep.subr.bf16.mxu1 %v5951_v0 }
0x110a   :  { %5527 = vmatpush3.bf16.msra.mxu1 %v5832_v51  ;;  %v5846_v51 = vld [vmem:[%s7186_s28 + $0x60] sm:$0xff]  }
0x110b   :  { %5548 = vmatprep.subr.bf16.mxu1 %v5951_v0 }
0x118d   :  { %v2137_v21 = vpop.xlane.xlu1 %2136 }
0x118e   :  { %v2140_v24 = vmul.f32 0.03125, %v2137_v21  ;;  %v5836_v21 = vld [vmem:[%s7186_s28 + $0x48] sm:$0xff]  }
0x1190   :  { %v2142_v19 = vsub.f32 %v2129_v14, %v2140_v24  ;;  %v5834_v14 = vld [vmem:[%s7186_s28 + $0x40] sm:$0xff]  }
0x1192   :  { %v2144_v33 = vmul.f32 %v2142_v19, %v2142_v19 }
0x1194   :  { %v2148_v34 = vsel %vm103_vm1, %v2144_v33, 0.0 }
0x1195   :  { %2149 = vadd.xlane.f32.xlu1 %v2148_v34 }
0x1222   :  { %v2150_v32 = vpop.xlane.xlu1 %2149 }
0x1223   :  { %v2152_v40 = vmul.f32 0.03125, %v2150_v32 }
0x1225   :  { %v2154_v42 = vadd.f32 1e-05, %v2152_v40  ;;  %v4910_v40 = vld [vmem:[%s7168_s17] ss:$0 sm:$0xff] }
0x1227   :  { %5899 = vrsqrt.f32 %v2154_v42 }
0x1231   :  { %v5900_v47 = vpop.eup %5899 }
0x1232   :  { %v2158_v37 = vmul.f32 %v5900_v47, %v2142_v19  ;;  %v5838_v47 = vld [vmem:[%s7183_s25 + $0x50] sm:$0xff]  }
0x1234   :  { %v2166_v48 = vmul.f32 %v4897_v43, %v2158_v37  ;;  %v5837_v43 = vld [vmem:[%s7183_s25 + $0x40] sm:$0xff]   ;;  %v5839_v37 = vld [vmem:[%s7183_s25 + $0x48] sm:$0xff]  }
0x1236   :  { %v2174_v49 = vadd.f32 %v4898_v45, %v2166_v48  ;;  %v5840_v45 = vld [vmem:[%s7183_s25 + $0x58] sm:$0xff]   ;;  %v5841_v48 = vld [vmem:[%s7182_s23 + $0x50] sm:$0xff]  }
0x1238   :  { %v2179_v41 = vpack.c.bf16 %v2174_v49, %v2173_v36 }
0x123a   :  { %5517 = vmatmul.mubr.msk.bf16.vlgmr.msra.gmra.mrb[72].mxu0 %vm103_vm1, %v2179_v41  ;;  %v5844_v41 = vld [vmem:[%s7182_s23 + $0x68] sm:$0xff]  }
0x123b   :  { %5536 = vmatprep.mubr.msk.bf16.mxu0 %vm5952_vm0, %v5951_v0  ;;  %5533 = vmatpush3.bf16.msra.mxu0 %v5833_v7  ;;  %v4952_v7 = vld [vmem:[%s7156_s5 + $0x5] ss:$0 sm:$0xff] }
0x123c   :  { %5534 = vmatprep.subr.bf16.mxu0 %v5951_v0 }
0x123f   :  { %5535 = vmatpush3.bf16.msra.mxu0 %v5835_v17 }
0x1240   :  { %5540 = vmatprep.subr.bf16.mxu0 %v5951_v0 }
0x130d   :  { %v2236_v52 = vpop.f32.mrb[72].mxu0 }
0x130e   :  { %v2237_v53 = vadd.f32 %v4899_v8, %v2236_v52  ;;  %v5518_v46 = vpop.f32.mrb[73].mxu0  ;;  %v5848_v52 = vld [vmem:[%s7186_s28 + $0x68] sm:$0xff]  }
0x130f   :  { %v2239_v55 = vpop.f32.mrb[74].mxu0  ;;  %v5850_v46 = vld [vmem:[%s7183_s25 + $0x70] sm:$0xff]  }
0x1310   :  { %v2240_v35 = vadd.f32 %v4899_v8, %v2239_v55  ;;  %v5519_v44 = vpop.f32.mrb[75].mxu0  ;;  %v2243_v9 = vmax.f32 %v2237_v53, 0.0  ;;  %v5847_v8 = vld [vmem:[%s7186_s28 + $0x58] sm:$0xff]   ;;  %v5849_v53 = vld [vmem:[%s7183_s25 + $0x60] sm:$0xff]   ;;  %v5851_v55 = vld [vmem:[%s7183_s25 + $0x68] sm:$0xff]  }
0x1311   :  { %v5853_v44 = vld [vmem:[%s7182_s23 + $0x70] sm:$0xff]  }
0x1312   :  { %v2244_v54 = vmax.f32 %v2240_v35, 0.0  ;;  %v5852_v35 = vld [vmem:[%s7183_s25 + $0x78] sm:$0xff]  }
0x1314   :  { %v2253_v58 = vpack.c.bf16 %v2244_v54, %v2243_v9  ;;  %v5854_v9 = vld [vmem:[%s7182_s23 + $0x78] sm:$0xff]   ;;  %v5855_v54 = vld [vmem:[%s7186_s28 + $0x70] sm:$0xff]  }
0x1316   :  { %5529 = vmatmul.mubr.msk.bf16.vlgmr.msra.gmra.mrb[72].mxu1 %vm2285_vm5, %v2253_v58  ;;  %v5856_v58 = vld [vmem:[%s7186_s28 + $0x78] sm:$0xff]  }
0x1317   :  { %5552 = vmatprep.mubr.msk.bf16.mxu1 %vm5952_vm0, %v5951_v0  ;;  %5549 = vmatpush3.bf16.msra.mxu1 %v5834_v14 }
0x1318   :  { %5550 = vmatprep.subr.bf16.mxu1 %v5951_v0 }
0x131b   :  { %5551 = vmatpush3.bf16.msra.mxu1 %v5836_v21 }
0x131c   :  { %5564 = vmatprep.subr.bf16.mxu1 %v5951_v0 }
0x13e9   :  { %v2323_v11 = vpop.f32.mrb[72].mxu1 }
0x13ea   :  { %v2324_v60 = vadd.f32 %v4903_v26, %v2323_v11  ;;  %v5530_v61 = vpop.f32.mrb[73].mxu1 }
0x13eb   :  { %v2326_v62 = vpop.f32.mrb[74].mxu1 }
0x13ec   :  { %v2327_v63 = vadd.f32 %v4903_v26, %v2326_v62  ;;  %v5531_v1 = vpop.f32.mrb[75].mxu1  ;;  %v2330_v18 = vadd.f32 %v2324_v60, %v2173_v36  ;;  %v5842_v36 = vld [vmem:[%s7182_s23 + $0x60] sm:$0xff]  }
0x13ed   :  { %v4934_v26 = vld [vmem:[%s7158_s7 + $0x4] ss:$0 sm:$0xff] }
0x13ee   :  { %v2334_v56 = vsel %vm103_vm1, %v2330_v18, 0.0  ;;  %v2331_v2 = vadd.f32 %v2327_v63, %v2174_v49  ;;  %v5843_v49 = vld [vmem:[%s7182_s23 + $0x58] sm:$0xff]   ;;  %v4916_v1 = vld [vmem:[%s7157_s3 + $0x4] ss:$0 sm:$0xff] }
0x13ef   :  { %2335 = vadd.xlane.f32.xlu0 %v2334_v56 }
0x13f0   :  { %v2337_v3 = vsel %vm103_vm1, %v2331_v2, 0.0 }
0x13f1   :  { %2338 = vadd.xlane.f32.xlu1 %v2337_v3 }
0x147c   :  { %v2336_v59 = vpop.xlane.xlu0 %2335 }
0x147d   :  { %v2340_v5 = vmul.f32 0.03125, %v2336_v59 }
0x147e   :  { %v2339_v28 = vpop.xlane.xlu1 %2338 }
0x147f   :  { %v2342_v29 = vsub.f32 %v2330_v18, %v2340_v5  ;;  %v2341_v20 = vmul.f32 0.03125, %v2339_v28 }
0x1481   :  { %v2343_v4 = vsub.f32 %v2331_v2, %v2341_v20  ;;  %v2344_v6 = vmul.f32 %v2342_v29, %v2342_v29  ;;  %v4925_v20 = vld [vmem:[%s7156_s5 + $0x4] ss:$0 sm:$0xff] }
0x1483   :  { %v2346_v22 = vsel %vm103_vm1, %v2344_v6, 0.0  ;;  %v2345_v23 = vmul.f32 %v2343_v4, %v2343_v4 }
0x1484   :  { %2347 = vadd.xlane.f32.xlu0 %v2346_v22 }
0x1485   :  { %v2349_v57 = vsel %vm103_vm1, %v2345_v23, 0.0 }
0x1486   :  { %2350 = vadd.xlane.f32.xlu1 %v2349_v57 }
0x1511   :  { %v2348_v24 = vpop.xlane.xlu0 %2347 }
0x1512   :  { %v2352_v19 = vmul.f32 0.03125, %v2348_v24 }
0x1513   :  { %v2351_v33 = vpop.xlane.xlu1 %2350 }
0x1514   :  { %v2354_v34 = vadd.f32 1e-05, %v2352_v19  ;;  %v2353_v10 = vmul.f32 0.03125, %v2351_v33 }
0x1516   :  { %5901 = vrsqrt.f32 %v2354_v34  ;;  %v2355_v13 = vadd.f32 1e-05, %v2353_v10 }
0x1518   :  { %5903 = vrsqrt.f32 %v2355_v13 }
0x1520   :  { %v5902_v12 = vpop.eup %5901 }
0x1521   :  { %v2358_v27 = vmul.f32 %v5902_v12, %v2342_v29 }
0x1522   :  { %v5904_v31 = vpop.eup %5903 }
0x1523   :  { %v2366_v39 = vmul.f32 %v4909_v25, %v2358_v27  ;;  %v2359_v32 = vmul.f32 %v5904_v31, %v2343_v4 }
0x1525   :  { %v2367_v42 = vmul.f32 %v4909_v25, %v2359_v32  ;;  %v6622_v15 = vadd.f32 %v4910_v40, %v2366_v39 }
0x1527   :  { %v6624_v16 = vadd.f32 %v4910_v40, %v2367_v42  ;;  %v4943_v40 = vld [vmem:[%s7157_s3 + $0x5] ss:$0 sm:$0xff]  ;;  %v6790_v42 = vld [vmem:[%s7157_s3 + $0x6] ss:$0 sm:$0xff] }
0x1529   :  { %v6634_v30 = vpack.c.bf16 %v6624_v16, %v6622_v15 }
0x152b   :  { %5537 = vmatmul.mubr.msk.bf16.vlgmr.msra.gmra.mrb[76].mxu0 %vm103_vm1, %v6634_v30  ;;  %5553 = vmatmul.mubr.msk.bf16.vlgmr.msra.gmra.mrb[76].mxu1 %vm103_vm1, %v6634_v30 }
0x152c   :  { %5541 = vmatpush3.bf16.msra.mxu0 %v5837_v43  ;;  %5565 = vmatpush3.bf16.msra.mxu1 %v5838_v47 }
0x152d   :  { %5542 = vmatprep.subr.bf16.mxu0 %v5951_v0  ;;  %5566 = vmatprep.subr.bf16.mxu1 %v5951_v0 }
0x152e   :  { %5544 = vmatprep.mubr.msk.bf16.mxu0 %vm5952_vm0, %v5951_v0  ;;  %5568 = vmatprep.mubr.msk.bf16.mxu1 %vm5952_vm0, %v5951_v0 }
0x1530   :  { %5543 = vmatpush3.bf16.msra.mxu0 %v5839_v37  ;;  %5567 = vmatpush3.bf16.msra.mxu1 %v5840_v45 }
0x1531   :  { %5556 = vmatprep.subr.bf16.mxu0 %v5951_v0  ;;  %5580 = vmatprep.subr.bf16.mxu1 %v5951_v0 }
0x1533   :  { %5545 = vmatmul.mubr.msk.bf16.vlgmr.msra.gmra.mrb[80].mxu0 %vm103_vm1, %v6634_v30  ;;  %5569 = vmatmul.mubr.msk.bf16.vlgmr.msra.gmra.mrb[80].mxu1 %vm103_vm1, %v6634_v30 }
0x1534   :  { %5557 = vmatpush3.bf16.msra.mxu0 %v5841_v48  ;;  %5581 = vmatpush3.bf16.msra.mxu1 %v5842_v36 }
0x1535   :  { %5558 = vmatprep.subr.bf16.mxu0 %v5951_v0  ;;  %5582 = vmatprep.subr.bf16.mxu1 %v5951_v0 }
0x1536   :  { %5560 = vmatprep.mubr.msk.bf16.mxu0 %vm5952_vm0, %v5951_v0  ;;  %5584 = vmatprep.mubr.msk.bf16.mxu1 %vm5952_vm0, %v5951_v0 }
0x1538   :  { %5559 = vmatpush3.bf16.msra.mxu0 %v5843_v49  ;;  %5583 = vmatpush3.bf16.msra.mxu1 %v5844_v41 }
0x1539   :  { %5572 = vmatprep.subr.bf16.mxu0 %v5951_v0  ;;  %5596 = vmatprep.subr.bf16.mxu1 %v5951_v0 }
0x153b   :  { %5561 = vmatmul.mubr.msk.bf16.vlgmr.msra.gmra.mrb[84].mxu0 %vm103_vm1, %v6634_v30  ;;  %5585 = vmatmul.mubr.msk.bf16.vlgmr.msra.gmra.mrb[84].mxu1 %vm103_vm1, %v6634_v30 }
0x153c   :  { %5573 = vmatpush3.bf16.msra.mxu0 %v5845_v50  ;;  %5597 = vmatpush3.bf16.msra.mxu1 %v5846_v51 }
0x153d   :  { %5574 = vmatprep.subr.bf16.mxu0 %v5951_v0  ;;  %5598 = vmatprep.subr.bf16.mxu1 %v5951_v0 }
0x153e   :  { %5576 = vmatprep.mubr.msk.bf16.mxu0 %vm5952_vm0, %v5951_v0  ;;  %5600 = vmatprep.mubr.msk.bf16.mxu1 %vm5952_vm0, %v5951_v0 }
0x1540   :  { %5575 = vmatpush3.bf16.msra.mxu0 %v5847_v8  ;;  %5599 = vmatpush3.bf16.msra.mxu1 %v5848_v52 }
0x1541   :  { %5588 = vmatprep.subr.bf16.mxu0 %v5951_v0  ;;  %5612 = vmatprep.subr.bf16.mxu1 %v5951_v0 }
0x1543   :  { %5577 = vmatmul.mubr.msk.bf16.vlgmr.msra.gmra.mrb[88].mxu0 %vm103_vm1, %v6634_v30  ;;  %5601 = vmatmul.mubr.msk.bf16.vlgmr.msra.gmra.mrb[88].mxu1 %vm103_vm1, %v6634_v30 }
0x1544   :  { %5589 = vmatpush3.bf16.msra.mxu0 %v5849_v53  ;;  %5613 = vmatpush3.bf16.msra.mxu1 %v5850_v46  ;;  %v6809_v53 = vld [vmem:[%s7158_s7 + $0x5] ss:$0 sm:$0xff]  ;;  %v6814_v46 = vld [vmem:[%s7158_s7 + $0x6] ss:$0 sm:$0xff] }
0x1545   :  { %5590 = vmatprep.subr.bf16.mxu0 %v5951_v0  ;;  %5614 = vmatprep.subr.bf16.mxu1 %v5951_v0 }
0x1546   :  { %5592 = vmatprep.mubr.msk.bf16.mxu0 %vm5952_vm0, %v5951_v0  ;;  %5616 = vmatprep.mubr.msk.bf16.mxu1 %vm5952_vm0, %v5951_v0 }
0x1548   :  { %5591 = vmatpush3.bf16.msra.mxu0 %v5851_v55  ;;  %5615 = vmatpush3.bf16.msra.mxu1 %v5852_v35 }
0x1549   :  { %5604 = vmatprep.subr.bf16.mxu0 %v5951_v0  ;;  %5628 = vmatprep.subr.bf16.mxu1 %v5951_v0 }
0x154b   :  { %5593 = vmatmul.mubr.msk.bf16.vlgmr.msra.gmra.mrb[92].mxu0 %vm103_vm1, %v6634_v30  ;;  %5617 = vmatmul.mubr.msk.bf16.vlgmr.msra.gmra.mrb[92].mxu1 %vm103_vm1, %v6634_v30 }
0x154c   :  { %5605 = vmatpush3.bf16.msra.mxu0 %v5853_v44  ;;  %5608 = vmatprep.mubr.msk.bf16.mxu0 %vm5952_vm0, %v5951_v0 }
0x154d   :  { %5606 = vmatprep.subr.bf16.mxu0 %v5951_v0  ;;  %5630 = vmatprep.mubr.msk.bf16.mxu1 %vm5952_vm0, %v5951_v0 }
0x1550   :  { %5607 = vmatpush3.bf16.msra.mxu0 %v5854_v9 }
0x1551   :  { %5620 = vmatprep.subr.bf16.mxu0 %v5951_v0 }
0x1553   :  { %5609 = vmatmul.mubr.msk.bf16.vlgmr.msra.gmra.mrb[96].mxu0 %vm103_vm1, %v6634_v30 }
0x1554   :  { %5621 = vmatpush3.bf16.msra.mxu0 %v5855_v54  ;;  %5624 = vmatprep.mubr.msk.bf16.mxu0 %vm5952_vm0, %v5951_v0 }
0x1555   :  { %5622 = vmatprep.subr.bf16.mxu0 %v5951_v0 }
0x1558   :  { %5623 = vmatpush3.bf16.msra.mxu0 %v5856_v58 }
0x1559   :  { %5634 = vmatprep.subr.bf16.mxu0 %v5951_v0 }
0x155b   :  { %5625 = vmatmul.mubr.msk.bf16.vlgmr.msra.gmra.mrb[100].mxu0 %vm103_vm1, %v6634_v30 }
0x155c   :  { %5636 = vmatprep.mubr.msk.bf16.mxu0 %vm5952_vm0, %v5951_v0 }
0x15fe   :  { %v2439_v11 = vpop.f32.mrb[76].mxu0  ;;  %v2571_v60 = vpop.f32.mrb[76].mxu1 }
0x15ff   :  { %v2572_v61 = vadd.f32 %v4934_v26, %v2571_v60  ;;  %v5538_v62 = vpop.f32.mrb[77].mxu0  ;;  %v5554_v63 = vpop.f32.mrb[77].mxu1  ;;  %v2440_v12 = vadd.f32 %v4916_v1, %v2439_v11 }
0x1600   :  { %v2442_v18 = vpop.f32.mrb[78].mxu0  ;;  %v2574_v56 = vpop.f32.mrb[78].mxu1  ;;  %v6832_v63 = vld [vmem:[%s7156_s5 + $0x6] ss:$0 sm:$0xff] }
0x1601   :  { %v3234_v2 = vpack.c.bf16 %v2572_v61, %v2572_v61  ;;  %v6764_v3 = vadd.f32 %v4916_v1, %v2442_v18  ;;  %v6766_v59 = vadd.f32 %v4934_v26, %v2574_v56  ;;  %v5539_v5 = vpop.f32.mrb[79].mxu0  ;;  %v5555_v28 = vpop.f32.mrb[79].mxu1  ;;  %v3172_v30 = vpack.c.bf16 %v2440_v12, %v2440_v12  ;;  %v6837_v1 = vld [vmem:[%s7156_s5 + $0x7] ss:$0 sm:$0xff] }
0x1603   :  { %v3239_v29 = vsel %vm937_vm3, %v3234_v2, 0 }
0x1604   :  { %5635 = vmatpush3.bf16.msra.mxu0 %v3239_v29 }
0x1605   :  { %5646 = vmatprep.subr.bf16.mxu0 %v5951_v0 }
0x1606   :  { %v2505_v4 = vpop.f32.mrb[80].mxu0  ;;  %v2703_v6 = vpop.f32.mrb[80].mxu1 }
0x1607   :  { %v2506_v22 = vadd.f32 %v4925_v20, %v2505_v4  ;;  %v5546_v23 = vpop.f32.mrb[81].mxu0  ;;  %v5570_v57 = vpop.f32.mrb[81].mxu1  ;;  %v2704_v13 = vadd.f32 %v4952_v7, %v2703_v6  ;;  %v6850_v6 = vld [vmem:[%s7157_s3 + $0x7] ss:$0 sm:$0xff] }
0x1608   :  { %v2508_v14 = vpop.f32.mrb[82].mxu0  ;;  %v2706_v17 = vpop.f32.mrb[82].mxu1 }
0x1609   :  { %v3173_v21 = vpack.c.bf16 %v2506_v22, %v2506_v22  ;;  %v6776_v24 = vadd.f32 %v4925_v20, %v2508_v14  ;;  %v6778_v19 = vadd.f32 %v4952_v7, %v2706_v17  ;;  %v5547_v33 = vpop.f32.mrb[83].mxu0  ;;  %v5571_v34 = vpop.f32.mrb[83].mxu1  ;;  %v3285_v31 = vpack.c.bf16 %v2704_v13, %v2704_v13  ;;  %v6860_v17 = vld [vmem:[%s7158_s7 + $0x7] ss:$0 sm:$0xff] }
0x160b   :  { %v3178_v10 = vsel %vm872_vm2, %v3173_v21, 0  ;;  %v3290_v49 = vsel %vm872_vm2, %v3285_v31, 0 }
0x160c   :  { %5629 = vmatpush3.bf16.xpose.msra.mxu1 %v3178_v10 }
0x160d   :  { %5640 = vmatprep.subr.bf16.mxu1 %v5951_v0 }
0x160e   :  { %v2637_v25 = vpop.f32.mrb[84].mxu0  ;;  %v6782_v27 = vpop.f32.mrb[84].mxu1 }
0x160f   :  { %v5562_v39 = vpop.f32.mrb[85].mxu0  ;;  %v5586_v32 = vpop.f32.mrb[85].mxu1  ;;  %v2638_v41 = vadd.f32 %v4943_v40, %v2637_v25 }
0x1610   :  { %v2640_v43 = vpop.f32.mrb[86].mxu0  ;;  %v2838_v47 = vpop.f32.mrb[86].mxu1 }
0x1611   :  { %v6792_v37 = vadd.f32 %v4943_v40, %v2640_v43  ;;  %v6795_v45 = vadd.f32 %v6790_v42, %v2838_v47  ;;  %v5563_v48 = vpop.f32.mrb[87].mxu0  ;;  %v5587_v36 = vpop.f32.mrb[87].mxu1  ;;  %v3284_v44 = vpack.c.bf16 %v2638_v41, %v2638_v41 }
0x1613   :  { %5631 = vmatmul.mubr.msk.bf16.vlgmr.msra.gmra.mrb[96].mxu1 %vm872_vm2, %v3172_v30 }
0x1614   :  { %5641 = vmatpush3.bf16.xpose.msra.mxu1 %v3290_v49  ;;  %5642 = vmatprep.mubr.msk.bf16.mxu1 %vm5952_vm0, %v5951_v0 }
0x1615   :  { %5652 = vmatprep.subr.bf16.mxu1 %v5951_v0 }
0x1616   :  { %v6802_v50 = vpop.f32.mrb[88].mxu0  ;;  %v6804_v51 = vpop.f32.mrb[88].mxu1 }
0x1617   :  { %v5578_v8 = vpop.f32.mrb[89].mxu0  ;;  %v5602_v52 = vpop.f32.mrb[89].mxu1 }
0x1618   :  { %v2772_v55 = vpop.f32.mrb[90].mxu0  ;;  %v2970_v35 = vpop.f32.mrb[90].mxu1 }
0x1619   :  { %v6817_v9 = vadd.f32 %v6809_v53, %v2772_v55  ;;  %v6820_v54 = vadd.f32 %v6814_v46, %v2970_v35  ;;  %v5579_v58 = vpop.f32.mrb[91].mxu0  ;;  %v5603_v26 = vpop.f32.mrb[91].mxu1 }
0x161b   :  { %5643 = vmatmul.mubr.msk.bf16.vlgmr.msra.gmra.mrb[100].mxu1 %vm872_vm2, %v3284_v44 }
0x161c   :  { %5654 = vmatprep.mubr.msk.bf16.mxu1 %vm5952_vm0, %v5951_v0 }
0x161e   :  { %v6825_v11 = vpop.f32.mrb[92].mxu0  ;;  %v6827_v60 = vpop.f32.mrb[92].mxu1 }
0x161f   :  { %v5594_v61 = vpop.f32.mrb[93].mxu0  ;;  %v5618_v62 = vpop.f32.mrb[93].mxu1 }
0x1620   :  { %v2904_v18 = vpop.f32.mrb[94].mxu0  ;;  %v3102_v56 = vpop.f32.mrb[94].mxu1 }
0x1621   :  { %v6840_v2 = vadd.f32 %v6832_v63, %v2904_v18  ;;  %v6843_v5 = vadd.f32 %v6837_v1, %v3102_v56  ;;  %v5595_v28 = vpop.f32.mrb[95].mxu0  ;;  %v5619_v29 = vpop.f32.mrb[95].mxu1  ;;  %v2770_v56 = vadd.f32 %v6809_v53, %v6802_v50  ;;  %v5021_v50 = vld [vmem:[%s7159_s8 + $0x10] sm:$0xf] }
0x1626   :  { %v6845_v20 = vpop.f32.mrb[96].mxu0 }
0x1627   :  { %v5610_v4 = vpop.f32.mrb[97].mxu0 }
0x1628   :  { %v3036_v22 = vpop.f32.mrb[98].mxu0  ;;  %v3346_v4 = vpack.c.bf16 %v2770_v56, %v2770_v56 }
0x1629   :  { %v6853_v23 = vadd.f32 %v6850_v6, %v3036_v22  ;;  %v5611_v57 = vpop.f32.mrb[99].mxu0 }
0x162e   :  { %v6855_v7 = vpop.f32.mrb[100].mxu0 }
0x162f   :  { %v5626_v14 = vpop.f32.mrb[101].mxu0 }
0x1630   :  { %v3168_v21 = vpop.f32.mrb[102].mxu0  ;;  %v3351_v14 = vsel %vm937_vm3, %v3346_v4, 0 }
0x1631   :  { %v6863_v33 = vadd.f32 %v6860_v17, %v3168_v21  ;;  %v5627_v34 = vpop.f32.mrb[103].mxu0 }
0x16e6   :  { %v3214_v10 = vpop.f32.mrb[96].mxu1 }
0x16e7   :  { %v3220_v13 = vmul.f32 0.35355338, %v3214_v10  ;;  %v5632_v12 = vpop.f32.mrb[97].mxu1  ;;  %v6884_v10 = vsel %vm937_vm3, %v5021_v50, 0 }
0x16e8   :  { %v3217_v25 = vpop.f32.mrb[98].mxu1 }
0x16e9   :  { %v5633_v31 = vpop.f32.mrb[99].mxu1  ;;  %v3221_v39 = vsel %vm6296_vm4, %v3220_v13, -1e+09  ;;  %v5024_v13 = vld [vmem:[%s7159_s8 + $0x14] sm:$0xf]  ;;  %v2968_v25 = vadd.f32 %v6814_v46, %v6804_v51 }
0x16ea   :  { %v3222_v32 = vsel %vm872_vm2, %v3221_v39, -inf  ;;  %v6895_v12 = vsel %vm937_vm3, %v5024_v13, 0  ;;  %v5029_v13 = vld [vmem:[%s7159_s8 + $0x18] sm:$0xf] }
0x16eb   :  { %3223 = vmax.xlane.f32.xlu0 %v3222_v32  ;;  %5653 = vmatpush3.bf16.msra.mxu1 %v6895_v12  ;;  %v3550_v31 = vpack.c.bf16 %v2968_v25, %v2968_v25  ;;  %v6928_v25 = vsel %vm937_vm3, %v5029_v13, 0  ;;  %v3925_v13 = vpack.c.bf16 %v6792_v37, %v6792_v37 }
0x16ec   :  { %5664 = vmatprep.subr.bf16.mxu1 %v5951_v0 }
0x16ee   :  { %v3326_v40 = vpop.f32.mrb[100].mxu1 }
0x16ef   :  { %v3332_v43 = vmul.f32 0.35355338, %v3326_v40  ;;  %v5644_v47 = vpop.f32.mrb[101].mxu1 }
0x16f0   :  { %v3329_v30 = vpop.f32.mrb[102].mxu1  ;;  %v3555_v47 = vsel %vm937_vm3, %v3550_v31, 0 }
0x16f1   :  { %v5645_v48 = vpop.f32.mrb[103].mxu1  ;;  %v3333_v36 = vsel %vm6296_vm4, %v3332_v43, -1e+09  ;;  %v2902_v30 = vadd.f32 %v6832_v63, %v6825_v11  ;;  %v2836_v11 = vadd.f32 %v6790_v42, %v6782_v27 }
0x16f2   :  { %v3334_v49 = vsel %vm872_vm2, %v3333_v36, -inf }
0x16f3   :  { %3335 = vmax.xlane.f32.xlu1 %v3334_v49  ;;  %v3489_v51 = vpack.c.bf16 %v2902_v30, %v2902_v30  ;;  %v3488_v63 = vpack.c.bf16 %v2836_v11, %v2836_v11 }
0x1778   :  { %v3224_v41 = vpop.xlane.xlu0 %3223 }
0x1779   :  { %v3225_v8 = vsub.f32 %v3221_v39, %v3224_v41 }
0x177b   :  { %v3226_v52 = vmul.f32 1.442695, %v3225_v8  ;;  %v3494_v8 = vsel %vm872_vm2, %v3489_v51, 0 }
0x177d   :  { %5905 = vpow2.f32 %v3226_v52 }
0x1780   :  { %v3336_v55 = vpop.xlane.xlu1 %3335 }
0x1781   :  { %v3337_v35 = vsub.f32 %v3333_v36, %v3336_v55 }
0x1783   :  { %v3338_v44 = vmul.f32 1.442695, %v3337_v35 }
0x1785   :  { %5907 = vpow2.f32 %v3338_v44 }
0x1787   :  { %v5906_v58 = vpop.eup %5905 }
0x1788   :  { %v3228_v26 = vsel %vm872_vm2, %v5906_v58, 0.0 }
0x1789   :  { %3229 = vadd.xlane.f32.xlu0 %v3228_v26 }
0x178f   :  { %v5908_v61 = vpop.eup %5907 }
0x1790   :  { %v3340_v62 = vsel %vm872_vm2, %v5908_v61, 0.0 }
0x1791   :  { %3341 = vadd.xlane.f32.xlu1 %v3340_v62 }
0x1816   :  { %v3230_v18 = vpop.xlane.xlu0 %3229 }
0x1817   :  { %5909 = vrcp.f32 %v3230_v18 }
0x181e   :  { %v3342_v28 = vpop.xlane.xlu1 %3341 }
0x181f   :  { %5911 = vrcp.f32 %v3342_v28 }
0x1821   :  { %v5910_v29 = vpop.eup %5909 }
0x1822   :  { %v3232_v22 = vmul.f32 %v5910_v29, %v5906_v58 }
0x1824   :  { %v3233_v57 = vpack.c.bf16 %v3232_v22, %v3232_v22 }
0x1826   :  { %5637 = vmatmul.mubr.msk.bf16.vlgmr.msra.gmra.mrb[104].mxu0 %vm872_vm2, %v3233_v57 }
0x1827   :  { %5647 = vmatpush3.bf16.msra.mxu0 %v3351_v14  ;;  %5648 = vmatprep.mubr.msk.bf16.mxu0 %vm5952_vm0, %v5951_v0 }
0x1828   :  { %5658 = vmatprep.subr.bf16.mxu0 %v5951_v0 }
0x1829   :  { %v5912_v21 = vpop.eup %5911 }
0x182a   :  { %v3344_v53 = vmul.f32 %v5912_v21, %v5908_v61 }
0x182c   :  { %v3345_v34 = vpack.c.bf16 %v3344_v53, %v3344_v53 }
0x182e   :  { %5649 = vmatmul.mubr.msk.bf16.vlgmr.msra.gmra.mrb[108].mxu0 %vm872_vm2, %v3345_v34 }
0x182f   :  { %5659 = vmatpush3.bf16.msra.mxu0 %v6884_v10  ;;  %5660 = vmatprep.mubr.msk.bf16.mxu0 %vm5952_vm0, %v5951_v0 }
0x1830   :  { %5670 = vmatprep.subr.bf16.mxu0 %v5951_v0 }
0x18f9   :  { %v3275_v39 = vpop.f32.mrb[104].mxu0 }
0x18fa   :  { %v3283_v32 = vpack.c.bf16 %v3275_v39, %v3275_v39  ;;  %v5638_v40 = vpop.f32.mrb[105].mxu0  ;;  %v3100_v39 = vadd.f32 %v6837_v1, %v6827_v60  ;;  %v3166_v60 = vadd.f32 %v6860_v17, %v6855_v7 }
0x18fb   :  { %v3278_v43 = vpop.f32.mrb[106].mxu0 }
0x18fc   :  { %v5639_v48 = vpop.f32.mrb[107].mxu0  ;;  %5661 = vmatmul.mubr.msk.bf16.vlgmr.msra.gmra.mrb[112].mxu0 %vm872_vm2, %v3283_v32  ;;  %v3648_v40 = vpack.c.bf16 %v3100_v39, %v3100_v39  ;;  %v3709_v1 = vpack.c.bf16 %v3166_v60, %v3166_v60 }
0x18fd   :  { %5671 = vmatpush3.bf16.msra.mxu0 %v3555_v47  ;;  %5672 = vmatprep.mubr.msk.bf16.mxu0 %vm5952_vm0, %v5951_v0  ;;  %v3034_v48 = vadd.f32 %v6850_v6, %v6845_v20 }
0x18fe   :  { %5682 = vmatprep.subr.bf16.mxu0 %v5951_v0  ;;  %v3653_v30 = vsel %vm872_vm2, %v3648_v40, 0 }
0x18ff   :  { %v3647_v51 = vpack.c.bf16 %v3034_v48, %v3034_v48 }
0x1901   :  { %v3387_v46 = vpop.f32.mrb[108].mxu0 }
0x1902   :  { %v3395_v36 = vpack.c.bf16 %v3387_v46, %v3387_v46  ;;  %v5650_v49 = vpop.f32.mrb[109].mxu0 }
0x1903   :  { %v3390_v41 = vpop.f32.mrb[110].mxu0 }
0x1904   :  { %v5651_v52 = vpop.f32.mrb[111].mxu0  ;;  %5655 = vmatmul.mubr.msk.bf16.vlgmr.msra.gmra.mrb[104].mxu1 %vm872_vm2, %v3395_v36 }
0x1905   :  { %5665 = vmatpush3.bf16.xpose.msra.mxu1 %v3494_v8  ;;  %5666 = vmatprep.mubr.msk.bf16.mxu1 %vm5952_vm0, %v5951_v0  ;;  %v3714_v8 = vsel %vm937_vm3, %v3709_v1, 0 }
0x1906   :  { %5676 = vmatprep.subr.bf16.mxu1 %v5951_v0 }
0x190c   :  { %5667 = vmatmul.mubr.msk.bf16.vlgmr.msra.gmra.mrb[108].mxu1 %vm872_vm2, %v3488_v63 }
0x190d   :  { %5678 = vmatprep.mubr.msk.bf16.mxu1 %vm5952_vm0, %v5951_v0  ;;  %5677 = vmatpush3.bf16.msra.mxu1 %v6928_v25 }
0x190e   :  { %5688 = vmatprep.subr.bf16.mxu1 %v5951_v0 }
0x19cf   :  { %v3482_v55 = vpop.f32.mrb[112].mxu0 }
0x19d0   :  { %v5662_v35 = vpop.f32.mrb[113].mxu0 }
0x19d1   :  { %v3485_v44 = vpop.f32.mrb[114].mxu0 }
0x19d2   :  { %v5663_v58 = vpop.f32.mrb[115].mxu0 }
0x19d7   :  { %v3436_v26 = vpop.f32.mrb[104].mxu1 }
0x19d8   :  { %v6918_v61 = vadd.f32 %v3482_v55, %v3436_v26  ;;  %v5656_v62 = vpop.f32.mrb[105].mxu1 }
0x19d9   :  { %v3439_v18 = vpop.f32.mrb[106].mxu1 }
0x19da   :  { %v5657_v56 = vpop.f32.mrb[107].mxu1 }
0x19df   :  { %v3530_v28 = vpop.f32.mrb[108].mxu1 }
0x19e0   :  { %v3536_v27 = vmul.f32 0.35355338, %v3530_v28  ;;  %v5668_v42 = vpop.f32.mrb[109].mxu1 }
0x19e1   :  { %v3533_v29 = vpop.f32.mrb[110].mxu1  ;;  %v5033_v42 = vld [vmem:[%s7159_s8 + $0x1c] sm:$0xf] }
0x19e2   :  { %v5669_v4 = vpop.f32.mrb[111].mxu1  ;;  %v3537_v22 = vsel %vm6296_vm4, %v3536_v27, -1e+09 }
0x19e3   :  { %v3538_v57 = vsel %vm872_vm2, %v3537_v22, -inf  ;;  %v6962_v4 = vsel %vm937_vm3, %v5033_v42, 0 }
0x19e4   :  { %3539 = vmax.xlane.f32.xlu0 %v3538_v57 }
0x1a71   :  { %v3540_v14 = vpop.xlane.xlu0 %3539 }
0x1a72   :  { %v3541_v21 = vsub.f32 %v3537_v22, %v3540_v14 }
0x1a74   :  { %v3542_v50 = vmul.f32 1.442695, %v3541_v21 }
0x1a76   :  { %5913 = vpow2.f32 %v3542_v50 }
0x1a80   :  { %v5914_v53 = vpop.eup %5913 }
0x1a81   :  { %v3544_v34 = vsel %vm872_vm2, %v5914_v53, 0.0 }
0x1a82   :  { %3545 = vadd.xlane.f32.xlu1 %v3544_v34  ;;  %v3815_v34 = vpack.c.bf16 %v6764_v3, %v6764_v3  ;;  %v3877_v3 = vpack.c.bf16 %v6766_v59, %v6766_v59 }
0x1a84   :  { %v3882_v40 = vsel %vm937_vm3, %v3877_v3, 0 }
0x1b0f   :  { %v3546_v31 = vpop.xlane.xlu1 %3545 }
0x1b10   :  { %5915 = vrcp.f32 %v3546_v31 }
0x1b1a   :  { %v5916_v32 = vpop.eup %5915 }
0x1b1b   :  { %v3548_v43 = vmul.f32 %v5916_v32, %v5914_v53  ;;  %v3926_v53 = vpack.c.bf16 %v6778_v19, %v6778_v19 }
0x1b1d   :  { %v3549_v47 = vpack.c.bf16 %v3548_v43, %v3548_v43 }
0x1b1f   :  { %5673 = vmatmul.mubr.msk.bf16.vlgmr.msra.gmra.mrb[116].mxu0 %vm872_vm2, %v3549_v47 }
0x1b20   :  { %5683 = vmatpush3.bf16.xpose.msra.mxu0 %v3653_v30  ;;  %5684 = vmatprep.mubr.msk.bf16.mxu0 %vm5952_vm0, %v5951_v0 }
0x1b21   :  { %5694 = vmatprep.subr.bf16.mxu0 %v5951_v0 }
0x1b27   :  { %5685 = vmatmul.mubr.msk.bf16.vlgmr.msra.gmra.mrb[120].mxu0 %vm872_vm2, %v3647_v51 }
0x1b28   :  { %5696 = vmatprep.mubr.msk.bf16.mxu0 %vm5952_vm0, %v5951_v0  ;;  %5695 = vmatpush3.bf16.msra.mxu0 %v6962_v4 }
0x1b29   :  { %5706 = vmatprep.subr.bf16.mxu0 %v5951_v0 }
0x1bf2   :  { %v3591_v46 = vpop.f32.mrb[116].mxu0 }
0x1bf3   :  { %v3599_v36 = vpack.c.bf16 %v3591_v46, %v3591_v46  ;;  %v5674_v49 = vpop.f32.mrb[117].mxu0 }
0x1bf4   :  { %v3594_v41 = vpop.f32.mrb[118].mxu0 }
0x1bf5   :  { %v5675_v52 = vpop.f32.mrb[119].mxu0  ;;  %5679 = vmatmul.mubr.msk.bf16.vlgmr.msra.gmra.mrb[112].mxu1 %vm872_vm2, %v3599_v36 }
0x1bf6   :  { %5689 = vmatpush3.bf16.msra.mxu1 %v3714_v8  ;;  %5690 = vmatprep.mubr.msk.bf16.mxu1 %vm5952_vm0, %v5951_v0 }
0x1bf7   :  { %5700 = vmatprep.subr.bf16.mxu1 %v5951_v0 }
0x1bfa   :  { %v3689_v20 = vpop.f32.mrb[120].mxu0 }
0x1bfb   :  { %v3695_v6 = vmul.f32 0.35355338, %v3689_v20  ;;  %v5686_v11 = vpop.f32.mrb[121].mxu0 }
0x1bfc   :  { %v3692_v7 = vpop.f32.mrb[122].mxu0 }
0x1bfd   :  { %v5687_v17 = vpop.f32.mrb[123].mxu0  ;;  %v3696_v63 = vsel %vm6296_vm4, %v3695_v6, -1e+09 }
0x1bfe   :  { %v3697_v55 = vsel %vm872_vm2, %v3696_v63, -inf }
0x1bff   :  { %3698 = vmax.xlane.f32.xlu0 %v3697_v55 }
0x1c8c   :  { %v3699_v35 = vpop.xlane.xlu0 %3698 }
0x1c8d   :  { %v3700_v44 = vsub.f32 %v3696_v63, %v3699_v35 }
0x1c8f   :  { %v3701_v58 = vmul.f32 1.442695, %v3700_v44 }
0x1c91   :  { %5917 = vpow2.f32 %v3701_v58 }
0x1c9b   :  { %v5918_v26 = vpop.eup %5917 }
0x1c9c   :  { %v3703_v62 = vsel %vm872_vm2, %v5918_v26, 0.0 }
0x1c9d   :  { %3704 = vadd.xlane.f32.xlu1 %v3703_v62 }
0x1cc8   :  { %v3640_v18 = vpop.f32.mrb[112].mxu1 }
0x1cc9   :  { %v6956_v56 = vadd.f32 %v3640_v18, %v6918_v61  ;;  %v5680_v28 = vpop.f32.mrb[113].mxu1  ;;  %v3816_v61 = vpack.c.bf16 %v6776_v24, %v6776_v24  ;;  %v3931_v24 = vsel %vm872_vm2, %v3926_v53, 0 }
0x1cca   :  { %v3643_v27 = vpop.f32.mrb[114].mxu1 }
0x1ccb   :  { %v5681_v29 = vpop.f32.mrb[115].mxu1  ;;  %v3821_v50 = vsel %vm872_vm2, %v3816_v61, 0 }
0x1d2a   :  { %v3705_v22 = vpop.xlane.xlu1 %3704 }
0x1d2b   :  { %5919 = vrcp.f32 %v3705_v22  ;;  %v3987_v22 = vpack.c.bf16 %v6817_v9, %v6817_v9  ;;  %v4183_v9 = vpack.c.bf16 %v6820_v54, %v6820_v54 }
0x1d2d   :  { %v4188_v3 = vsel %vm937_vm3, %v4183_v9, 0 }
0x1d35   :  { %v5920_v57 = vpop.eup %5919 }
0x1d36   :  { %v3707_v14 = vmul.f32 %v5920_v57, %v5918_v26 }
0x1d38   :  { %v3708_v21 = vpack.c.bf16 %v3707_v14, %v3707_v14  ;;  %v3992_v14 = vsel %vm937_vm3, %v3987_v22, 0 }
0x1d3a   :  { %5691 = vmatmul.mubr.msk.bf16.vlgmr.msra.gmra.mrb[116].mxu1 %vm872_vm2, %v3708_v21 }
0x1d3b   :  { %5701 = vmatpush3.bf16.xpose.msra.mxu1 %v3821_v50  ;;  %5702 = vmatprep.mubr.msk.bf16.mxu1 %vm5952_vm0, %v5951_v0 }
0x1d3c   :  { %5712 = vmatprep.subr.bf16.mxu1 %v5951_v0 }
0x1d42   :  { %5703 = vmatmul.mubr.msk.bf16.vlgmr.msra.gmra.mrb[120].mxu1 %vm872_vm2, %v3815_v34 }
0x1d43   :  { %5713 = vmatpush3.bf16.xpose.msra.mxu1 %v3931_v24  ;;  %5714 = vmatprep.mubr.msk.bf16.mxu1 %vm5952_vm0, %v5951_v0 }
0x1d44   :  { %5724 = vmatprep.subr.bf16.mxu1 %v5951_v0 }
0x1d4a   :  { %5715 = vmatmul.mubr.msk.bf16.vlgmr.msra.gmra.mrb[124].mxu1 %vm872_vm2, %v3925_v13 }
0x1d4b   :  { %5725 = vmatpush3.bf16.msra.mxu1 %v6895_v12  ;;  %5726 = vmatprep.mubr.msk.bf16.mxu1 %vm5952_vm0, %v5951_v0 }
0x1d4c   :  { %5736 = vmatprep.subr.bf16.mxu1 %v5951_v0 }
0x1e0d   :  { %v3750_v19 = vpop.f32.mrb[116].mxu1 }
0x1e0e   :  { %v3758_v31 = vpack.c.bf16 %v3750_v19, %v3750_v19  ;;  %v5692_v39 = vpop.f32.mrb[117].mxu1 }
0x1e0f   :  { %v3753_v32 = vpop.f32.mrb[118].mxu1 }
0x1e10   :  { %v5693_v43 = vpop.f32.mrb[119].mxu1  ;;  %5697 = vmatmul.mubr.msk.bf16.vlgmr.msra.gmra.mrb[124].mxu0 %vm872_vm2, %v3758_v31 }
0x1e11   :  { %5707 = vmatpush3.bf16.msra.mxu0 %v3882_v40  ;;  %5708 = vmatprep.mubr.msk.bf16.mxu0 %vm5952_vm0, %v5951_v0 }
0x1e12   :  { %5718 = vmatprep.subr.bf16.mxu0 %v5951_v0 }
0x1e15   :  { %v3857_v37 = vpop.f32.mrb[120].mxu1 }
0x1e16   :  { %v3863_v12 = vmul.f32 0.35355338, %v3857_v37  ;;  %v5704_v47 = vpop.f32.mrb[121].mxu1  ;;  %v4121_v37 = vpack.c.bf16 %v6795_v45, %v6795_v45 }
0x1e17   :  { %v3860_v30 = vpop.f32.mrb[122].mxu1 }
0x1e18   :  { %v5705_v59 = vpop.f32.mrb[123].mxu1  ;;  %v3864_v48 = vsel %vm6296_vm4, %v3863_v12, -1e+09 }
0x1e19   :  { %v3865_v51 = vsel %vm872_vm2, %v3864_v48, -inf }
0x1e1a   :  { %3866 = vmax.xlane.f32.xlu0 %v3865_v51 }
0x1e1d   :  { %v3967_v60 = vpop.f32.mrb[124].mxu1 }
0x1e1e   :  { %v3973_v1 = vmul.f32 0.35355338, %v3967_v60  ;;  %v5716_v46 = vpop.f32.mrb[125].mxu1 }
0x1e1f   :  { %v3970_v36 = vpop.f32.mrb[126].mxu1 }
0x1e20   :  { %v5717_v49 = vpop.f32.mrb[127].mxu1  ;;  %v3974_v41 = vsel %vm6296_vm4, %v3973_v1, -1e+09 }
0x1e21   :  { %v3975_v8 = vsel %vm872_vm2, %v3974_v41, -inf }
0x1e22   :  { %3976 = vmax.xlane.f32.xlu1 %v3975_v8 }
0x1ea7   :  { %v3867_v52 = vpop.xlane.xlu0 %3866 }
0x1ea8   :  { %v3868_v20 = vsub.f32 %v3864_v48, %v3867_v52 }
0x1eaa   :  { %v3869_v6 = vmul.f32 1.442695, %v3868_v20 }
0x1eac   :  { %5921 = vpow2.f32 %v3869_v6 }
0x1eaf   :  { %v3977_v11 = vpop.xlane.xlu1 %3976 }
0x1eb0   :  { %v3978_v7 = vsub.f32 %v3974_v41, %v3977_v11 }
0x1eb2   :  { %v3979_v17 = vmul.f32 1.442695, %v3978_v7 }
0x1eb4   :  { %5923 = vpow2.f32 %v3979_v17 }
0x1eb6   :  { %v5922_v63 = vpop.eup %5921 }
0x1eb7   :  { %v3871_v55 = vsel %vm872_vm2, %v5922_v63, 0.0 }
0x1eb8   :  { %3872 = vadd.xlane.f32.xlu0 %v3871_v55  ;;  %v4276_v55 = vpack.c.bf16 %v6843_v5, %v6843_v5  ;;  %v4337_v5 = vpack.c.bf16 %v6863_v33, %v6863_v33 }
0x1ebe   :  { %v5924_v35 = vpop.eup %5923 }
0x1ebf   :  { %v3981_v44 = vsel %vm872_vm2, %v5924_v35, 0.0 }
0x1ec0   :  { %3982 = vadd.xlane.f32.xlu1 %v3981_v44 }
0x1ee3   :  { %v3799_v58 = vpop.f32.mrb[124].mxu0 }
0x1ee4   :  { %v7005_v26 = vadd.f32 %v3799_v58, %v6956_v56  ;;  %v5698_v62 = vpop.f32.mrb[125].mxu0  ;;  %v4281_v58 = vsel %vm872_vm2, %v4276_v55, 0  ;;  %v5860_v55 = vld [vmem:[%s7162_s12 + $0x28] sm:$0xff]  }
0x1ee5   :  { %v3802_v18 = vpop.f32.mrb[126].mxu0  ;;  %v4275_v62 = vpack.c.bf16 %v6853_v23, %v6853_v23  ;;  %v5036_v23 = vld [vmem:[%s7160_s9 + $0x1] ss:$0 sm:$0xff] }
0x1ee6   :  { %v5699_v28 = vpop.f32.mrb[127].mxu0  ;;  %v3814_v33 = vadd.f32 %v5036_v23, %v7005_v26 }
0x1ee8   :  { %v4430_v9 = vadd.f32 %v3814_v33, %v6622_v15  ;;  %v5052_v33 = vld [vmem:[%s7164_s15 + $0x1] ss:$0 sm:$0xff] }
0x1f45   :  { %v3873_v27 = vpop.xlane.xlu0 %3872 }
0x1f46   :  { %5925 = vrcp.f32 %v3873_v27 }
0x1f4d   :  { %v3983_v42 = vpop.xlane.xlu1 %3982 }
0x1f4e   :  { %5927 = vrcp.f32 %v3983_v42 }
0x1f50   :  { %v5926_v29 = vpop.eup %5925 }
0x1f51   :  { %v3875_v57 = vmul.f32 %v5926_v29, %v5922_v63  ;;  %v4342_v29 = vsel %vm937_vm3, %v4337_v5, 0 }
0x1f53   :  { %v3876_v61 = vpack.c.bf16 %v3875_v57, %v3875_v57 }
0x1f55   :  { %5709 = vmatmul.mubr.msk.bf16.vlgmr.msra.gmra.mrb[128].mxu0 %vm872_vm2, %v3876_v61 }
0x1f56   :  { %5719 = vmatpush3.bf16.msra.mxu0 %v3992_v14  ;;  %5720 = vmatprep.mubr.msk.bf16.mxu0 %vm5952_vm0, %v5951_v0 }
0x1f57   :  { %5730 = vmatprep.subr.bf16.mxu0 %v5951_v0 }
0x1f58   :  { %v5928_v56 = vpop.eup %5927 }
0x1f59   :  { %v3985_v21 = vmul.f32 %v5928_v56, %v5924_v35 }
0x1f5b   :  { %v3986_v50 = vpack.c.bf16 %v3985_v21, %v3985_v21 }
0x1f5d   :  { %5721 = vmatmul.mubr.msk.bf16.vlgmr.msra.gmra.mrb[132].mxu0 %vm872_vm2, %v3986_v50 }
0x1f5e   :  { %5731 = vmatpush3.bf16.msra.mxu0 %v6884_v10  ;;  %5732 = vmatprep.mubr.msk.bf16.mxu0 %vm5952_vm0, %v5951_v0  ;;  %v4122_v10 = vpack.c.bf16 %v6840_v2, %v6840_v2 }
0x1f5f   :  { %5742 = vmatprep.subr.bf16.mxu0 %v5951_v0 }
0x1f60   :  { %v4127_v40 = vsel %vm872_vm2, %v4122_v10, 0 }
0x2028   :  { %v3918_v53 = vpop.f32.mrb[128].mxu0 }
0x2029   :  { %v3924_v34 = vpack.c.bf16 %v3918_v53, %v3918_v53  ;;  %v5710_v24 = vpop.f32.mrb[129].mxu0  ;;  %v4436_v53 = vsel %vm103_vm1, %v4430_v9, 0.0 }
0x202a   :  { %v3921_v13 = vpop.f32.mrb[130].mxu0 }
0x202b   :  { %v5711_v19 = vpop.f32.mrb[131].mxu0  ;;  %5733 = vmatmul.mubr.msk.bf16.vlgmr.msra.gmra.mrb[136].mxu0 %vm872_vm2, %v3924_v34 }
0x202c   :  { %5743 = vmatpush3.bf16.msra.mxu0 %v4188_v3  ;;  %5744 = vmatprep.mubr.msk.bf16.mxu0 %vm5952_vm0, %v5951_v0 }
0x202d   :  { %5754 = vmatprep.subr.bf16.mxu0 %v5951_v0 }
0x2030   :  { %v4028_v31 = vpop.f32.mrb[132].mxu0 }
0x2031   :  { %v4034_v54 = vpack.c.bf16 %v4028_v31, %v4028_v31  ;;  %v5722_v39 = vpop.f32.mrb[133].mxu0 }
0x2032   :  { %v4031_v32 = vpop.f32.mrb[134].mxu0 }
0x2033   :  { %v5723_v43 = vpop.f32.mrb[135].mxu0  ;;  %5727 = vmatmul.mubr.msk.bf16.vlgmr.msra.gmra.mrb[128].mxu1 %vm872_vm2, %v4034_v54 }
0x2034   :  { %5737 = vmatpush3.bf16.xpose.msra.mxu1 %v4127_v40  ;;  %5738 = vmatprep.mubr.msk.bf16.mxu1 %vm5952_vm0, %v5951_v0 }
0x2035   :  { %5748 = vmatprep.subr.bf16.mxu1 %v5951_v0 }
0x203b   :  { %5739 = vmatmul.mubr.msk.bf16.vlgmr.msra.gmra.mrb[132].mxu1 %vm872_vm2, %v4121_v37 }
0x203c   :  { %5749 = vmatpush3.bf16.msra.mxu1 %v6928_v25  ;;  %5750 = vmatprep.mubr.msk.bf16.mxu1 %vm5952_vm0, %v5951_v0 }
0x203d   :  { %5760 = vmatprep.subr.bf16.mxu1 %v5951_v0 }
0x20fe   :  { %v4115_v2 = vpop.f32.mrb[136].mxu0 }
0x20ff   :  { %v5734_v12 = vpop.f32.mrb[137].mxu0 }
0x2100   :  { %v4118_v47 = vpop.f32.mrb[138].mxu0 }
0x2101   :  { %v5735_v30 = vpop.f32.mrb[139].mxu0 }
0x2106   :  { %v4072_v59 = vpop.f32.mrb[128].mxu1 }
0x2107   :  { %v7040_v48 = vadd.f32 %v4115_v2, %v4072_v59  ;;  %v5728_v51 = vpop.f32.mrb[129].mxu1 }
0x2108   :  { %v4075_v60 = vpop.f32.mrb[130].mxu1 }
0x2109   :  { %v5729_v1 = vpop.f32.mrb[131].mxu1 }
0x210e   :  { %v4163_v45 = vpop.f32.mrb[132].mxu1 }
0x210f   :  { %v4169_v46 = vmul.f32 0.35355338, %v4163_v45  ;;  %v5740_v36 = vpop.f32.mrb[133].mxu1 }
0x2110   :  { %v4166_v49 = vpop.f32.mrb[134].mxu1 }
0x2111   :  { %v5741_v25 = vpop.f32.mrb[135].mxu1  ;;  %v4170_v41 = vsel %vm6296_vm4, %v4169_v46, -1e+09 }
0x2112   :  { %v4171_v8 = vsel %vm872_vm2, %v4170_v41, -inf }
0x2113   :  { %4172 = vmax.xlane.f32.xlu0 %v4171_v8 }
0x21a0   :  { %v4173_v52 = vpop.xlane.xlu0 %4172 }
0x21a1   :  { %v4174_v20 = vsub.f32 %v4170_v41, %v4173_v52 }
0x21a3   :  { %v4175_v6 = vmul.f32 1.442695, %v4174_v20 }
0x21a5   :  { %5929 = vpow2.f32 %v4175_v6 }
0x21af   :  { %v5930_v11 = vpop.eup %5929 }
0x21b0   :  { %v4177_v7 = vsel %vm872_vm2, %v5930_v11, 0.0 }
0x21b1   :  { %4178 = vadd.xlane.f32.xlu1 %v4177_v7 }
0x223e   :  { %v4179_v17 = vpop.xlane.xlu1 %4178 }
0x223f   :  { %5931 = vrcp.f32 %v4179_v17  ;;  %v5857_v17 = vld [vmem:[%s7161_s10 + $0x10] sm:$0xff]  }
0x2249   :  { %v5932_v63 = vpop.eup %5931 }
0x224a   :  { %v4181_v35 = vmul.f32 %v5932_v63, %v5930_v11  ;;  %v5858_v63 = vld [vmem:[%s7161_s10 + $0x18] sm:$0xff]  }
0x224c   :  { %v4182_v44 = vpack.c.bf16 %v4181_v35, %v4181_v35 }
0x224e   :  { %5745 = vmatmul.mubr.msk.bf16.vlgmr.msra.gmra.mrb[140].mxu0 %vm872_vm2, %v4182_v44 }
0x224f   :  { %5755 = vmatpush3.bf16.xpose.msra.mxu0 %v4281_v58  ;;  %5756 = vmatprep.mubr.msk.bf16.mxu0 %vm5952_vm0, %v5951_v0 }
0x2250   :  { %5766 = vmatprep.subr.bf16.mxu0 %v5951_v0 }
0x2256   :  { %5757 = vmatmul.mubr.msk.bf16.vlgmr.msra.gmra.mrb[144].mxu0 %vm872_vm2, %v4275_v62 }
0x2257   :  { %5767 = vmatpush3.bf16.msra.mxu0 %v6962_v4  ;;  %5768 = vmatprep.mubr.msk.bf16.mxu0 %vm5952_vm0, %v5951_v0 }
0x2258   :  { %5780 = vmatprep.subr.bf16.mxu0 %v5951_v0 }
0x2321   :  { %v4224_v18 = vpop.f32.mrb[140].mxu0 }
0x2322   :  { %v4230_v28 = vpack.c.bf16 %v4224_v18, %v4224_v18  ;;  %v5746_v27 = vpop.f32.mrb[141].mxu0 }
0x2323   :  { %v4227_v42 = vpop.f32.mrb[142].mxu0 }
0x2324   :  { %v5747_v22 = vpop.f32.mrb[143].mxu0  ;;  %5751 = vmatmul.mubr.msk.bf16.vlgmr.msra.gmra.mrb[136].mxu1 %vm872_vm2, %v4230_v28  ;;  %v5051_v42 = vld [vmem:[%s7163_s14 + $0x1] ss:$0 sm:$0xff] }
0x2325   :  { %5761 = vmatpush3.bf16.msra.mxu1 %v4342_v29  ;;  %5762 = vmatprep.mubr.msk.bf16.mxu1 %vm5952_vm0, %v5951_v0 }
0x2326   :  { %5772 = vmatprep.subr.bf16.mxu1 %v5951_v0 }
0x2329   :  { %v4317_v4 = vpop.f32.mrb[144].mxu0 }
0x232a   :  { %v4323_v57 = vmul.f32 0.35355338, %v4317_v4  ;;  %v5758_v61 = vpop.f32.mrb[145].mxu0 }
0x232b   :  { %v4320_v14 = vpop.f32.mrb[146].mxu0 }
0x232c   :  { %v5759_v56 = vpop.f32.mrb[147].mxu0  ;;  %v4324_v21 = vsel %vm6296_vm4, %v4323_v57, -1e+09 }
0x232d   :  { %v4325_v50 = vsel %vm872_vm2, %v4324_v21, -inf  ;;  %v5861_v56 = vld [vmem:[%s7162_s12 + $0x30] sm:$0xff]  }
0x232e   :  { %4326 = vmax.xlane.f32.xlu0 %v4325_v50  ;;  %v5058_v50 = vld [vmem:[%s7165_s11 + $0x1] ss:$0 sm:$0xff] }
0x2332   :  { %4437 = vadd.xlane.f32.xlu0 %v4436_v53 }
0x23bb   :  { %v4327_v34 = vpop.xlane.xlu0 %4326 }
0x23bc   :  { %v4328_v24 = vsub.f32 %v4324_v21, %v4327_v34  ;;  %v5862_v21 = vld [vmem:[%s7162_s12 + $0x38] sm:$0xff]  }
0x23be   :  { %v4329_v13 = vmul.f32 1.442695, %v4328_v24 }
0x23bf   :  { %v4438_v26 = vpop.xlane.xlu0 %4437 }
0x23c0   :  { %5933 = vpow2.f32 %v4329_v13  ;;  %v4442_v3 = vmul.f32 0.03125, %v4438_v26 }
0x23c2   :  { %v4444_v19 = vsub.f32 %v4430_v9, %v4442_v3 }
0x23c4   :  { %v4446_v10 = vmul.f32 %v4444_v19, %v4444_v19 }
0x23c6   :  { %v4448_v31 = vsel %vm103_vm1, %v4446_v10, 0.0 }
0x23c7   :  { %4449 = vadd.xlane.f32.xlu0 %v4448_v31  ;;  %v5071_v31 = vld [vmem:[%s7166_s13 + $0x1] ss:$0 sm:$0xff] }
0x23ca   :  { %v5934_v38 = vpop.eup %5933 }
0x23cb   :  { %v4331_v54 = vsel %vm872_vm2, %v5934_v38, 0.0 }
0x23cc   :  { %4332 = vadd.xlane.f32.xlu1 %v4331_v54 }
0x23f7   :  { %v4268_v15 = vpop.f32.mrb[136].mxu1 }
0x23f8   :  { %v4274_v39 = vadd.f32 %v4268_v15, %v7040_v48  ;;  %v5752_v32 = vpop.f32.mrb[137].mxu1 }
0x23f9   :  { %v4271_v40 = vpop.f32.mrb[138].mxu1 }
0x23fa   :  { %v5753_v43 = vpop.f32.mrb[139].mxu1 }
0x2454   :  { %v4450_v35 = vpop.xlane.xlu0 %4449 }
0x2455   :  { %v4454_v44 = vmul.f32 0.03125, %v4450_v35 }
0x2457   :  { %v4456_v58 = vadd.f32 1e-05, %v4454_v44 }
0x2459   :  { %v4333_v37 = vpop.xlane.xlu1 %4332 }
0x245a   :  { %5935 = vrcp.f32 %v4333_v37 }
0x245b   :  { %5937 = vrsqrt.f32 %v4456_v58 }
0x2464   :  { %v5936_v2 = vpop.eup %5935 }
0x2465   :  { %v4335_v12 = vmul.f32 %v5936_v2, %v5934_v38  ;;  %v5938_v28 = vpop.eup %5937 }
0x2466   :  { %v4460_v27 = vmul.f32 %v5938_v28, %v4444_v19 }
0x2467   :  { %v4336_v47 = vpack.c.bf16 %v4335_v12, %v4335_v12 }
0x2468   :  { %v4468_v22 = vmul.f32 %v5051_v42, %v4460_v27 }
0x2469   :  { %5763 = vmatmul.mubr.msk.bf16.vlgmr.msra.gmra.mrb[140].mxu1 %vm872_vm2, %v4336_v47 }
0x246a   :  { %5776 = vmatprep.mubr.msk.bf16.mxu1 %vm5952_vm0, %v5951_v0  ;;  %5773 = vmatpush3.bf16.msra.mxu1 %v5857_v17  ;;  %v4476_v57 = vadd.f32 %v5052_v33, %v4468_v22  ;;  %v5079_v17 = vld [vmem:[%s7167_s16 + $0x1] ss:$0 sm:$0xff]  ;;  %s5953_s16 = smov 10  }
0x246b   :  { %5774 = vmatprep.subr.bf16.mxu1 %v5951_v0 }
0x246e   :  { %5775 = vmatpush3.bf16.msra.mxu1 %v5858_v63 }
0x246f   :  { %5792 = vmatprep.subr.bf16.mxu1 %v5951_v0 }
0x253c   :  { %v4378_v30 = vpop.f32.mrb[140].mxu1 }
0x253d   :  { %v4384_v59 = vpack.c.bf16 %v4378_v30, %v4378_v30  ;;  %v5764_v51 = vpop.f32.mrb[141].mxu1 }
0x253e   :  { %v4381_v60 = vpop.f32.mrb[142].mxu1 }
0x253f   :  { %v5765_v1 = vpop.f32.mrb[143].mxu1  ;;  %5769 = vmatmul.mubr.msk.bf16.vlgmr.msra.gmra.mrb[148].mxu0 %vm872_vm2, %v4384_v59 }
0x2540   :  { %5788 = vmatprep.mubr.msk.bf16.mxu0 %vm5952_vm0, %v5951_v0 }
0x2612   :  { %v4422_v48 = vpop.f32.mrb[148].mxu0 }
0x2613   :  { %v4428_v45 = vadd.f32 %v4422_v48, %v4274_v39  ;;  %v5770_v46 = vpop.f32.mrb[149].mxu0 }
0x2614   :  { %v4425_v36 = vpop.f32.mrb[150].mxu0 }
0x2615   :  { %v4429_v49 = vadd.f32 %v5036_v23, %v4428_v45  ;;  %v5771_v25 = vpop.f32.mrb[151].mxu0 }
0x2616   :  { %v5864_v25 = vld [vmem:[%s7169_s18 + $0x8] sm:$0xff]  }
0x2617   :  { %v4431_v41 = vadd.f32 %v4429_v49, %v6624_v16  ;;  %v5859_v16 = vld [vmem:[%s7162_s12 + $0x20] sm:$0xff]  }
0x2618   :  { %5781 = vmatpush3.bf16.msra.mxu0 %v5859_v16  ;;  %v5863_v49 = vld [vmem:[%s7169_s18] sm:$0xff]  }
0x2619   :  { %v4439_v8 = vsel %vm103_vm1, %v4431_v41, 0.0  ;;  %5782 = vmatprep.subr.bf16.mxu0 %v5951_v0 }
0x261a   :  { %4440 = vadd.xlane.f32.xlu1 %v4439_v8 }
0x261c   :  { %5783 = vmatpush3.bf16.msra.mxu0 %v5860_v55 }
0x261d   :  { %5784 = vmatprep.subr.bf16.mxu0 %v5951_v0 }
0x2620   :  { %5785 = vmatpush3.bf16.msra.mxu0 %v5861_v56 }
0x2621   :  { %5786 = vmatprep.subr.bf16.mxu0 %v5951_v0 }
0x2624   :  { %5787 = vmatpush3.bf16.msra.mxu0 %v5862_v21 }
0x26a7   :  { %v4441_v52 = vpop.xlane.xlu1 %4440 }
0x26a8   :  { %v4443_v20 = vmul.f32 0.03125, %v4441_v52 }
0x26aa   :  { %v4445_v6 = vsub.f32 %v4431_v41, %v4443_v20 }
0x26ac   :  { %v4447_v11 = vmul.f32 %v4445_v6, %v4445_v6 }
0x26ae   :  { %v4451_v7 = vsel %vm103_vm1, %v4447_v11, 0.0 }
0x26af   :  { %4452 = vadd.xlane.f32.xlu1 %v4451_v7 }
0x273c   :  { %v4453_v62 = vpop.xlane.xlu1 %4452 }
0x273d   :  { %v4455_v5 = vmul.f32 0.03125, %v4453_v62 }
0x273f   :  { %v4457_v18 = vadd.f32 1e-05, %v4455_v5 }
0x2741   :  { %5939 = vrsqrt.f32 %v4457_v18  ;;  %v5081_v18 = vld [vmem:[%s7170_s19] ss:$0 sm:$0xff] }
0x274b   :  { %v5940_v29 = vpop.eup %5939 }
0x274c   :  { %v4461_v23 = vmul.f32 %v5940_v29, %v4445_v6 }
0x274e   :  { %v4469_v4 = vmul.f32 %v5051_v42, %v4461_v23 }
0x2750   :  { %v4477_v61 = vadd.f32 %v5052_v33, %v4469_v4 }
0x2752   :  { %v4483_v14 = vpack.c.bf16 %v4477_v61, %v4476_v57 }
0x2754   :  { %5777 = vmatmul.mubr.msk.bf16.vlgmr.msra.gmra.mrb[144].mxu1 %vm103_vm1, %v4483_v14 }
0x2755   :  { %5796 = vmatprep.mubr.msk.bf16.mxu1 %vm5952_vm0, %v5951_v0  ;;  %5793 = vmatpush3.bf16.msra.mxu1 %v5863_v49 }
0x2756   :  { %5794 = vmatprep.subr.bf16.mxu1 %v5951_v0  ;;  %v5080_v0 = vld [vmem:[%s7168_s17 + $0x1] ss:$0 sm:$0xff] }
0x2759   :  { %5795 = vmatpush3.bf16.msra.mxu1 %v5864_v25 }
0x2827   :  { %v4541_v9 = vpop.f32.mrb[144].mxu1 }
0x2828   :  { %v4542_v53 = vadd.f32 %v5058_v50, %v4541_v9  ;;  %v5778_v34 = vpop.f32.mrb[145].mxu1 }
0x2829   :  { %v4544_v24 = vpop.f32.mrb[146].mxu1 }
0x282a   :  { %v4545_v13 = vadd.f32 %v5058_v50, %v4544_v24  ;;  %v5779_v26 = vpop.f32.mrb[147].mxu1  ;;  %v4548_v3 = vmax.f32 %v4542_v53, 0.0 }
0x282c   :  { %v4549_v19 = vmax.f32 %v4545_v13, 0.0 }
0x282e   :  { %v4559_v10 = vpack.c.bf16 %v4549_v19, %v4548_v3 }
0x2830   :  { %5789 = vmatmul.mubr.msk.bf16.vlgmr.msra.gmra.mrb[152].mxu0 %vm2285_vm5, %v4559_v10 }
0x2903   :  { %v4629_v38 = vpop.f32.mrb[152].mxu0 }
0x2904   :  { %v4630_v54 = vadd.f32 %v5071_v31, %v4629_v38  ;;  %v5790_v15 = vpop.f32.mrb[153].mxu0 }
0x2905   :  { %v4632_v39 = vpop.f32.mrb[154].mxu0 }
0x2906   :  { %v4633_v32 = vadd.f32 %v5071_v31, %v4632_v39  ;;  %v5791_v40 = vpop.f32.mrb[155].mxu0  ;;  %v4636_v43 = vadd.f32 %v4630_v54, %v4476_v57 }
0x2908   :  { %v4642_v37 = vsel %vm103_vm1, %v4636_v43, 0.0  ;;  %v4637_v2 = vadd.f32 %v4633_v32, %v4477_v61 }
0x2909   :  { %4643 = vadd.xlane.f32.xlu0 %v4642_v37 }
0x290a   :  { %v4645_v12 = vsel %vm103_vm1, %v4637_v2, 0.0 }
0x290b   :  { %4646 = vadd.xlane.f32.xlu1 %v4645_v12 }
0x2996   :  { %v4644_v47 = vpop.xlane.xlu0 %4643 }
0x2997   :  { %v4648_v30 = vmul.f32 0.03125, %v4644_v47 }
0x2998   :  { %v4647_v59 = vpop.xlane.xlu1 %4646 }
0x2999   :  { %v4650_v51 = vsub.f32 %v4636_v43, %v4648_v30  ;;  %v4649_v60 = vmul.f32 0.03125, %v4647_v59 }
0x299b   :  { %v4651_v1 = vsub.f32 %v4637_v2, %v4649_v60  ;;  %v4652_v48 = vmul.f32 %v4650_v51, %v4650_v51 }
0x299d   :  { %v4654_v45 = vsel %vm103_vm1, %v4652_v48, 0.0  ;;  %v4653_v46 = vmul.f32 %v4651_v1, %v4651_v1 }
0x299e   :  { %4655 = vadd.xlane.f32.xlu0 %v4654_v45 }
0x299f   :  { %v4657_v36 = vsel %vm103_vm1, %v4653_v46, 0.0 }
0x29a0   :  { %4658 = vadd.xlane.f32.xlu1 %v4657_v36 }
0x2a2b   :  { %v4656_v41 = vpop.xlane.xlu0 %4655 }
0x2a2c   :  { %v4660_v8 = vmul.f32 0.03125, %v4656_v41 }
0x2a2d   :  { %v4659_v52 = vpop.xlane.xlu1 %4658 }
0x2a2e   :  { %v4662_v20 = vadd.f32 1e-05, %v4660_v8  ;;  %v4661_v6 = vmul.f32 0.03125, %v4659_v52 }
0x2a30   :  { %5941 = vrsqrt.f32 %v4662_v20  ;;  %v4663_v11 = vadd.f32 1e-05, %v4661_v6 }
0x2a32   :  { %5943 = vrsqrt.f32 %v4663_v11 }
0x2a3a   :  { %v5942_v7 = vpop.eup %5941 }
0x2a3b   :  { %v4666_v63 = vmul.f32 %v5942_v7, %v4650_v51 }
0x2a3c   :  { %v5944_v16 = vpop.eup %5943 }
0x2a3d   :  { %v4674_v55 = vmul.f32 %v5079_v17, %v4666_v63  ;;  %v4667_v35 = vmul.f32 %v5944_v16, %v4651_v1 }
0x2a3f   :  { %v4675_v44 = vmul.f32 %v5079_v17, %v4667_v35  ;;  %v4682_v58 = vadd.f32 %v5080_v0, %v4674_v55 }
0x2a41   :  { %v4683_v62 = vadd.f32 %v5080_v0, %v4675_v44 }
0x2a43   :  { %v4688_v5 = vpack.c.bf16 %v4683_v62, %v4682_v58 }
0x2a45   :  { %5797 = vmatmul.mubr.msk.bf16.vlgmr.msra.gmra.mrb[148].mxu1 %vm103_vm1, %v4688_v5 }
0x2b18   :  { %v4745_v28 = vpop.f32.mrb[148].mxu1 }
0x2b19   :  { %v5798_v27 = vpop.f32.mrb[149].mxu1  ;;  %v4746_v29 = vadd.f32 %v5081_v18, %v4745_v28 }
0x2b1a   :  { %v4748_v42 = vpop.f32.mrb[150].mxu1 }
0x2b1b   :  { %v4749_v22 = vadd.f32 %v5081_v18, %v4748_v42  ;;  %v5799_v23 = vpop.f32.mrb[151].mxu1 }
0x2b1d   :  { %v4752_v33 = vmax.f32 %v4746_v29, %v4749_v22 }
0x2b1f   :  { %v4753_v4 = vsub.f32 %v4746_v29, %v4752_v33  ;;  %v4756_v57 = vsub.f32 %v4749_v22, %v4752_v33 }
0x2b21   :  { %v4754_v61 = vmul.f32 1.442695, %v4753_v4  ;;  %v4757_v14 = vmul.f32 1.442695, %v4756_v57 }
0x2b23   :  { %5945 = vpow2.f32 %v4754_v61 }
0x2b24   :  { %5947 = vpow2.f32 %v4757_v14 }
0x2b2d   :  { %v5946_v56 = vpop.eup %5945 }
0x2b2e   :  { %v5948_v21 = vpop.eup %5947 }
0x2b2f   :  { %v4759_v50 = vadd.f32 %v5948_v21, %v5946_v56 }
0x2b31   :  { %5949 = vrcp.f32 %v4759_v50 }
0x2b3b   :  { %v5950_v9 = vpop.eup %5949 }
0x2b3c   :  { %v4763_v53 = vmul.f32 %v5950_v9, %v5948_v21  ;;  %v4762_v34 = vmul.f32 %v5950_v9, %v5946_v56 }
0x2b3e   :  { %4765 = vrot.lane.b32.xlu0 %v4763_v53, %s5953_s16 }
0x2bb0   :  { %v4766_v24 = vpop.permute.xlu0 %4765 }
0x2bb1   :  { %v4769_v13 = vsel %vm4768_vm6, %v4762_v34, %v4766_v24 }
0x2bb2   :  { %4771 = vst.msk [vmem:[%s7171_s20] sm:$0xff] %vm4770_vm7, %v4769_v13 }

</bundles_post_ra>
